<compile_context>
chip_gen: v5e
topology: v5e:2x2
jax: 0.10.0
libtpu: 0.0.40
codegen_flags: <defaults>
</compile_context>

<pallas_src>
import jax
import jax.numpy as jnp
from jax.experimental import pallas as pl
from jax.experimental.pallas import tpu as pltpu

_LANE = 128     # TPU lane width
_SUBLANE = 8    # f32 sublane tile


# ----------------------------------------------------------------------------
# Helpers (wrapper-side glue: padding / gate-aligned weight packing)
# ----------------------------------------------------------------------------
def _round_up(x, m):
    return ((x + m - 1) // m) * m


def _pad_to(x, axis, size):
    pad = size - x.shape[axis]
    if pad <= 0:
        return x
    widths = [(0, 0)] * x.ndim
    widths[axis] = (0, pad)
    return jnp.pad(x, widths)


def _pad_gates(w, H, Hp):
    """(in, 3H) with PyTorch gate order [r|z|n] -> (in, 3*Hp); each gate starts at a k*Hp lane."""
    return jnp.concatenate(
        [_pad_to(w[:, k * H:(k + 1) * H], 1, Hp) for k in range(3)], axis=1)


def _pick_batch_block(B):
    """Big blocks amortize MXU weight-tile fill; >=2 blocks keeps both v7x TCs busy."""
    Bp = _round_up(B, _SUBLANE)
    if Bp <= _SUBLANE:
        return _SUBLANE
    bb = min(128, Bp)
    if Bp // bb < 2:
        bb = max(_SUBLANE, _round_up(-(-Bp // 2), _SUBLANE))
    return bb


# ----------------------------------------------------------------------------
# Pallas kernel: masked 2-layer GRU recurrence + output Linear for one batch block.
# ----------------------------------------------------------------------------
def _blocky_encoder_kernel(embed_ref, len_ref,
                           wih0_ref, bih0_ref, whh0_ref, bhh0_ref,
                           wih1_ref, bih1_ref, whh1_ref, bhh1_ref,
                           wo0_ref, wo1_ref, bo_ref,
                           out_ref):
    T, BB, Ep = embed_ref.shape
    Hp = whh0_ref.shape[0]

    # ---- hoisted layer-0 input projection: ONE (T*BB, Ep) x (Ep, 3Hp) matmul, time-major ----
    x = embed_ref[...].reshape(T * BB, Ep)                    # already bf16
    gi0_all = (jnp.dot(x, wih0_ref[...], preferred_element_type=jnp.float32)
               + bih0_ref[...]).reshape(T, BB, 3 * Hp)

    lens = len_ref[...]                                       # (BB, 1) int32
    whh0 = whh0_ref[...]                                      # (Hp, 3Hp) bf16
    wih1 = wih1_ref[...]                                      # (Hp, 3Hp) bf16
    whh1 = whh1_ref[...]                                      # (Hp, 3Hp) bf16

    # Hoisted bias broadcasts (re-emitting broadcast_in_dim T times is pure VALU waste).
    bhh0 = jnp.broadcast_to(bhh0_ref[...], (BB, 3 * Hp))
    bih1 = jnp.broadcast_to(bih1_ref[...], (BB, 3 * Hp))
    bhh1 = jnp.broadcast_to(bhh1_ref[...], (BB, 3 * Hp))

    def gru_gates(gi, gh, h):
        # PyTorch gate order r, z, n.  Gate columns are Hp(=128)-lane aligned -> cheap slices.
        r = jax.nn.sigmoid(gi[:, :Hp] + gh[:, :Hp])
        z = jax.nn.sigmoid(gi[:, Hp:2 * Hp] + gh[:, Hp:2 * Hp])
        n = jnp.tanh(gi[:, 2 * Hp:] + r * gh[:, 2 * Hp:])
        return (1.0 - z) * n + z * h

    h0 = jnp.zeros((BB, Hp), jnp.float32)
    h1 = jnp.zeros((BB, Hp), jnp.float32)

    # Statically unrolled time loop (T small and fixed).  Per step: gh0 and gh1 depend only
    # on previous-step state and are issued back-to-back up front (gh1 overlaps layer-0's
    # matmul + gate math); only gi1 = h0_new @ w_ih1 remains on the serial chain.
    for t in range(T):
        valid = lens > t                                      # (BB, 1) packed-seq validity

        h0b = h0.astype(jnp.bfloat16)
        h1b = h1.astype(jnp.bfloat16)
        gh0 = jnp.dot(h0b, whh0, preferred_element_type=jnp.float32) + bhh0
        gh1 = jnp.dot(h1b, whh1, preferred_element_type=jnp.float32) + bhh1

        # layer 0 (input projection already hoisted)
        h0 = jnp.where(valid, gru_gates(gi0_all[t], gh0, h0), h0)

        # layer 1: only this matmul is serialized behind the layer-0 update
        gi1 = jnp.dot(h0.astype(jnp.bfloat16), wih1,
                      preferred_element_type=jnp.float32) + bih1
        h1 = jnp.where(valid, gru_gates(gi1, gh1, h1), h1)

    # linear_out on [h0 | h1]: w_out pre-split in the wrapper -> no lane-axis concat needed.
    out_ref[...] = (
        jnp.dot(h0.astype(jnp.bfloat16), wo0_ref[...], preferred_element_type=jnp.float32)
        + jnp.dot(h1.astype(jnp.bfloat16), wo1_ref[...], preferred_element_type=jnp.float32)
        + bo_ref[...])


# ----------------------------------------------------------------------------
# Wrapper: embedding gather, time-major transpose, padding and weight packing are
# trace-time glue; the recurrence and all matmuls run inside the Pallas kernel.
# ----------------------------------------------------------------------------
def blocky_encoder_forward(seq, length, params, *, batch_block=None):
    H = params["hidden_dim"]
    embed_table = params["embedding"]
    _V, E = embed_table.shape
    B, T = seq.shape

    Hp = _round_up(H, _LANE)
    Ep = _round_up(E, _LANE)
    BB = batch_block if batch_block is not None else _pick_batch_block(B)
    Bp = _round_up(B, BB)

    f32, bf16 = jnp.float32, jnp.bfloat16

    # --- activations: gather, time-major, pad batch/lane dims; streamed input is bf16 ---
    embed = embed_table.astype(bf16)[seq]                   # (B, T, E) gather (glue)
    embed_tm = jnp.transpose(embed, (1, 0, 2))              # (T, B, E)  time-major
    embed_tm = _pad_to(_pad_to(embed_tm, 1, Bp), 2, Ep)     # (T, Bp, Ep) bf16
    length_p = _pad_to(length.astype(jnp.int32), 0, Bp).reshape(Bp, 1)   # padded rows: len 0

    # --- weights: gate-aligned padding (each gate column block starts at a multiple of Hp) ---
    wih0 = _pad_to(_pad_gates(params["w_ih0"], H, Hp), 0, Ep).astype(bf16)   # (Ep, 3Hp)
    whh0 = _pad_to(_pad_gates(params["w_hh0"], H, Hp), 0, Hp).astype(bf16)   # (Hp, 3Hp)
    bih0 = _pad_gates(params["b_ih0"], H, Hp).astype(f32)                    # (1, 3Hp)
    bhh0 = _pad_gates(params["b_hh0"], H, Hp).astype(f32)                    # (1, 3Hp)

    wih1 = _pad_to(_pad_gates(params["w_ih1"], H, Hp), 0, Hp).astype(bf16)   # (Hp, 3Hp)
    whh1 = _pad_to(_pad_gates(params["w_hh1"], H, Hp), 0, Hp).astype(bf16)   # (Hp, 3Hp)
    bih1 = _pad_gates(params["b_ih1"], H, Hp).astype(f32)                    # (1, 3Hp)
    bhh1 = _pad_gates(params["b_hh1"], H, Hp).astype(f32)                    # (1, 3Hp)

    wo0 = _pad_to(_pad_to(params["w_out"][:H], 0, Hp), 1, Hp).astype(bf16)   # (Hp, Hp)
    wo1 = _pad_to(_pad_to(params["w_out"][H:], 0, Hp), 1, Hp).astype(bf16)   # (Hp, Hp)
    bo = _pad_to(params["b_out"], 1, Hp).astype(f32)                         # (1, Hp)

    grid = (Bp // BB,)
    batch_blk = lambda i: (0, i, 0)
    whole2 = lambda i: (0, 0)

    in_specs = [
        pl.BlockSpec((T, BB, Ep), batch_blk),        # embeddings (time-major, bf16)
        pl.BlockSpec((BB, 1), lambda i: (i, 0)),     # lengths
        pl.BlockSpec((Ep, 3 * Hp), whole2),          # w_ih0
        pl.BlockSpec((1, 3 * Hp), whole2),           # b_ih0
        pl.BlockSpec((Hp, 3 * Hp), whole2),          # w_hh0
        pl.BlockSpec((1, 3 * Hp), whole2),           # b_hh0
        pl.BlockSpec((Hp, 3 * Hp), whole2),          # w_ih1
        pl.BlockSpec((1, 3 * Hp), whole2),           # b_ih1
        pl.BlockSpec((Hp, 3 * Hp), whole2),          # w_hh1
        pl.BlockSpec((1, 3 * Hp), whole2),           # b_hh1
        pl.BlockSpec((Hp, Hp), whole2),              # w_out (layer-0 half)
        pl.BlockSpec((Hp, Hp), whole2),              # w_out (layer-1 half)
        pl.BlockSpec((1, Hp), whole2),               # b_out
    ]

    out_padded = pl.pallas_call(
        _blocky_encoder_kernel,
        out_shape=jax.ShapeDtypeStruct((Bp, Hp), jnp.float32),
        grid=grid,
        in_specs=in_specs,
        out_specs=pl.BlockSpec((BB, Hp), lambda i: (i, 0)),
        compiler_params=pltpu.CompilerParams(dimension_semantics=("parallel",)),
    )(embed_tm, length_p, wih0, bih0, whh0, bhh0,
      wih1, bih1, whh1, bhh1, wo0, wo1, bo)

    return out_padded[:B, :H]


# ----------------------------------------------------------------------------
# Pure-JAX f32 reference (same math as the PyTorch module) for correctness check.
# ----------------------------------------------------------------------------
def blocky_encoder_reference(seq, length, params):
    embed = params["embedding"][seq].astype(jnp.float32)
    B, T, _E = embed.shape
    H = params["hidden_dim"]
    mask = (jnp.arange(T)[None, :] < length[:, None]).astype(jnp.float32)

    def gru_cell(x_t, h, wih, whh, bih, bhh):
        gi = x_t @ wih + bih
        gh = h @ whh + bhh
        r = jax.nn.sigmoid(gi[:, :H] + gh[:, :H])
        z = jax.nn.sigmoid(gi[:, H:2 * H] + gh[:, H:2 * H])
        n = jnp.tanh(gi[:, 2 * H:] + r * gh[:, 2 * H:])
        return (1.0 - z) * n + z * h

    h0 = jnp.zeros((B, H), jnp.float32)
    h1 = jnp.zeros((B, H), jnp.float32)
    for t in range(T):
        m = mask[:, t:t + 1]
        h0n = gru_cell(embed[:, t, :], h0, params["w_ih0"], params["w_hh0"],
                       params["b_ih0"], params["b_hh0"])
        h0 = m * h0n + (1.0 - m) * h0
        h1n = gru_cell(h0, h1, params["w_ih1"], params["w_hh1"],
                       params["b_ih1"], params["b_hh1"])
        h1 = m * h1n + (1.0 - m) * h1
    hidden = jnp.concatenate([h0, h1], axis=-1)
    return hidden @ params["w_out"] + params["b_out"]


def init_params(key, vocab_size, embedding_dim, hidden_dim):
    ks = jax.random.split(key, 12)
    s = 0.1
    E, H = embedding_dim, hidden_dim
    return {
        "hidden_dim": hidden_dim,
        "embedding": jax.random.normal(ks[0], (vocab_size, E), jnp.float32) * s,
        # GRU layer 0 (stored transposed: (in, 3H), (H, 3H), biases (1, 3H); gate order r,z,n)
        "w_ih0": jax.random.normal(ks[1], (E, 3 * H), jnp.float32) * s,
        "w_hh0": jax.random.normal(ks[2], (H, 3 * H), jnp.float32) * s,
        "b_ih0": jax.random.normal(ks[3], (1, 3 * H), jnp.float32) * s,
        "b_hh0": jax.random.normal(ks[4], (1, 3 * H), jnp.float32) * s,
        # GRU layer 1 (input size = H)
        "w_ih1": jax.random.normal(ks[5], (H, 3 * H), jnp.float32) * s,
        "w_hh1": jax.random.normal(ks[6], (H, 3 * H), jnp.float32) * s,
        "b_ih1": jax.random.normal(ks[7], (1, 3 * H), jnp.float32) * s,
        "b_hh1": jax.random.normal(ks[8], (1, 3 * H), jnp.float32) * s,
        # linear_out: (num_layers*H -> H), stored transposed (2H, H), bias (1, H)
        "w_out": jax.random.normal(ks[9], (2 * H, H), jnp.float32) * s,
        "b_out": jax.random.normal(ks[10], (1, H), jnp.float32) * s,
    }


if __name__ == "__main__":
    VOCAB, E, H = 50, 32, 32
    B, T = 4, 8

    key = jax.random.PRNGKey(0)
    k_param, k_seq = jax.random.split(key)
    params = init_params(k_param, VOCAB, E, H)

    seq = jax.random.randint(k_seq, (B, T), 0, VOCAB, dtype=jnp.int32)   # (B, T) token ids
    length = jnp.array([8, 5, 3, 6], dtype=jnp.int32)                    # (B,) valid lengths

    out = blocky_encoder_forward(seq, length, params)
    out = jax.block_until_ready(out)
    assert out.shape == (B, H) and out.dtype == jnp.float32

    ref = blocky_encoder_reference(seq, length, params)
    # bf16 MXU inputs (f32 accumulation) -> loosened tolerance vs. the pure-f32 reference.
    assert jnp.allclose(out, ref, atol=2e-2, rtol=2e-2), "kernel vs reference mismatch"

    print("KERNEL_OK")
</pallas_src>

<mosaic_0001>
module attributes {stable_mosaic.version = 11 : i64} {
  func.func @_blocky_encoder_kernel(%arg0: i32, %arg1: memref<8x8x128xbf16, #tpu.memory_space<vmem>>, %arg2: memref<8x1xi32, #tpu.memory_space<vmem>>, %arg3: memref<128x384xbf16, #tpu.memory_space<vmem>>, %arg4: memref<1x384xf32, #tpu.memory_space<vmem>>, %arg5: memref<128x384xbf16, #tpu.memory_space<vmem>>, %arg6: memref<1x384xf32, #tpu.memory_space<vmem>>, %arg7: memref<128x384xbf16, #tpu.memory_space<vmem>>, %arg8: memref<1x384xf32, #tpu.memory_space<vmem>>, %arg9: memref<128x384xbf16, #tpu.memory_space<vmem>>, %arg10: memref<1x384xf32, #tpu.memory_space<vmem>>, %arg11: memref<128x128xbf16, #tpu.memory_space<vmem>>, %arg12: memref<128x128xbf16, #tpu.memory_space<vmem>>, %arg13: memref<1x128xf32, #tpu.memory_space<vmem>>, %arg14: memref<8x128xf32, #tpu.memory_space<vmem>>) attributes {dimension_semantics = [#tpu.dimension_semantics<parallel>], iteration_bounds = array<i64: 1>, scalar_prefetch = 0 : i64, scratch_operands = 0 : i64, tpu.core_type = #tpu.core_type<tc>, window_params = [{transform_indices = @transform_0, window_bounds = array<i64: 8, 8, 128>}, {transform_indices = @transform_1, window_bounds = array<i64: 8, 1>}, {pipeline_mode = #tpu.pipeline_mode<synchronous>, transform_indices = @transform_2, window_bounds = array<i64: 128, 384>}, {pipeline_mode = #tpu.pipeline_mode<synchronous>, transform_indices = @transform_3, window_bounds = array<i64: 1, 384>}, {pipeline_mode = #tpu.pipeline_mode<synchronous>, transform_indices = @transform_4, window_bounds = array<i64: 128, 384>}, {pipeline_mode = #tpu.pipeline_mode<synchronous>, transform_indices = @transform_5, window_bounds = array<i64: 1, 384>}, {pipeline_mode = #tpu.pipeline_mode<synchronous>, transform_indices = @transform_6, window_bounds = array<i64: 128, 384>}, {pipeline_mode = #tpu.pipeline_mode<synchronous>, transform_indices = @transform_7, window_bounds = array<i64: 1, 384>}, {pipeline_mode = #tpu.pipeline_mode<synchronous>, transform_indices = @transform_8, window_bounds = array<i64: 128, 384>}, {pipeline_mode = #tpu.pipeline_mode<synchronous>, transform_indices = @transform_9, window_bounds = array<i64: 1, 384>}, {pipeline_mode = #tpu.pipeline_mode<synchronous>, transform_indices = @transform_10, window_bounds = array<i64: 128, 128>}, {pipeline_mode = #tpu.pipeline_mode<synchronous>, transform_indices = @transform_11, window_bounds = array<i64: 128, 128>}, {pipeline_mode = #tpu.pipeline_mode<synchronous>, transform_indices = @transform_12, window_bounds = array<i64: 1, 128>}, {transform_indices = @transform_13, window_bounds = array<i64: 8, 128>}]} {
    %c0 = arith.constant 0 : index
    %c0_0 = arith.constant 0 : index
    %c0_1 = arith.constant 0 : index
    %0 = vector.load %arg1[%c0, %c0_0, %c0_1] : memref<8x8x128xbf16, #tpu.memory_space<vmem>>, vector<8x8x128xbf16>
    %1 = vector.shape_cast %0 : vector<8x8x128xbf16> to vector<64x128xbf16>
    %c0_2 = arith.constant 0 : index
    %c0_3 = arith.constant 0 : index
    %2 = vector.load %arg3[%c0_2, %c0_3] : memref<128x384xbf16, #tpu.memory_space<vmem>>, vector<128x384xbf16>
    %cst = arith.constant dense<0.000000e+00> : vector<64x384xf32>
    %3 = tpu.matmul %1, %2, %cst {dimension_numbers = #tpu.dot_dimension_numbers<[1], [0], [0], [1], [0, 0, 1, 1], [], []>} : vector<64x128xbf16>, vector<128x384xbf16>, vector<64x384xf32> -> vector<64x384xf32>
    %c0_4 = arith.constant 0 : index
    %c0_5 = arith.constant 0 : index
    %4 = vector.load %arg4[%c0_4, %c0_5] : memref<1x384xf32, #tpu.memory_space<vmem>>, vector<1x384xf32>
    %5 = vector.broadcast %4 : vector<1x384xf32> to vector<64x384xf32>
    %6 = arith.addf %3, %5 : vector<64x384xf32>
    %7 = vector.shape_cast %6 : vector<64x384xf32> to vector<8x8x384xf32>
    %c0_6 = arith.constant 0 : index
    %c0_7 = arith.constant 0 : index
    %8 = vector.load %arg2[%c0_6, %c0_7] : memref<8x1xi32, #tpu.memory_space<vmem>>, vector<8x1xi32>
    %c0_8 = arith.constant 0 : index
    %c0_9 = arith.constant 0 : index
    %9 = vector.load %arg5[%c0_8, %c0_9] : memref<128x384xbf16, #tpu.memory_space<vmem>>, vector<128x384xbf16>
    %c0_10 = arith.constant 0 : index
    %c0_11 = arith.constant 0 : index
    %10 = vector.load %arg7[%c0_10, %c0_11] : memref<128x384xbf16, #tpu.memory_space<vmem>>, vector<128x384xbf16>
    %c0_12 = arith.constant 0 : index
    %c0_13 = arith.constant 0 : index
    %11 = vector.load %arg9[%c0_12, %c0_13] : memref<128x384xbf16, #tpu.memory_space<vmem>>, vector<128x384xbf16>
    %c0_14 = arith.constant 0 : index
    %c0_15 = arith.constant 0 : index
    %12 = vector.load %arg6[%c0_14, %c0_15] : memref<1x384xf32, #tpu.memory_space<vmem>>, vector<1x384xf32>
    %13 = vector.shape_cast %12 : vector<1x384xf32> to vector<1x384xf32>
    %14 = vector.broadcast %13 : vector<1x384xf32> to vector<8x384xf32>
    %c0_16 = arith.constant 0 : index
    %c0_17 = arith.constant 0 : index
    %15 = vector.load %arg8[%c0_16, %c0_17] : memref<1x384xf32, #tpu.memory_space<vmem>>, vector<1x384xf32>
    %16 = vector.shape_cast %15 : vector<1x384xf32> to vector<1x384xf32>
    %17 = vector.broadcast %16 : vector<1x384xf32> to vector<8x384xf32>
    %c0_18 = arith.constant 0 : index
    %c0_19 = arith.constant 0 : index
    %18 = vector.load %arg10[%c0_18, %c0_19] : memref<1x384xf32, #tpu.memory_space<vmem>>, vector<1x384xf32>
    %19 = vector.shape_cast %18 : vector<1x384xf32> to vector<1x384xf32>
    %20 = vector.broadcast %19 : vector<1x384xf32> to vector<8x384xf32>
    %cst_20 = arith.constant 0.000000e+00 : f32
    %21 = vector.broadcast %cst_20 : f32 to vector<8x128xf32>
    %cst_21 = arith.constant 0.000000e+00 : f32
    %22 = vector.broadcast %cst_21 : f32 to vector<8x128xf32>
    %c0_i32 = arith.constant 0 : i32
    %23 = vector.broadcast %c0_i32 : i32 to vector<8x1xi32>
    %24 = arith.cmpi sgt, %8, %23 : vector<8x1xi32>
    %25 = arith.truncf %21 : vector<8x128xf32> to vector<8x128xbf16>
    %26 = arith.truncf %22 : vector<8x128xf32> to vector<8x128xbf16>
    %cst_22 = arith.constant dense<0.000000e+00> : vector<8x384xf32>
    %27 = tpu.matmul %25, %9, %cst_22 {dimension_numbers = #tpu.dot_dimension_numbers<[1], [0], [0], [1], [0, 0, 1, 1], [], []>} : vector<8x128xbf16>, vector<128x384xbf16>, vector<8x384xf32> -> vector<8x384xf32>
    %28 = arith.addf %27, %14 : vector<8x384xf32>
    %cst_23 = arith.constant dense<0.000000e+00> : vector<8x384xf32>
    %29 = tpu.matmul %26, %11, %cst_23 {dimension_numbers = #tpu.dot_dimension_numbers<[1], [0], [0], [1], [0, 0, 1, 1], [], []>} : vector<8x128xbf16>, vector<128x384xbf16>, vector<8x384xf32> -> vector<8x384xf32>
    %30 = arith.addf %29, %20 : vector<8x384xf32>
    %31 = vector.extract_strided_slice %7 {offsets = [0, 0, 0], sizes = [1, 8, 384], strides = [1, 1, 1]} : vector<8x8x384xf32> to vector<1x8x384xf32>
    %32 = vector.shape_cast %31 : vector<1x8x384xf32> to vector<8x384xf32>
    %33 = vector.extract_strided_slice %32 {offsets = [0, 0], sizes = [8, 128], strides = [1, 1]} : vector<8x384xf32> to vector<8x128xf32>
    %34 = vector.extract_strided_slice %28 {offsets = [0, 0], sizes = [8, 128], strides = [1, 1]} : vector<8x384xf32> to vector<8x128xf32>
    %35 = arith.addf %33, %34 : vector<8x128xf32>
    %36 = arith.negf %35 : vector<8x128xf32>
    %37 = math.exp %36 : vector<8x128xf32>
    %cst_24 = arith.constant 1.000000e+00 : f32
    %38 = vector.broadcast %cst_24 : f32 to vector<8x128xf32>
    %39 = arith.addf %38, %37 : vector<8x128xf32>
    %40 = arith.divf %38, %39 : vector<8x128xf32>
    %41 = vector.extract_strided_slice %32 {offsets = [0, 128], sizes = [8, 128], strides = [1, 1]} : vector<8x384xf32> to vector<8x128xf32>
    %42 = vector.extract_strided_slice %28 {offsets = [0, 128], sizes = [8, 128], strides = [1, 1]} : vector<8x384xf32> to vector<8x128xf32>
    %43 = arith.addf %41, %42 : vector<8x128xf32>
    %44 = arith.negf %43 : vector<8x128xf32>
    %45 = math.exp %44 : vector<8x128xf32>
    %cst_25 = arith.constant 1.000000e+00 : f32
    %46 = vector.broadcast %cst_25 : f32 to vector<8x128xf32>
    %47 = arith.addf %46, %45 : vector<8x128xf32>
    %48 = arith.divf %46, %47 : vector<8x128xf32>
    %49 = vector.extract_strided_slice %32 {offsets = [0, 256], sizes = [8, 128], strides = [1, 1]} : vector<8x384xf32> to vector<8x128xf32>
    %50 = vector.extract_strided_slice %28 {offsets = [0, 256], sizes = [8, 128], strides = [1, 1]} : vector<8x384xf32> to vector<8x128xf32>
    %51 = arith.mulf %40, %50 : vector<8x128xf32>
    %52 = arith.addf %49, %51 : vector<8x128xf32>
    %53 = math.tanh %52 : vector<8x128xf32>
    %cst_26 = arith.constant 1.000000e+00 : f32
    %54 = vector.broadcast %cst_26 : f32 to vector<8x128xf32>
    %55 = arith.subf %54, %48 : vector<8x128xf32>
    %56 = arith.mulf %55, %53 : vector<8x128xf32>
    %57 = arith.mulf %48, %21 : vector<8x128xf32>
    %58 = arith.addf %56, %57 : vector<8x128xf32>
    %59 = vector.shape_cast %24 : vector<8x1xi1> to vector<8x1xi1>
    %60 = vector.broadcast %59 : vector<8x1xi1> to vector<8x128xi1>
    %61 = arith.select %60, %58, %21 : vector<8x128xi1>, vector<8x128xf32>
    %62 = arith.truncf %61 : vector<8x128xf32> to vector<8x128xbf16>
    %cst_27 = arith.constant dense<0.000000e+00> : vector<8x384xf32>
    %63 = tpu.matmul %62, %10, %cst_27 {dimension_numbers = #tpu.dot_dimension_numbers<[1], [0], [0], [1], [0, 0, 1, 1], [], []>} : vector<8x128xbf16>, vector<128x384xbf16>, vector<8x384xf32> -> vector<8x384xf32>
    %64 = arith.addf %63, %17 : vector<8x384xf32>
    %65 = vector.extract_strided_slice %64 {offsets = [0, 0], sizes = [8, 128], strides = [1, 1]} : vector<8x384xf32> to vector<8x128xf32>
    %66 = vector.extract_strided_slice %30 {offsets = [0, 0], sizes = [8, 128], strides = [1, 1]} : vector<8x384xf32> to vector<8x128xf32>
    %67 = arith.addf %65, %66 : vector<8x128xf32>
    %68 = arith.negf %67 : vector<8x128xf32>
    %69 = math.exp %68 : vector<8x128xf32>
    %cst_28 = arith.constant 1.000000e+00 : f32
    %70 = vector.broadcast %cst_28 : f32 to vector<8x128xf32>
    %71 = arith.addf %70, %69 : vector<8x128xf32>
    %72 = arith.divf %70, %71 : vector<8x128xf32>
    %73 = vector.extract_strided_slice %64 {offsets = [0, 128], sizes = [8, 128], strides = [1, 1]} : vector<8x384xf32> to vector<8x128xf32>
    %74 = vector.extract_strided_slice %30 {offsets = [0, 128], sizes = [8, 128], strides = [1, 1]} : vector<8x384xf32> to vector<8x128xf32>
    %75 = arith.addf %73, %74 : vector<8x128xf32>
    %76 = arith.negf %75 : vector<8x128xf32>
    %77 = math.exp %76 : vector<8x128xf32>
    %cst_29 = arith.constant 1.000000e+00 : f32
    %78 = vector.broadcast %cst_29 : f32 to vector<8x128xf32>
    %79 = arith.addf %78, %77 : vector<8x128xf32>
    %80 = arith.divf %78, %79 : vector<8x128xf32>
    %81 = vector.extract_strided_slice %64 {offsets = [0, 256], sizes = [8, 128], strides = [1, 1]} : vector<8x384xf32> to vector<8x128xf32>
    %82 = vector.extract_strided_slice %30 {offsets = [0, 256], sizes = [8, 128], strides = [1, 1]} : vector<8x384xf32> to vector<8x128xf32>
    %83 = arith.mulf %72, %82 : vector<8x128xf32>
    %84 = arith.addf %81, %83 : vector<8x128xf32>
    %85 = math.tanh %84 : vector<8x128xf32>
    %cst_30 = arith.constant 1.000000e+00 : f32
    %86 = vector.broadcast %cst_30 : f32 to vector<8x128xf32>
    %87 = arith.subf %86, %80 : vector<8x128xf32>
    %88 = arith.mulf %87, %85 : vector<8x128xf32>
    %89 = arith.mulf %80, %22 : vector<8x128xf32>
    %90 = arith.addf %88, %89 : vector<8x128xf32>
    %91 = vector.shape_cast %24 : vector<8x1xi1> to vector<8x1xi1>
    %92 = vector.broadcast %91 : vector<8x1xi1> to vector<8x128xi1>
    %93 = arith.select %92, %90, %22 : vector<8x128xi1>, vector<8x128xf32>
    %c1_i32 = arith.constant 1 : i32
    %94 = vector.broadcast %c1_i32 : i32 to vector<8x1xi32>
    %95 = arith.cmpi sgt, %8, %94 : vector<8x1xi32>
    %96 = arith.truncf %61 : vector<8x128xf32> to vector<8x128xbf16>
    %97 = arith.truncf %93 : vector<8x128xf32> to vector<8x128xbf16>
    %cst_31 = arith.constant dense<0.000000e+00> : vector<8x384xf32>
    %98 = tpu.matmul %96, %9, %cst_31 {dimension_numbers = #tpu.dot_dimension_numbers<[1], [0], [0], [1], [0, 0, 1, 1], [], []>} : vector<8x128xbf16>, vector<128x384xbf16>, vector<8x384xf32> -> vector<8x384xf32>
    %99 = arith.addf %98, %14 : vector<8x384xf32>
    %cst_32 = arith.constant dense<0.000000e+00> : vector<8x384xf32>
    %100 = tpu.matmul %97, %11, %cst_32 {dimension_numbers = #tpu.dot_dimension_numbers<[1], [0], [0], [1], [0, 0, 1, 1], [], []>} : vector<8x128xbf16>, vector<128x384xbf16>, vector<8x384xf32> -> vector<8x384xf32>
    %101 = arith.addf %100, %20 : vector<8x384xf32>
    %102 = vector.extract_strided_slice %7 {offsets = [1, 0, 0], sizes = [1, 8, 384], strides = [1, 1, 1]} : vector<8x8x384xf32> to vector<1x8x384xf32>
    %103 = vector.shape_cast %102 : vector<1x8x384xf32> to vector<8x384xf32>
    %104 = vector.extract_strided_slice %103 {offsets = [0, 0], sizes = [8, 128], strides = [1, 1]} : vector<8x384xf32> to vector<8x128xf32>
    %105 = vector.extract_strided_slice %99 {offsets = [0, 0], sizes = [8, 128], strides = [1, 1]} : vector<8x384xf32> to vector<8x128xf32>
    %106 = arith.addf %104, %105 : vector<8x128xf32>
    %107 = arith.negf %106 : vector<8x128xf32>
    %108 = math.exp %107 : vector<8x128xf32>
    %cst_33 = arith.constant 1.000000e+00 : f32
    %109 = vector.broadcast %cst_33 : f32 to vector<8x128xf32>
    %110 = arith.addf %109, %108 : vector<8x128xf32>
    %111 = arith.divf %109, %110 : vector<8x128xf32>
    %112 = vector.extract_strided_slice %103 {offsets = [0, 128], sizes = [8, 128], strides = [1, 1]} : vector<8x384xf32> to vector<8x128xf32>
    %113 = vector.extract_strided_slice %99 {offsets = [0, 128], sizes = [8, 128], strides = [1, 1]} : vector<8x384xf32> to vector<8x128xf32>
    %114 = arith.addf %112, %113 : vector<8x128xf32>
    %115 = arith.negf %114 : vector<8x128xf32>
    %116 = math.exp %115 : vector<8x128xf32>
    %cst_34 = arith.constant 1.000000e+00 : f32
    %117 = vector.broadcast %cst_34 : f32 to vector<8x128xf32>
    %118 = arith.addf %117, %116 : vector<8x128xf32>
    %119 = arith.divf %117, %118 : vector<8x128xf32>
    %120 = vector.extract_strided_slice %103 {offsets = [0, 256], sizes = [8, 128], strides = [1, 1]} : vector<8x384xf32> to vector<8x128xf32>
    %121 = vector.extract_strided_slice %99 {offsets = [0, 256], sizes = [8, 128], strides = [1, 1]} : vector<8x384xf32> to vector<8x128xf32>
    %122 = arith.mulf %111, %121 : vector<8x128xf32>
    %123 = arith.addf %120, %122 : vector<8x128xf32>
    %124 = math.tanh %123 : vector<8x128xf32>
    %cst_35 = arith.constant 1.000000e+00 : f32
    %125 = vector.broadcast %cst_35 : f32 to vector<8x128xf32>
    %126 = arith.subf %125, %119 : vector<8x128xf32>
    %127 = arith.mulf %126, %124 : vector<8x128xf32>
    %128 = arith.mulf %119, %61 : vector<8x128xf32>
    %129 = arith.addf %127, %128 : vector<8x128xf32>
    %130 = vector.shape_cast %95 : vector<8x1xi1> to vector<8x1xi1>
    %131 = vector.broadcast %130 : vector<8x1xi1> to vector<8x128xi1>
    %132 = arith.select %131, %129, %61 : vector<8x128xi1>, vector<8x128xf32>
    %133 = arith.truncf %132 : vector<8x128xf32> to vector<8x128xbf16>
    %cst_36 = arith.constant dense<0.000000e+00> : vector<8x384xf32>
    %134 = tpu.matmul %133, %10, %cst_36 {dimension_numbers = #tpu.dot_dimension_numbers<[1], [0], [0], [1], [0, 0, 1, 1], [], []>} : vector<8x128xbf16>, vector<128x384xbf16>, vector<8x384xf32> -> vector<8x384xf32>
    %135 = arith.addf %134, %17 : vector<8x384xf32>
    %136 = vector.extract_strided_slice %135 {offsets = [0, 0], sizes = [8, 128], strides = [1, 1]} : vector<8x384xf32> to vector<8x128xf32>
    %137 = vector.extract_strided_slice %101 {offsets = [0, 0], sizes = [8, 128], strides = [1, 1]} : vector<8x384xf32> to vector<8x128xf32>
    %138 = arith.addf %136, %137 : vector<8x128xf32>
    %139 = arith.negf %138 : vector<8x128xf32>
    %140 = math.exp %139 : vector<8x128xf32>
    %cst_37 = arith.constant 1.000000e+00 : f32
    %141 = vector.broadcast %cst_37 : f32 to vector<8x128xf32>
    %142 = arith.addf %141, %140 : vector<8x128xf32>
    %143 = arith.divf %141, %142 : vector<8x128xf32>
    %144 = vector.extract_strided_slice %135 {offsets = [0, 128], sizes = [8, 128], strides = [1, 1]} : vector<8x384xf32> to vector<8x128xf32>
    %145 = vector.extract_strided_slice %101 {offsets = [0, 128], sizes = [8, 128], strides = [1, 1]} : vector<8x384xf32> to vector<8x128xf32>
    %146 = arith.addf %144, %145 : vector<8x128xf32>
    %147 = arith.negf %146 : vector<8x128xf32>
    %148 = math.exp %147 : vector<8x128xf32>
    %cst_38 = arith.constant 1.000000e+00 : f32
    %149 = vector.broadcast %cst_38 : f32 to vector<8x128xf32>
    %150 = arith.addf %149, %148 : vector<8x128xf32>
    %151 = arith.divf %149, %150 : vector<8x128xf32>
    %152 = vector.extract_strided_slice %135 {offsets = [0, 256], sizes = [8, 128], strides = [1, 1]} : vector<8x384xf32> to vector<8x128xf32>
    %153 = vector.extract_strided_slice %101 {offsets = [0, 256], sizes = [8, 128], strides = [1, 1]} : vector<8x384xf32> to vector<8x128xf32>
    %154 = arith.mulf %143, %153 : vector<8x128xf32>
    %155 = arith.addf %152, %154 : vector<8x128xf32>
    %156 = math.tanh %155 : vector<8x128xf32>
    %cst_39 = arith.constant 1.000000e+00 : f32
    %157 = vector.broadcast %cst_39 : f32 to vector<8x128xf32>
    %158 = arith.subf %157, %151 : vector<8x128xf32>
    %159 = arith.mulf %158, %156 : vector<8x128xf32>
    %160 = arith.mulf %151, %93 : vector<8x128xf32>
    %161 = arith.addf %159, %160 : vector<8x128xf32>
    %162 = vector.shape_cast %95 : vector<8x1xi1> to vector<8x1xi1>
    %163 = vector.broadcast %162 : vector<8x1xi1> to vector<8x128xi1>
    %164 = arith.select %163, %161, %93 : vector<8x128xi1>, vector<8x128xf32>
    %c2_i32 = arith.constant 2 : i32
    %165 = vector.broadcast %c2_i32 : i32 to vector<8x1xi32>
    %166 = arith.cmpi sgt, %8, %165 : vector<8x1xi32>
    %167 = arith.truncf %132 : vector<8x128xf32> to vector<8x128xbf16>
    %168 = arith.truncf %164 : vector<8x128xf32> to vector<8x128xbf16>
    %cst_40 = arith.constant dense<0.000000e+00> : vector<8x384xf32>
    %169 = tpu.matmul %167, %9, %cst_40 {dimension_numbers = #tpu.dot_dimension_numbers<[1], [0], [0], [1], [0, 0, 1, 1], [], []>} : vector<8x128xbf16>, vector<128x384xbf16>, vector<8x384xf32> -> vector<8x384xf32>
    %170 = arith.addf %169, %14 : vector<8x384xf32>
    %cst_41 = arith.constant dense<0.000000e+00> : vector<8x384xf32>
    %171 = tpu.matmul %168, %11, %cst_41 {dimension_numbers = #tpu.dot_dimension_numbers<[1], [0], [0], [1], [0, 0, 1, 1], [], []>} : vector<8x128xbf16>, vector<128x384xbf16>, vector<8x384xf32> -> vector<8x384xf32>
    %172 = arith.addf %171, %20 : vector<8x384xf32>
    %173 = vector.extract_strided_slice %7 {offsets = [2, 0, 0], sizes = [1, 8, 384], strides = [1, 1, 1]} : vector<8x8x384xf32> to vector<1x8x384xf32>
    %174 = vector.shape_cast %173 : vector<1x8x384xf32> to vector<8x384xf32>
    %175 = vector.extract_strided_slice %174 {offsets = [0, 0], sizes = [8, 128], strides = [1, 1]} : vector<8x384xf32> to vector<8x128xf32>
    %176 = vector.extract_strided_slice %170 {offsets = [0, 0], sizes = [8, 128], strides = [1, 1]} : vector<8x384xf32> to vector<8x128xf32>
    %177 = arith.addf %175, %176 : vector<8x128xf32>
    %178 = arith.negf %177 : vector<8x128xf32>
    %179 = math.exp %178 : vector<8x128xf32>
    %cst_42 = arith.constant 1.000000e+00 : f32
    %180 = vector.broadcast %cst_42 : f32 to vector<8x128xf32>
    %181 = arith.addf %180, %179 : vector<8x128xf32>
    %182 = arith.divf %180, %181 : vector<8x128xf32>
    %183 = vector.extract_strided_slice %174 {offsets = [0, 128], sizes = [8, 128], strides = [1, 1]} : vector<8x384xf32> to vector<8x128xf32>
    %184 = vector.extract_strided_slice %170 {offsets = [0, 128], sizes = [8, 128], strides = [1, 1]} : vector<8x384xf32> to vector<8x128xf32>
    %185 = arith.addf %183, %184 : vector<8x128xf32>
    %186 = arith.negf %185 : vector<8x128xf32>
    %187 = math.exp %186 : vector<8x128xf32>
    %cst_43 = arith.constant 1.000000e+00 : f32
    %188 = vector.broadcast %cst_43 : f32 to vector<8x128xf32>
    %189 = arith.addf %188, %187 : vector<8x128xf32>
    %190 = arith.divf %188, %189 : vector<8x128xf32>
    %191 = vector.extract_strided_slice %174 {offsets = [0, 256], sizes = [8, 128], strides = [1, 1]} : vector<8x384xf32> to vector<8x128xf32>
    %192 = vector.extract_strided_slice %170 {offsets = [0, 256], sizes = [8, 128], strides = [1, 1]} : vector<8x384xf32> to vector<8x128xf32>
    %193 = arith.mulf %182, %192 : vector<8x128xf32>
    %194 = arith.addf %191, %193 : vector<8x128xf32>
    %195 = math.tanh %194 : vector<8x128xf32>
    %cst_44 = arith.constant 1.000000e+00 : f32
    %196 = vector.broadcast %cst_44 : f32 to vector<8x128xf32>
    %197 = arith.subf %196, %190 : vector<8x128xf32>
    %198 = arith.mulf %197, %195 : vector<8x128xf32>
    %199 = arith.mulf %190, %132 : vector<8x128xf32>
    %200 = arith.addf %198, %199 : vector<8x128xf32>
    %201 = vector.shape_cast %166 : vector<8x1xi1> to vector<8x1xi1>
    %202 = vector.broadcast %201 : vector<8x1xi1> to vector<8x128xi1>
    %203 = arith.select %202, %200, %132 : vector<8x128xi1>, vector<8x128xf32>
    %204 = arith.truncf %203 : vector<8x128xf32> to vector<8x128xbf16>
    %cst_45 = arith.constant dense<0.000000e+00> : vector<8x384xf32>
    %205 = tpu.matmul %204, %10, %cst_45 {dimension_numbers = #tpu.dot_dimension_numbers<[1], [0], [0], [1], [0, 0, 1, 1], [], []>} : vector<8x128xbf16>, vector<128x384xbf16>, vector<8x384xf32> -> vector<8x384xf32>
    %206 = arith.addf %205, %17 : vector<8x384xf32>
    %207 = vector.extract_strided_slice %206 {offsets = [0, 0], sizes = [8, 128], strides = [1, 1]} : vector<8x384xf32> to vector<8x128xf32>
    %208 = vector.extract_strided_slice %172 {offsets = [0, 0], sizes = [8, 128], strides = [1, 1]} : vector<8x384xf32> to vector<8x128xf32>
    %209 = arith.addf %207, %208 : vector<8x128xf32>
    %210 = arith.negf %209 : vector<8x128xf32>
    %211 = math.exp %210 : vector<8x128xf32>
    %cst_46 = arith.constant 1.000000e+00 : f32
    %212 = vector.broadcast %cst_46 : f32 to vector<8x128xf32>
    %213 = arith.addf %212, %211 : vector<8x128xf32>
    %214 = arith.divf %212, %213 : vector<8x128xf32>
    %215 = vector.extract_strided_slice %206 {offsets = [0, 128], sizes = [8, 128], strides = [1, 1]} : vector<8x384xf32> to vector<8x128xf32>
    %216 = vector.extract_strided_slice %172 {offsets = [0, 128], sizes = [8, 128], strides = [1, 1]} : vector<8x384xf32> to vector<8x128xf32>
    %217 = arith.addf %215, %216 : vector<8x128xf32>
    %218 = arith.negf %217 : vector<8x128xf32>
    %219 = math.exp %218 : vector<8x128xf32>
    %cst_47 = arith.constant 1.000000e+00 : f32
    %220 = vector.broadcast %cst_47 : f32 to vector<8x128xf32>
    %221 = arith.addf %220, %219 : vector<8x128xf32>
    %222 = arith.divf %220, %221 : vector<8x128xf32>
    %223 = vector.extract_strided_slice %206 {offsets = [0, 256], sizes = [8, 128], strides = [1, 1]} : vector<8x384xf32> to vector<8x128xf32>
    %224 = vector.extract_strided_slice %172 {offsets = [0, 256], sizes = [8, 128], strides = [1, 1]} : vector<8x384xf32> to vector<8x128xf32>
    %225 = arith.mulf %214, %224 : vector<8x128xf32>
    %226 = arith.addf %223, %225 : vector<8x128xf32>
    %227 = math.tanh %226 : vector<8x128xf32>
    %cst_48 = arith.constant 1.000000e+00 : f32
    %228 = vector.broadcast %cst_48 : f32 to vector<8x128xf32>
    %229 = arith.subf %228, %222 : vector<8x128xf32>
    %230 = arith.mulf %229, %227 : vector<8x128xf32>
    %231 = arith.mulf %222, %164 : vector<8x128xf32>
    %232 = arith.addf %230, %231 : vector<8x128xf32>
    %233 = vector.shape_cast %166 : vector<8x1xi1> to vector<8x1xi1>
    %234 = vector.broadcast %233 : vector<8x1xi1> to vector<8x128xi1>
    %235 = arith.select %234, %232, %164 : vector<8x128xi1>, vector<8x128xf32>
    %c3_i32 = arith.constant 3 : i32
    %236 = vector.broadcast %c3_i32 : i32 to vector<8x1xi32>
    %237 = arith.cmpi sgt, %8, %236 : vector<8x1xi32>
    %238 = arith.truncf %203 : vector<8x128xf32> to vector<8x128xbf16>
    %239 = arith.truncf %235 : vector<8x128xf32> to vector<8x128xbf16>
    %cst_49 = arith.constant dense<0.000000e+00> : vector<8x384xf32>
    %240 = tpu.matmul %238, %9, %cst_49 {dimension_numbers = #tpu.dot_dimension_numbers<[1], [0], [0], [1], [0, 0, 1, 1], [], []>} : vector<8x128xbf16>, vector<128x384xbf16>, vector<8x384xf32> -> vector<8x384xf32>
    %241 = arith.addf %240, %14 : vector<8x384xf32>
    %cst_50 = arith.constant dense<0.000000e+00> : vector<8x384xf32>
    %242 = tpu.matmul %239, %11, %cst_50 {dimension_numbers = #tpu.dot_dimension_numbers<[1], [0], [0], [1], [0, 0, 1, 1], [], []>} : vector<8x128xbf16>, vector<128x384xbf16>, vector<8x384xf32> -> vector<8x384xf32>
    %243 = arith.addf %242, %20 : vector<8x384xf32>
    %244 = vector.extract_strided_slice %7 {offsets = [3, 0, 0], sizes = [1, 8, 384], strides = [1, 1, 1]} : vector<8x8x384xf32> to vector<1x8x384xf32>
    %245 = vector.shape_cast %244 : vector<1x8x384xf32> to vector<8x384xf32>
    %246 = vector.extract_strided_slice %245 {offsets = [0, 0], sizes = [8, 128], strides = [1, 1]} : vector<8x384xf32> to vector<8x128xf32>
    %247 = vector.extract_strided_slice %241 {offsets = [0, 0], sizes = [8, 128], strides = [1, 1]} : vector<8x384xf32> to vector<8x128xf32>
    %248 = arith.addf %246, %247 : vector<8x128xf32>
    %249 = arith.negf %248 : vector<8x128xf32>
    %250 = math.exp %249 : vector<8x128xf32>
    %cst_51 = arith.constant 1.000000e+00 : f32
    %251 = vector.broadcast %cst_51 : f32 to vector<8x128xf32>
    %252 = arith.addf %251, %250 : vector<8x128xf32>
    %253 = arith.divf %251, %252 : vector<8x128xf32>
    %254 = vector.extract_strided_slice %245 {offsets = [0, 128], sizes = [8, 128], strides = [1, 1]} : vector<8x384xf32> to vector<8x128xf32>
    %255 = vector.extract_strided_slice %241 {offsets = [0, 128], sizes = [8, 128], strides = [1, 1]} : vector<8x384xf32> to vector<8x128xf32>
    %256 = arith.addf %254, %255 : vector<8x128xf32>
    %257 = arith.negf %256 : vector<8x128xf32>
    %258 = math.exp %257 : vector<8x128xf32>
    %cst_52 = arith.constant 1.000000e+00 : f32
    %259 = vector.broadcast %cst_52 : f32 to vector<8x128xf32>
    %260 = arith.addf %259, %258 : vector<8x128xf32>
    %261 = arith.divf %259, %260 : vector<8x128xf32>
    %262 = vector.extract_strided_slice %245 {offsets = [0, 256], sizes = [8, 128], strides = [1, 1]} : vector<8x384xf32> to vector<8x128xf32>
    %263 = vector.extract_strided_slice %241 {offsets = [0, 256], sizes = [8, 128], strides = [1, 1]} : vector<8x384xf32> to vector<8x128xf32>
    %264 = arith.mulf %253, %263 : vector<8x128xf32>
    %265 = arith.addf %262, %264 : vector<8x128xf32>
    %266 = math.tanh %265 : vector<8x128xf32>
    %cst_53 = arith.constant 1.000000e+00 : f32
    %267 = vector.broadcast %cst_53 : f32 to vector<8x128xf32>
    %268 = arith.subf %267, %261 : vector<8x128xf32>
    %269 = arith.mulf %268, %266 : vector<8x128xf32>
    %270 = arith.mulf %261, %203 : vector<8x128xf32>
    %271 = arith.addf %269, %270 : vector<8x128xf32>
    %272 = vector.shape_cast %237 : vector<8x1xi1> to vector<8x1xi1>
    %273 = vector.broadcast %272 : vector<8x1xi1> to vector<8x128xi1>
    %274 = arith.select %273, %271, %203 : vector<8x128xi1>, vector<8x128xf32>
    %275 = arith.truncf %274 : vector<8x128xf32> to vector<8x128xbf16>
    %cst_54 = arith.constant dense<0.000000e+00> : vector<8x384xf32>
    %276 = tpu.matmul %275, %10, %cst_54 {dimension_numbers = #tpu.dot_dimension_numbers<[1], [0], [0], [1], [0, 0, 1, 1], [], []>} : vector<8x128xbf16>, vector<128x384xbf16>, vector<8x384xf32> -> vector<8x384xf32>
    %277 = arith.addf %276, %17 : vector<8x384xf32>
    %278 = vector.extract_strided_slice %277 {offsets = [0, 0], sizes = [8, 128], strides = [1, 1]} : vector<8x384xf32> to vector<8x128xf32>
    %279 = vector.extract_strided_slice %243 {offsets = [0, 0], sizes = [8, 128], strides = [1, 1]} : vector<8x384xf32> to vector<8x128xf32>
    %280 = arith.addf %278, %279 : vector<8x128xf32>
    %281 = arith.negf %280 : vector<8x128xf32>
    %282 = math.exp %281 : vector<8x128xf32>
    %cst_55 = arith.constant 1.000000e+00 : f32
    %283 = vector.broadcast %cst_55 : f32 to vector<8x128xf32>
    %284 = arith.addf %283, %282 : vector<8x128xf32>
    %285 = arith.divf %283, %284 : vector<8x128xf32>
    %286 = vector.extract_strided_slice %277 {offsets = [0, 128], sizes = [8, 128], strides = [1, 1]} : vector<8x384xf32> to vector<8x128xf32>
    %287 = vector.extract_strided_slice %243 {offsets = [0, 128], sizes = [8, 128], strides = [1, 1]} : vector<8x384xf32> to vector<8x128xf32>
    %288 = arith.addf %286, %287 : vector<8x128xf32>
    %289 = arith.negf %288 : vector<8x128xf32>
    %290 = math.exp %289 : vector<8x128xf32>
    %cst_56 = arith.constant 1.000000e+00 : f32
    %291 = vector.broadcast %cst_56 : f32 to vector<8x128xf32>
    %292 = arith.addf %291, %290 : vector<8x128xf32>
    %293 = arith.divf %291, %292 : vector<8x128xf32>
    %294 = vector.extract_strided_slice %277 {offsets = [0, 256], sizes = [8, 128], strides = [1, 1]} : vector<8x384xf32> to vector<8x128xf32>
    %295 = vector.extract_strided_slice %243 {offsets = [0, 256], sizes = [8, 128], strides = [1, 1]} : vector<8x384xf32> to vector<8x128xf32>
    %296 = arith.mulf %285, %295 : vector<8x128xf32>
    %297 = arith.addf %294, %296 : vector<8x128xf32>
    %298 = math.tanh %297 : vector<8x128xf32>
    %cst_57 = arith.constant 1.000000e+00 : f32
    %299 = vector.broadcast %cst_57 : f32 to vector<8x128xf32>
    %300 = arith.subf %299, %293 : vector<8x128xf32>
    %301 = arith.mulf %300, %298 : vector<8x128xf32>
    %302 = arith.mulf %293, %235 : vector<8x128xf32>
    %303 = arith.addf %301, %302 : vector<8x128xf32>
    %304 = vector.shape_cast %237 : vector<8x1xi1> to vector<8x1xi1>
    %305 = vector.broadcast %304 : vector<8x1xi1> to vector<8x128xi1>
    %306 = arith.select %305, %303, %235 : vector<8x128xi1>, vector<8x128xf32>
    %c4_i32 = arith.constant 4 : i32
    %307 = vector.broadcast %c4_i32 : i32 to vector<8x1xi32>
    %308 = arith.cmpi sgt, %8, %307 : vector<8x1xi32>
    %309 = arith.truncf %274 : vector<8x128xf32> to vector<8x128xbf16>
    %310 = arith.truncf %306 : vector<8x128xf32> to vector<8x128xbf16>
    %cst_58 = arith.constant dense<0.000000e+00> : vector<8x384xf32>
    %311 = tpu.matmul %309, %9, %cst_58 {dimension_numbers = #tpu.dot_dimension_numbers<[1], [0], [0], [1], [0, 0, 1, 1], [], []>} : vector<8x128xbf16>, vector<128x384xbf16>, vector<8x384xf32> -> vector<8x384xf32>
    %312 = arith.addf %311, %14 : vector<8x384xf32>
    %cst_59 = arith.constant dense<0.000000e+00> : vector<8x384xf32>
    %313 = tpu.matmul %310, %11, %cst_59 {dimension_numbers = #tpu.dot_dimension_numbers<[1], [0], [0], [1], [0, 0, 1, 1], [], []>} : vector<8x128xbf16>, vector<128x384xbf16>, vector<8x384xf32> -> vector<8x384xf32>
    %314 = arith.addf %313, %20 : vector<8x384xf32>
    %315 = vector.extract_strided_slice %7 {offsets = [4, 0, 0], sizes = [1, 8, 384], strides = [1, 1, 1]} : vector<8x8x384xf32> to vector<1x8x384xf32>
    %316 = vector.shape_cast %315 : vector<1x8x384xf32> to vector<8x384xf32>
    %317 = vector.extract_strided_slice %316 {offsets = [0, 0], sizes = [8, 128], strides = [1, 1]} : vector<8x384xf32> to vector<8x128xf32>
    %318 = vector.extract_strided_slice %312 {offsets = [0, 0], sizes = [8, 128], strides = [1, 1]} : vector<8x384xf32> to vector<8x128xf32>
    %319 = arith.addf %317, %318 : vector<8x128xf32>
    %320 = arith.negf %319 : vector<8x128xf32>
    %321 = math.exp %320 : vector<8x128xf32>
    %cst_60 = arith.constant 1.000000e+00 : f32
    %322 = vector.broadcast %cst_60 : f32 to vector<8x128xf32>
    %323 = arith.addf %322, %321 : vector<8x128xf32>
    %324 = arith.divf %322, %323 : vector<8x128xf32>
    %325 = vector.extract_strided_slice %316 {offsets = [0, 128], sizes = [8, 128], strides = [1, 1]} : vector<8x384xf32> to vector<8x128xf32>
    %326 = vector.extract_strided_slice %312 {offsets = [0, 128], sizes = [8, 128], strides = [1, 1]} : vector<8x384xf32> to vector<8x128xf32>
    %327 = arith.addf %325, %326 : vector<8x128xf32>
    %328 = arith.negf %327 : vector<8x128xf32>
    %329 = math.exp %328 : vector<8x128xf32>
    %cst_61 = arith.constant 1.000000e+00 : f32
    %330 = vector.broadcast %cst_61 : f32 to vector<8x128xf32>
    %331 = arith.addf %330, %329 : vector<8x128xf32>
    %332 = arith.divf %330, %331 : vector<8x128xf32>
    %333 = vector.extract_strided_slice %316 {offsets = [0, 256], sizes = [8, 128], strides = [1, 1]} : vector<8x384xf32> to vector<8x128xf32>
    %334 = vector.extract_strided_slice %312 {offsets = [0, 256], sizes = [8, 128], strides = [1, 1]} : vector<8x384xf32> to vector<8x128xf32>
    %335 = arith.mulf %324, %334 : vector<8x128xf32>
    %336 = arith.addf %333, %335 : vector<8x128xf32>
    %337 = math.tanh %336 : vector<8x128xf32>
    %cst_62 = arith.constant 1.000000e+00 : f32
    %338 = vector.broadcast %cst_62 : f32 to vector<8x128xf32>
    %339 = arith.subf %338, %332 : vector<8x128xf32>
    %340 = arith.mulf %339, %337 : vector<8x128xf32>
    %341 = arith.mulf %332, %274 : vector<8x128xf32>
    %342 = arith.addf %340, %341 : vector<8x128xf32>
    %343 = vector.shape_cast %308 : vector<8x1xi1> to vector<8x1xi1>
    %344 = vector.broadcast %343 : vector<8x1xi1> to vector<8x128xi1>
    %345 = arith.select %344, %342, %274 : vector<8x128xi1>, vector<8x128xf32>
    %346 = arith.truncf %345 : vector<8x128xf32> to vector<8x128xbf16>
    %cst_63 = arith.constant dense<0.000000e+00> : vector<8x384xf32>
    %347 = tpu.matmul %346, %10, %cst_63 {dimension_numbers = #tpu.dot_dimension_numbers<[1], [0], [0], [1], [0, 0, 1, 1], [], []>} : vector<8x128xbf16>, vector<128x384xbf16>, vector<8x384xf32> -> vector<8x384xf32>
    %348 = arith.addf %347, %17 : vector<8x384xf32>
    %349 = vector.extract_strided_slice %348 {offsets = [0, 0], sizes = [8, 128], strides = [1, 1]} : vector<8x384xf32> to vector<8x128xf32>
    %350 = vector.extract_strided_slice %314 {offsets = [0, 0], sizes = [8, 128], strides = [1, 1]} : vector<8x384xf32> to vector<8x128xf32>
    %351 = arith.addf %349, %350 : vector<8x128xf32>
    %352 = arith.negf %351 : vector<8x128xf32>
    %353 = math.exp %352 : vector<8x128xf32>
    %cst_64 = arith.constant 1.000000e+00 : f32
    %354 = vector.broadcast %cst_64 : f32 to vector<8x128xf32>
    %355 = arith.addf %354, %353 : vector<8x128xf32>
    %356 = arith.divf %354, %355 : vector<8x128xf32>
    %357 = vector.extract_strided_slice %348 {offsets = [0, 128], sizes = [8, 128], strides = [1, 1]} : vector<8x384xf32> to vector<8x128xf32>
    %358 = vector.extract_strided_slice %314 {offsets = [0, 128], sizes = [8, 128], strides = [1, 1]} : vector<8x384xf32> to vector<8x128xf32>
    %359 = arith.addf %357, %358 : vector<8x128xf32>
    %360 = arith.negf %359 : vector<8x128xf32>
    %361 = math.exp %360 : vector<8x128xf32>
    %cst_65 = arith.constant 1.000000e+00 : f32
    %362 = vector.broadcast %cst_65 : f32 to vector<8x128xf32>
    %363 = arith.addf %362, %361 : vector<8x128xf32>
    %364 = arith.divf %362, %363 : vector<8x128xf32>
    %365 = vector.extract_strided_slice %348 {offsets = [0, 256], sizes = [8, 128], strides = [1, 1]} : vector<8x384xf32> to vector<8x128xf32>
    %366 = vector.extract_strided_slice %314 {offsets = [0, 256], sizes = [8, 128], strides = [1, 1]} : vector<8x384xf32> to vector<8x128xf32>
    %367 = arith.mulf %356, %366 : vector<8x128xf32>
    %368 = arith.addf %365, %367 : vector<8x128xf32>
    %369 = math.tanh %368 : vector<8x128xf32>
    %cst_66 = arith.constant 1.000000e+00 : f32
    %370 = vector.broadcast %cst_66 : f32 to vector<8x128xf32>
    %371 = arith.subf %370, %364 : vector<8x128xf32>
    %372 = arith.mulf %371, %369 : vector<8x128xf32>
    %373 = arith.mulf %364, %306 : vector<8x128xf32>
    %374 = arith.addf %372, %373 : vector<8x128xf32>
    %375 = vector.shape_cast %308 : vector<8x1xi1> to vector<8x1xi1>
    %376 = vector.broadcast %375 : vector<8x1xi1> to vector<8x128xi1>
    %377 = arith.select %376, %374, %306 : vector<8x128xi1>, vector<8x128xf32>
    %c5_i32 = arith.constant 5 : i32
    %378 = vector.broadcast %c5_i32 : i32 to vector<8x1xi32>
    %379 = arith.cmpi sgt, %8, %378 : vector<8x1xi32>
    %380 = arith.truncf %345 : vector<8x128xf32> to vector<8x128xbf16>
    %381 = arith.truncf %377 : vector<8x128xf32> to vector<8x128xbf16>
    %cst_67 = arith.constant dense<0.000000e+00> : vector<8x384xf32>
    %382 = tpu.matmul %380, %9, %cst_67 {dimension_numbers = #tpu.dot_dimension_numbers<[1], [0], [0], [1], [0, 0, 1, 1], [], []>} : vector<8x128xbf16>, vector<128x384xbf16>, vector<8x384xf32> -> vector<8x384xf32>
    %383 = arith.addf %382, %14 : vector<8x384xf32>
    %cst_68 = arith.constant dense<0.000000e+00> : vector<8x384xf32>
    %384 = tpu.matmul %381, %11, %cst_68 {dimension_numbers = #tpu.dot_dimension_numbers<[1], [0], [0], [1], [0, 0, 1, 1], [], []>} : vector<8x128xbf16>, vector<128x384xbf16>, vector<8x384xf32> -> vector<8x384xf32>
    %385 = arith.addf %384, %20 : vector<8x384xf32>
    %386 = vector.extract_strided_slice %7 {offsets = [5, 0, 0], sizes = [1, 8, 384], strides = [1, 1, 1]} : vector<8x8x384xf32> to vector<1x8x384xf32>
    %387 = vector.shape_cast %386 : vector<1x8x384xf32> to vector<8x384xf32>
    %388 = vector.extract_strided_slice %387 {offsets = [0, 0], sizes = [8, 128], strides = [1, 1]} : vector<8x384xf32> to vector<8x128xf32>
    %389 = vector.extract_strided_slice %383 {offsets = [0, 0], sizes = [8, 128], strides = [1, 1]} : vector<8x384xf32> to vector<8x128xf32>
    %390 = arith.addf %388, %389 : vector<8x128xf32>
    %391 = arith.negf %390 : vector<8x128xf32>
    %392 = math.exp %391 : vector<8x128xf32>
    %cst_69 = arith.constant 1.000000e+00 : f32
    %393 = vector.broadcast %cst_69 : f32 to vector<8x128xf32>
    %394 = arith.addf %393, %392 : vector<8x128xf32>
    %395 = arith.divf %393, %394 : vector<8x128xf32>
    %396 = vector.extract_strided_slice %387 {offsets = [0, 128], sizes = [8, 128], strides = [1, 1]} : vector<8x384xf32> to vector<8x128xf32>
    %397 = vector.extract_strided_slice %383 {offsets = [0, 128], sizes = [8, 128], strides = [1, 1]} : vector<8x384xf32> to vector<8x128xf32>
    %398 = arith.addf %396, %397 : vector<8x128xf32>
    %399 = arith.negf %398 : vector<8x128xf32>
    %400 = math.exp %399 : vector<8x128xf32>
    %cst_70 = arith.constant 1.000000e+00 : f32
    %401 = vector.broadcast %cst_70 : f32 to vector<8x128xf32>
    %402 = arith.addf %401, %400 : vector<8x128xf32>
    %403 = arith.divf %401, %402 : vector<8x128xf32>
    %404 = vector.extract_strided_slice %387 {offsets = [0, 256], sizes = [8, 128], strides = [1, 1]} : vector<8x384xf32> to vector<8x128xf32>
    %405 = vector.extract_strided_slice %383 {offsets = [0, 256], sizes = [8, 128], strides = [1, 1]} : vector<8x384xf32> to vector<8x128xf32>
    %406 = arith.mulf %395, %405 : vector<8x128xf32>
    %407 = arith.addf %404, %406 : vector<8x128xf32>
    %408 = math.tanh %407 : vector<8x128xf32>
    %cst_71 = arith.constant 1.000000e+00 : f32
    %409 = vector.broadcast %cst_71 : f32 to vector<8x128xf32>
    %410 = arith.subf %409, %403 : vector<8x128xf32>
    %411 = arith.mulf %410, %408 : vector<8x128xf32>
    %412 = arith.mulf %403, %345 : vector<8x128xf32>
    %413 = arith.addf %411, %412 : vector<8x128xf32>
    %414 = vector.shape_cast %379 : vector<8x1xi1> to vector<8x1xi1>
    %415 = vector.broadcast %414 : vector<8x1xi1> to vector<8x128xi1>
    %416 = arith.select %415, %413, %345 : vector<8x128xi1>, vector<8x128xf32>
    %417 = arith.truncf %416 : vector<8x128xf32> to vector<8x128xbf16>
    %cst_72 = arith.constant dense<0.000000e+00> : vector<8x384xf32>
    %418 = tpu.matmul %417, %10, %cst_72 {dimension_numbers = #tpu.dot_dimension_numbers<[1], [0], [0], [1], [0, 0, 1, 1], [], []>} : vector<8x128xbf16>, vector<128x384xbf16>, vector<8x384xf32> -> vector<8x384xf32>
    %419 = arith.addf %418, %17 : vector<8x384xf32>
    %420 = vector.extract_strided_slice %419 {offsets = [0, 0], sizes = [8, 128], strides = [1, 1]} : vector<8x384xf32> to vector<8x128xf32>
    %421 = vector.extract_strided_slice %385 {offsets = [0, 0], sizes = [8, 128], strides = [1, 1]} : vector<8x384xf32> to vector<8x128xf32>
    %422 = arith.addf %420, %421 : vector<8x128xf32>
    %423 = arith.negf %422 : vector<8x128xf32>
    %424 = math.exp %423 : vector<8x128xf32>
    %cst_73 = arith.constant 1.000000e+00 : f32
    %425 = vector.broadcast %cst_73 : f32 to vector<8x128xf32>
    %426 = arith.addf %425, %424 : vector<8x128xf32>
    %427 = arith.divf %425, %426 : vector<8x128xf32>
    %428 = vector.extract_strided_slice %419 {offsets = [0, 128], sizes = [8, 128], strides = [1, 1]} : vector<8x384xf32> to vector<8x128xf32>
    %429 = vector.extract_strided_slice %385 {offsets = [0, 128], sizes = [8, 128], strides = [1, 1]} : vector<8x384xf32> to vector<8x128xf32>
    %430 = arith.addf %428, %429 : vector<8x128xf32>
    %431 = arith.negf %430 : vector<8x128xf32>
    %432 = math.exp %431 : vector<8x128xf32>
    %cst_74 = arith.constant 1.000000e+00 : f32
    %433 = vector.broadcast %cst_74 : f32 to vector<8x128xf32>
    %434 = arith.addf %433, %432 : vector<8x128xf32>
    %435 = arith.divf %433, %434 : vector<8x128xf32>
    %436 = vector.extract_strided_slice %419 {offsets = [0, 256], sizes = [8, 128], strides = [1, 1]} : vector<8x384xf32> to vector<8x128xf32>
    %437 = vector.extract_strided_slice %385 {offsets = [0, 256], sizes = [8, 128], strides = [1, 1]} : vector<8x384xf32> to vector<8x128xf32>
    %438 = arith.mulf %427, %437 : vector<8x128xf32>
    %439 = arith.addf %436, %438 : vector<8x128xf32>
    %440 = math.tanh %439 : vector<8x128xf32>
    %cst_75 = arith.constant 1.000000e+00 : f32
    %441 = vector.broadcast %cst_75 : f32 to vector<8x128xf32>
    %442 = arith.subf %441, %435 : vector<8x128xf32>
    %443 = arith.mulf %442, %440 : vector<8x128xf32>
    %444 = arith.mulf %435, %377 : vector<8x128xf32>
    %445 = arith.addf %443, %444 : vector<8x128xf32>
    %446 = vector.shape_cast %379 : vector<8x1xi1> to vector<8x1xi1>
    %447 = vector.broadcast %446 : vector<8x1xi1> to vector<8x128xi1>
    %448 = arith.select %447, %445, %377 : vector<8x128xi1>, vector<8x128xf32>
    %c6_i32 = arith.constant 6 : i32
    %449 = vector.broadcast %c6_i32 : i32 to vector<8x1xi32>
    %450 = arith.cmpi sgt, %8, %449 : vector<8x1xi32>
    %451 = arith.truncf %416 : vector<8x128xf32> to vector<8x128xbf16>
    %452 = arith.truncf %448 : vector<8x128xf32> to vector<8x128xbf16>
    %cst_76 = arith.constant dense<0.000000e+00> : vector<8x384xf32>
    %453 = tpu.matmul %451, %9, %cst_76 {dimension_numbers = #tpu.dot_dimension_numbers<[1], [0], [0], [1], [0, 0, 1, 1], [], []>} : vector<8x128xbf16>, vector<128x384xbf16>, vector<8x384xf32> -> vector<8x384xf32>
    %454 = arith.addf %453, %14 : vector<8x384xf32>
    %cst_77 = arith.constant dense<0.000000e+00> : vector<8x384xf32>
    %455 = tpu.matmul %452, %11, %cst_77 {dimension_numbers = #tpu.dot_dimension_numbers<[1], [0], [0], [1], [0, 0, 1, 1], [], []>} : vector<8x128xbf16>, vector<128x384xbf16>, vector<8x384xf32> -> vector<8x384xf32>
    %456 = arith.addf %455, %20 : vector<8x384xf32>
    %457 = vector.extract_strided_slice %7 {offsets = [6, 0, 0], sizes = [1, 8, 384], strides = [1, 1, 1]} : vector<8x8x384xf32> to vector<1x8x384xf32>
    %458 = vector.shape_cast %457 : vector<1x8x384xf32> to vector<8x384xf32>
    %459 = vector.extract_strided_slice %458 {offsets = [0, 0], sizes = [8, 128], strides = [1, 1]} : vector<8x384xf32> to vector<8x128xf32>
    %460 = vector.extract_strided_slice %454 {offsets = [0, 0], sizes = [8, 128], strides = [1, 1]} : vector<8x384xf32> to vector<8x128xf32>
    %461 = arith.addf %459, %460 : vector<8x128xf32>
    %462 = arith.negf %461 : vector<8x128xf32>
    %463 = math.exp %462 : vector<8x128xf32>
    %cst_78 = arith.constant 1.000000e+00 : f32
    %464 = vector.broadcast %cst_78 : f32 to vector<8x128xf32>
    %465 = arith.addf %464, %463 : vector<8x128xf32>
    %466 = arith.divf %464, %465 : vector<8x128xf32>
    %467 = vector.extract_strided_slice %458 {offsets = [0, 128], sizes = [8, 128], strides = [1, 1]} : vector<8x384xf32> to vector<8x128xf32>
    %468 = vector.extract_strided_slice %454 {offsets = [0, 128], sizes = [8, 128], strides = [1, 1]} : vector<8x384xf32> to vector<8x128xf32>
    %469 = arith.addf %467, %468 : vector<8x128xf32>
    %470 = arith.negf %469 : vector<8x128xf32>
    %471 = math.exp %470 : vector<8x128xf32>
    %cst_79 = arith.constant 1.000000e+00 : f32
    %472 = vector.broadcast %cst_79 : f32 to vector<8x128xf32>
    %473 = arith.addf %472, %471 : vector<8x128xf32>
    %474 = arith.divf %472, %473 : vector<8x128xf32>
    %475 = vector.extract_strided_slice %458 {offsets = [0, 256], sizes = [8, 128], strides = [1, 1]} : vector<8x384xf32> to vector<8x128xf32>
    %476 = vector.extract_strided_slice %454 {offsets = [0, 256], sizes = [8, 128], strides = [1, 1]} : vector<8x384xf32> to vector<8x128xf32>
    %477 = arith.mulf %466, %476 : vector<8x128xf32>
    %478 = arith.addf %475, %477 : vector<8x128xf32>
    %479 = math.tanh %478 : vector<8x128xf32>
    %cst_80 = arith.constant 1.000000e+00 : f32
    %480 = vector.broadcast %cst_80 : f32 to vector<8x128xf32>
    %481 = arith.subf %480, %474 : vector<8x128xf32>
    %482 = arith.mulf %481, %479 : vector<8x128xf32>
    %483 = arith.mulf %474, %416 : vector<8x128xf32>
    %484 = arith.addf %482, %483 : vector<8x128xf32>
    %485 = vector.shape_cast %450 : vector<8x1xi1> to vector<8x1xi1>
    %486 = vector.broadcast %485 : vector<8x1xi1> to vector<8x128xi1>
    %487 = arith.select %486, %484, %416 : vector<8x128xi1>, vector<8x128xf32>
    %488 = arith.truncf %487 : vector<8x128xf32> to vector<8x128xbf16>
    %cst_81 = arith.constant dense<0.000000e+00> : vector<8x384xf32>
    %489 = tpu.matmul %488, %10, %cst_81 {dimension_numbers = #tpu.dot_dimension_numbers<[1], [0], [0], [1], [0, 0, 1, 1], [], []>} : vector<8x128xbf16>, vector<128x384xbf16>, vector<8x384xf32> -> vector<8x384xf32>
    %490 = arith.addf %489, %17 : vector<8x384xf32>
    %491 = vector.extract_strided_slice %490 {offsets = [0, 0], sizes = [8, 128], strides = [1, 1]} : vector<8x384xf32> to vector<8x128xf32>
    %492 = vector.extract_strided_slice %456 {offsets = [0, 0], sizes = [8, 128], strides = [1, 1]} : vector<8x384xf32> to vector<8x128xf32>
    %493 = arith.addf %491, %492 : vector<8x128xf32>
    %494 = arith.negf %493 : vector<8x128xf32>
    %495 = math.exp %494 : vector<8x128xf32>
    %cst_82 = arith.constant 1.000000e+00 : f32
    %496 = vector.broadcast %cst_82 : f32 to vector<8x128xf32>
    %497 = arith.addf %496, %495 : vector<8x128xf32>
    %498 = arith.divf %496, %497 : vector<8x128xf32>
    %499 = vector.extract_strided_slice %490 {offsets = [0, 128], sizes = [8, 128], strides = [1, 1]} : vector<8x384xf32> to vector<8x128xf32>
    %500 = vector.extract_strided_slice %456 {offsets = [0, 128], sizes = [8, 128], strides = [1, 1]} : vector<8x384xf32> to vector<8x128xf32>
    %501 = arith.addf %499, %500 : vector<8x128xf32>
    %502 = arith.negf %501 : vector<8x128xf32>
    %503 = math.exp %502 : vector<8x128xf32>
    %cst_83 = arith.constant 1.000000e+00 : f32
    %504 = vector.broadcast %cst_83 : f32 to vector<8x128xf32>
    %505 = arith.addf %504, %503 : vector<8x128xf32>
    %506 = arith.divf %504, %505 : vector<8x128xf32>
    %507 = vector.extract_strided_slice %490 {offsets = [0, 256], sizes = [8, 128], strides = [1, 1]} : vector<8x384xf32> to vector<8x128xf32>
    %508 = vector.extract_strided_slice %456 {offsets = [0, 256], sizes = [8, 128], strides = [1, 1]} : vector<8x384xf32> to vector<8x128xf32>
    %509 = arith.mulf %498, %508 : vector<8x128xf32>
    %510 = arith.addf %507, %509 : vector<8x128xf32>
    %511 = math.tanh %510 : vector<8x128xf32>
    %cst_84 = arith.constant 1.000000e+00 : f32
    %512 = vector.broadcast %cst_84 : f32 to vector<8x128xf32>
    %513 = arith.subf %512, %506 : vector<8x128xf32>
    %514 = arith.mulf %513, %511 : vector<8x128xf32>
    %515 = arith.mulf %506, %448 : vector<8x128xf32>
    %516 = arith.addf %514, %515 : vector<8x128xf32>
    %517 = vector.shape_cast %450 : vector<8x1xi1> to vector<8x1xi1>
    %518 = vector.broadcast %517 : vector<8x1xi1> to vector<8x128xi1>
    %519 = arith.select %518, %516, %448 : vector<8x128xi1>, vector<8x128xf32>
    %c7_i32 = arith.constant 7 : i32
    %520 = vector.broadcast %c7_i32 : i32 to vector<8x1xi32>
    %521 = arith.cmpi sgt, %8, %520 : vector<8x1xi32>
    %522 = arith.truncf %487 : vector<8x128xf32> to vector<8x128xbf16>
    %523 = arith.truncf %519 : vector<8x128xf32> to vector<8x128xbf16>
    %cst_85 = arith.constant dense<0.000000e+00> : vector<8x384xf32>
    %524 = tpu.matmul %522, %9, %cst_85 {dimension_numbers = #tpu.dot_dimension_numbers<[1], [0], [0], [1], [0, 0, 1, 1], [], []>} : vector<8x128xbf16>, vector<128x384xbf16>, vector<8x384xf32> -> vector<8x384xf32>
    %525 = arith.addf %524, %14 : vector<8x384xf32>
    %cst_86 = arith.constant dense<0.000000e+00> : vector<8x384xf32>
    %526 = tpu.matmul %523, %11, %cst_86 {dimension_numbers = #tpu.dot_dimension_numbers<[1], [0], [0], [1], [0, 0, 1, 1], [], []>} : vector<8x128xbf16>, vector<128x384xbf16>, vector<8x384xf32> -> vector<8x384xf32>
    %527 = arith.addf %526, %20 : vector<8x384xf32>
    %528 = vector.extract_strided_slice %7 {offsets = [7, 0, 0], sizes = [1, 8, 384], strides = [1, 1, 1]} : vector<8x8x384xf32> to vector<1x8x384xf32>
    %529 = vector.shape_cast %528 : vector<1x8x384xf32> to vector<8x384xf32>
    %530 = vector.extract_strided_slice %529 {offsets = [0, 0], sizes = [8, 128], strides = [1, 1]} : vector<8x384xf32> to vector<8x128xf32>
    %531 = vector.extract_strided_slice %525 {offsets = [0, 0], sizes = [8, 128], strides = [1, 1]} : vector<8x384xf32> to vector<8x128xf32>
    %532 = arith.addf %530, %531 : vector<8x128xf32>
    %533 = arith.negf %532 : vector<8x128xf32>
    %534 = math.exp %533 : vector<8x128xf32>
    %cst_87 = arith.constant 1.000000e+00 : f32
    %535 = vector.broadcast %cst_87 : f32 to vector<8x128xf32>
    %536 = arith.addf %535, %534 : vector<8x128xf32>
    %537 = arith.divf %535, %536 : vector<8x128xf32>
    %538 = vector.extract_strided_slice %529 {offsets = [0, 128], sizes = [8, 128], strides = [1, 1]} : vector<8x384xf32> to vector<8x128xf32>
    %539 = vector.extract_strided_slice %525 {offsets = [0, 128], sizes = [8, 128], strides = [1, 1]} : vector<8x384xf32> to vector<8x128xf32>
    %540 = arith.addf %538, %539 : vector<8x128xf32>
    %541 = arith.negf %540 : vector<8x128xf32>
    %542 = math.exp %541 : vector<8x128xf32>
    %cst_88 = arith.constant 1.000000e+00 : f32
    %543 = vector.broadcast %cst_88 : f32 to vector<8x128xf32>
    %544 = arith.addf %543, %542 : vector<8x128xf32>
    %545 = arith.divf %543, %544 : vector<8x128xf32>
    %546 = vector.extract_strided_slice %529 {offsets = [0, 256], sizes = [8, 128], strides = [1, 1]} : vector<8x384xf32> to vector<8x128xf32>
    %547 = vector.extract_strided_slice %525 {offsets = [0, 256], sizes = [8, 128], strides = [1, 1]} : vector<8x384xf32> to vector<8x128xf32>
    %548 = arith.mulf %537, %547 : vector<8x128xf32>
    %549 = arith.addf %546, %548 : vector<8x128xf32>
    %550 = math.tanh %549 : vector<8x128xf32>
    %cst_89 = arith.constant 1.000000e+00 : f32
    %551 = vector.broadcast %cst_89 : f32 to vector<8x128xf32>
    %552 = arith.subf %551, %545 : vector<8x128xf32>
    %553 = arith.mulf %552, %550 : vector<8x128xf32>
    %554 = arith.mulf %545, %487 : vector<8x128xf32>
    %555 = arith.addf %553, %554 : vector<8x128xf32>
    %556 = vector.shape_cast %521 : vector<8x1xi1> to vector<8x1xi1>
    %557 = vector.broadcast %556 : vector<8x1xi1> to vector<8x128xi1>
    %558 = arith.select %557, %555, %487 : vector<8x128xi1>, vector<8x128xf32>
    %559 = arith.truncf %558 : vector<8x128xf32> to vector<8x128xbf16>
    %cst_90 = arith.constant dense<0.000000e+00> : vector<8x384xf32>
    %560 = tpu.matmul %559, %10, %cst_90 {dimension_numbers = #tpu.dot_dimension_numbers<[1], [0], [0], [1], [0, 0, 1, 1], [], []>} : vector<8x128xbf16>, vector<128x384xbf16>, vector<8x384xf32> -> vector<8x384xf32>
    %561 = arith.addf %560, %17 : vector<8x384xf32>
    %562 = vector.extract_strided_slice %561 {offsets = [0, 0], sizes = [8, 128], strides = [1, 1]} : vector<8x384xf32> to vector<8x128xf32>
    %563 = vector.extract_strided_slice %527 {offsets = [0, 0], sizes = [8, 128], strides = [1, 1]} : vector<8x384xf32> to vector<8x128xf32>
    %564 = arith.addf %562, %563 : vector<8x128xf32>
    %565 = arith.negf %564 : vector<8x128xf32>
    %566 = math.exp %565 : vector<8x128xf32>
    %cst_91 = arith.constant 1.000000e+00 : f32
    %567 = vector.broadcast %cst_91 : f32 to vector<8x128xf32>
    %568 = arith.addf %567, %566 : vector<8x128xf32>
    %569 = arith.divf %567, %568 : vector<8x128xf32>
    %570 = vector.extract_strided_slice %561 {offsets = [0, 128], sizes = [8, 128], strides = [1, 1]} : vector<8x384xf32> to vector<8x128xf32>
    %571 = vector.extract_strided_slice %527 {offsets = [0, 128], sizes = [8, 128], strides = [1, 1]} : vector<8x384xf32> to vector<8x128xf32>
    %572 = arith.addf %570, %571 : vector<8x128xf32>
    %573 = arith.negf %572 : vector<8x128xf32>
    %574 = math.exp %573 : vector<8x128xf32>
    %cst_92 = arith.constant 1.000000e+00 : f32
    %575 = vector.broadcast %cst_92 : f32 to vector<8x128xf32>
    %576 = arith.addf %575, %574 : vector<8x128xf32>
    %577 = arith.divf %575, %576 : vector<8x128xf32>
    %578 = vector.extract_strided_slice %561 {offsets = [0, 256], sizes = [8, 128], strides = [1, 1]} : vector<8x384xf32> to vector<8x128xf32>
    %579 = vector.extract_strided_slice %527 {offsets = [0, 256], sizes = [8, 128], strides = [1, 1]} : vector<8x384xf32> to vector<8x128xf32>
    %580 = arith.mulf %569, %579 : vector<8x128xf32>
    %581 = arith.addf %578, %580 : vector<8x128xf32>
    %582 = math.tanh %581 : vector<8x128xf32>
    %cst_93 = arith.constant 1.000000e+00 : f32
    %583 = vector.broadcast %cst_93 : f32 to vector<8x128xf32>
    %584 = arith.subf %583, %577 : vector<8x128xf32>
    %585 = arith.mulf %584, %582 : vector<8x128xf32>
    %586 = arith.mulf %577, %519 : vector<8x128xf32>
    %587 = arith.addf %585, %586 : vector<8x128xf32>
    %588 = vector.shape_cast %521 : vector<8x1xi1> to vector<8x1xi1>
    %589 = vector.broadcast %588 : vector<8x1xi1> to vector<8x128xi1>
    %590 = arith.select %589, %587, %519 : vector<8x128xi1>, vector<8x128xf32>
    %591 = arith.truncf %558 : vector<8x128xf32> to vector<8x128xbf16>
    %c0_94 = arith.constant 0 : index
    %c0_95 = arith.constant 0 : index
    %592 = vector.load %arg11[%c0_94, %c0_95] : memref<128x128xbf16, #tpu.memory_space<vmem>>, vector<128x128xbf16>
    %cst_96 = arith.constant dense<0.000000e+00> : vector<8x128xf32>
    %593 = tpu.matmul %591, %592, %cst_96 {dimension_numbers = #tpu.dot_dimension_numbers<[1], [0], [0], [1], [0, 0, 1, 1], [], []>} : vector<8x128xbf16>, vector<128x128xbf16>, vector<8x128xf32> -> vector<8x128xf32>
    %594 = arith.truncf %590 : vector<8x128xf32> to vector<8x128xbf16>
    %c0_97 = arith.constant 0 : index
    %c0_98 = arith.constant 0 : index
    %595 = vector.load %arg12[%c0_97, %c0_98] : memref<128x128xbf16, #tpu.memory_space<vmem>>, vector<128x128xbf16>
    %cst_99 = arith.constant dense<0.000000e+00> : vector<8x128xf32>
    %596 = tpu.matmul %594, %595, %cst_99 {dimension_numbers = #tpu.dot_dimension_numbers<[1], [0], [0], [1], [0, 0, 1, 1], [], []>} : vector<8x128xbf16>, vector<128x128xbf16>, vector<8x128xf32> -> vector<8x128xf32>
    %597 = arith.addf %593, %596 : vector<8x128xf32>
    %c0_100 = arith.constant 0 : index
    %c0_101 = arith.constant 0 : index
    %598 = vector.load %arg13[%c0_100, %c0_101] : memref<1x128xf32, #tpu.memory_space<vmem>>, vector<1x128xf32>
    %599 = vector.broadcast %598 : vector<1x128xf32> to vector<8x128xf32>
    %600 = arith.addf %597, %599 : vector<8x128xf32>
    %c0_102 = arith.constant 0 : index
    %c0_103 = arith.constant 0 : index
    %601 = vector.load %arg14[%c0_102, %c0_103] : memref<8x128xf32, #tpu.memory_space<vmem>>, vector<8x128xf32>
    tpu.vector_store %arg14[%c0_102, %c0_103], %600 {strides = array<i32>} : memref<8x128xf32, #tpu.memory_space<vmem>>, vector<8x128xf32>,
    return
  }
  func.func @transform_0(%arg0: i32) -> (i32, i32, i32) {
    %c0_i32 = arith.constant 0 : i32
    %c0_i32_0 = arith.constant 0 : i32
    %c0_i32_1 = arith.constant 0 : i32
    return %c0_i32, %arg0, %c0_i32_0 : i32, i32, i32
  }
  func.func @transform_1(%arg0: i32) -> (i32, i32) {
    %c0_i32 = arith.constant 0 : i32
    %c0_i32_0 = arith.constant 0 : i32
    return %arg0, %c0_i32 : i32, i32
  }
  func.func @transform_2(%arg0: i32) -> (i32, i32) {
    %c0_i32 = arith.constant 0 : i32
    %c0_i32_0 = arith.constant 0 : i32
    %c0_i32_1 = arith.constant 0 : i32
    return %c0_i32, %c0_i32_0 : i32, i32
  }
  func.func @transform_3(%arg0: i32) -> (i32, i32) {
    %c0_i32 = arith.constant 0 : i32
    %c0_i32_0 = arith.constant 0 : i32
    %c0_i32_1 = arith.constant 0 : i32
    return %c0_i32, %c0_i32_0 : i32, i32
  }
  func.func @transform_4(%arg0: i32) -> (i32, i32) {
    %c0_i32 = arith.constant 0 : i32
    %c0_i32_0 = arith.constant 0 : i32
    %c0_i32_1 = arith.constant 0 : i32
    return %c0_i32, %c0_i32_0 : i32, i32
  }
  func.func @transform_5(%arg0: i32) -> (i32, i32) {
    %c0_i32 = arith.constant 0 : i32
    %c0_i32_0 = arith.constant 0 : i32
    %c0_i32_1 = arith.constant 0 : i32
    return %c0_i32, %c0_i32_0 : i32, i32
  }
  func.func @transform_6(%arg0: i32) -> (i32, i32) {
    %c0_i32 = arith.constant 0 : i32
    %c0_i32_0 = arith.constant 0 : i32
    %c0_i32_1 = arith.constant 0 : i32
    return %c0_i32, %c0_i32_0 : i32, i32
  }
  func.func @transform_7(%arg0: i32) -> (i32, i32) {
    %c0_i32 = arith.constant 0 : i32
    %c0_i32_0 = arith.constant 0 : i32
    %c0_i32_1 = arith.constant 0 : i32
    return %c0_i32, %c0_i32_0 : i32, i32
  }
  func.func @transform_8(%arg0: i32) -> (i32, i32) {
    %c0_i32 = arith.constant 0 : i32
    %c0_i32_0 = arith.constant 0 : i32
    %c0_i32_1 = arith.constant 0 : i32
    return %c0_i32, %c0_i32_0 : i32, i32
  }
  func.func @transform_9(%arg0: i32) -> (i32, i32) {
    %c0_i32 = arith.constant 0 : i32
    %c0_i32_0 = arith.constant 0 : i32
    %c0_i32_1 = arith.constant 0 : i32
    return %c0_i32, %c0_i32_0 : i32, i32
  }
  func.func @transform_10(%arg0: i32) -> (i32, i32) {
    %c0_i32 = arith.constant 0 : i32
    %c0_i32_0 = arith.constant 0 : i32
    %c0_i32_1 = arith.constant 0 : i32
    return %c0_i32, %c0_i32_0 : i32, i32
  }
  func.func @transform_11(%arg0: i32) -> (i32, i32) {
    %c0_i32 = arith.constant 0 : i32
    %c0_i32_0 = arith.constant 0 : i32
    %c0_i32_1 = arith.constant 0 : i32
    return %c0_i32, %c0_i32_0 : i32, i32
  }
  func.func @transform_12(%arg0: i32) -> (i32, i32) {
    %c0_i32 = arith.constant 0 : i32
    %c0_i32_0 = arith.constant 0 : i32
    %c0_i32_1 = arith.constant 0 : i32
    return %c0_i32, %c0_i32_0 : i32, i32
  }
  func.func @transform_13(%arg0: i32) -> (i32, i32) {
    %c0_i32 = arith.constant 0 : i32
    %c0_i32_0 = arith.constant 0 : i32
    return %arg0, %c0_i32 : i32, i32
  }
}

</mosaic_0001>

<bundles_post_ra>
// kernel: tpu_custom_call.1
= control target key start
LH: loop header
LB: loop body
LE: loop exit
PB: predicated region body
PF: predicated region fallthrough
CT: control target
= control target key end

     0   :  { %18 = vsyncpa [#allocation3], 0  ;;  %s5205_s0 = inlined_call_operand.hbm [shape: bf16[8,8,128], index: 0, kind: input, shape index: {}]   ;;  %s5206_s1 = inlined_call_operand.vmem [shape: s32[8,1], index: 1, kind: input, shape index: {}]   ;;  %s5207_s2 = inlined_call_operand.hbm [shape: bf16[128,384], index: 2, kind: input, shape index: {}]   ;;  %s5208_s3 = inlined_call_operand.vmem [shape: f32[1,384], index: 3, kind: input, shape index: {}]   ;;  %s5209_s4 = inlined_call_operand.hbm [shape: bf16[128,384], index: 4, kind: input, shape index: {}]   ;;  %s5210_s5 = inlined_call_operand.vmem [shape: f32[1,384], index: 5, kind: input, shape index: {}]   ;;  %s5211_s6 = inlined_call_operand.hbm [shape: bf16[128,384], index: 6, kind: input, shape index: {}]   ;;  %s5212_s7 = inlined_call_operand.vmem [shape: f32[1,384], index: 7, kind: input, shape index: {}]   ;;  %s5213_s8 = inlined_call_operand.hbm [shape: bf16[128,384], index: 8, kind: input, shape index: {}]   ;;  %s5214_s9 = inlined_call_operand.vmem [shape: f32[1,384], index: 9, kind: input, shape index: {}]   ;;  %s5215_s10 = inlined_call_operand.hbm [shape: bf16[128,128], index: 10, kind: input, shape index: {}]   ;;  %s5216_s11 = inlined_call_operand.hbm [shape: bf16[128,128], index: 11, kind: input, shape index: {}]   ;;  %s5217_s12 = inlined_call_operand.vmem [shape: f32[1,128], index: 12, kind: input, shape index: {}]   ;;  %s5218_s13 = inlined_call_operand.hbm [shape: f32[8,128], index: 13, kind: output, shape index: {}]  }
   0x1   :  { %19 = vsyncpa [#allocation6], 0 }
   0x2   :  { %20 = vsyncpa [#allocation9], 0 }
   0x3   :  { %21 = vsyncpa [#allocation12], 0  ;;  %s42_s27 = sshll.u32 %s5207_s2, 4  ;;  %s43_s27 = int_to_ptr.hbm [resolvable:$true] %s42_s27 }
   0x4   :  { %22 = vsyncpa [#allocation4], 0  ;;  %s3914_s28 = smov [#allocation5]   ;;  %s72_s15 = sshll.u32 %s5211_s6, 4  ;;  %s73_s15 = int_to_ptr.hbm [resolvable:$true] %s72_s15 }
   0x5   :  { %s44_s29 = sshll.u32 %s3914_s28, 4  ;;  %s3915_s16 = smov 192   ;;  %s45_s29 = int_to_ptr.vmem [resolvable:$true] %s44_s29 }
   0x6   :  { %s3916_s17 = smov 12   ;;  %s3917_s18 = smov [#allocation8]  }
   0x7   :  { %50 = dma.hbm_to_vmem [thread:$0]  %s43_s27, 3072, %s45_s29, [#allocation6], %s3915_s16, %s3915_s16, %s3916_s17  }
   0x8   :  { %s74_s19 = sshll.u32 %s3917_s18, 4  ;;  %s102_s21 = sshll.u32 %s5215_s10, 4  ;;  %s75_s19 = int_to_ptr.vmem [resolvable:$true] %s74_s19  ;;  %s103_s21 = int_to_ptr.hbm [resolvable:$true] %s102_s21 }
   0x9   :  { %80 = dma.hbm_to_vmem [thread:$0]  %s73_s15, 3072, %s75_s19, [#allocation9], %s3915_s16, %s3915_s16, %s3916_s17  }
   0xa   :  { %s3918_s6 = smov [#allocation11]   ;;  %s27_s25 = sshll.u32 %s5205_s0, 4  ;;  %s28_s25 = int_to_ptr.hbm [resolvable:$true] %s27_s25 }
   0xb   :  { %s104_s22 = sshll.u32 %s3918_s6, 4  ;;  %s3919_s26 = smov 64   ;;  %s105_s22 = int_to_ptr.vmem [resolvable:$true] %s104_s22 }
   0xc   :  { %s3920_s27 = smov 4   ;;  %s3921_s28 = smov [#allocation2]  }
   0xd   :  { %110 = dma.hbm_to_vmem [thread:$0]  %s103_s21, 1024, %s105_s22, [#allocation12], %s3919_s26, %s3919_s26, %s3920_s27  }
   0xe   :  { %s29_s29 = sshll.u32 %s3921_s28, 4  ;;  %s57_s15 = sshll.u32 %s5209_s4, 4  ;;  %s30_s29 = int_to_ptr.vmem [resolvable:$true] %s29_s29  ;;  %s58_s15 = int_to_ptr.hbm [resolvable:$true] %s57_s15 }
   0xf   :  { %35 = dma.hbm_to_vmem [thread:$0]  %s28_s25, 512, %s30_s29, [#allocation3], %s3919_s26, %s3919_s26, %s3920_s27  }
  0x10   :  { %s87_s19 = sshll.u32 %s5213_s8, 4  ;;  %s3922_s2 = smov [#allocation7]   ;;  %s88_s19 = int_to_ptr.hbm [resolvable:$true] %s87_s19 }
  0x11   :  { %s59_s20 = sshll.u32 %s3922_s2, 4  ;;  %s3923_s0 = smov [#allocation10]   ;;  %s60_s20 = int_to_ptr.vmem [resolvable:$true] %s59_s20 }
  0x12   :  { %65 = dma.hbm_to_vmem [thread:$0]  %s58_s15, 3072, %s60_s20, [#allocation6], %s3915_s16, %s3915_s16, %s3916_s17  }
  0x13   :  { %s89_s21 = sshll.u32 %s3923_s0, 4  ;;  %s115_s4 = sshll.u32 %s5216_s11, 4  ;;  %s90_s21 = int_to_ptr.vmem [resolvable:$true] %s89_s21  ;;  %s116_s4 = int_to_ptr.hbm [resolvable:$true] %s115_s4 }
  0x14   :  { %95 = dma.hbm_to_vmem [thread:$0]  %s88_s19, 3072, %s90_s21, [#allocation9], %s3915_s16, %s3915_s16, %s3916_s17  }
  0x15   :  { %s3924_s8 = smov [#allocation13]  }
  0x16   :  { %s117_s23 = sshll.u32 %s3924_s8, 4  ;;  %s118_s23 = int_to_ptr.vmem [resolvable:$true] %s117_s23 }
  0x17   :  { %123 = dma.hbm_to_vmem [thread:$0]  %s116_s4, 1024, %s118_s23, [#allocation12], %s3919_s26, %s3919_s26, %s3920_s27  }
  0x18   :  { %3904 = dma.done.wait [#allocation3], 512  }
  0x19   :  { %3905 = vsyncadd [#allocation3], 4294966784 }
  0x1a   :  { %3906 = dma.done.wait [#allocation6], 6144  }
  0x1b   :  { %3907 = vsyncadd [#allocation6], 4294961152 }
  0x1c   :  { %3908 = dma.done.wait [#allocation9], 6144  }
  0x1d   :  { %3909 = vsyncadd [#allocation9], 4294961152 }
  0x1e   :  { %3910 = dma.done.wait [#allocation12], 2048  }
  0x1f   :  { %3911 = vsyncadd [#allocation12], 4294965248  ;;  %v2997_v0 = vld [vmem:[#allocation5 + $0xa8] sm:$0xf]  ;;  %v3444_v1 = vld [vmem:[#allocation5 + $0xb0] sm:$0xf0] }
  0x20   :  { %v3093_v2 = vld [vmem:[#allocation7 + $0xa8] sm:$0xf]  ;;  %v2998_v3 = vor.u32 %v3444_v1, %v2997_v0  ;;  %v3468_v4 = vld [vmem:[#allocation7 + $0xb0] sm:$0xf0]  ;;  %v2985_v5 = vld [vmem:[#allocation5 + $0x90] sm:$0xf] }
  0x21   :  { %v3441_v6 = vld [vmem:[#allocation5 + $0x98] sm:$0xf0]  ;;  %v4030_v7 = vor.u32 %v3468_v4, %v3093_v2  ;;  %v3081_v8 = vld [vmem:[#allocation7 + $0x90] sm:$0xf]  ;;  %v2973_v12 = vld [vmem:[#allocation5 + $0x78] sm:$0xf] }
  0x22   :  { %v3465_v9 = vld [vmem:[#allocation7 + $0x98] sm:$0xf0]  ;;  %355 = vmatpush.bf16.msra.mxu0 %v2998_v3  ;;  %v2986_v10 = vor.u32 %v3441_v6, %v2985_v5  ;;  %v3438_v13 = vld [vmem:[#allocation5 + $0x80] sm:$0xf0]  ;;  %v3069_v14 = vld [vmem:[#allocation7 + $0x78] sm:$0xf] }
  0x23   :  { %5355 = vst [vmem:[#allocation20_spill] sm:$0xff] %v4030_v7  ;;  %692 = vmatpush.bf16.msra.mxu3 %v4030_v7  ;;  %v4033_v11 = vor.u32 %v3465_v9, %v3081_v8  ;;  %v3462_v15 = vld [vmem:[#allocation7 + $0x80] sm:$0xf0]  ;;  %v2974_v16 = vor.u32 %v3438_v13, %v2973_v12  ;;  %v2961_v18 = vld [vmem:[#allocation5 + $0x60] sm:$0xf]  ;;  %v5221_v27 = vmov 0  }
  0x24   :  { %v4036_v17 = vor.u32 %v3462_v15, %v3069_v14  ;;  %v3435_v19 = vld [vmem:[#allocation5 + $0x68] sm:$0xf0]  ;;  %v3057_v20 = vld [vmem:[#allocation7 + $0x60] sm:$0xf]  ;;  %v2949_v24 = vld [vmem:[#allocation5 + $0x48] sm:$0xf]  ;;  %3547 = vset.pattern.permute.xlu0 %v5221_v27  ;;  %3548 = vset.pattern.permute.xlu1 %v5221_v27 }
  0x25   :  { %5356 = vst [vmem:[#allocation21_spill] sm:$0xff] %v4033_v11  ;;  %v3459_v21 = vld [vmem:[#allocation7 + $0x68] sm:$0xf0]  ;;  %v2962_v22 = vor.u32 %v3435_v19, %v2961_v18  ;;  %v3432_v25 = vld [vmem:[#allocation5 + $0x50] sm:$0xf0]  ;;  %3549 = vset.pattern.permute.xlu2 %v5221_v27  ;;  %s3926_s30 = smov [#allocation14]  }
  0x26   :  { %356 = vmatpush.bf16.msra.mxu0 %v2986_v10  ;;  %5357 = vst [vmem:[#allocation22_spill] sm:$0xff] %v4036_v17  ;;  %v4039_v23 = vor.u32 %v3459_v21, %v3057_v20  ;;  %v3045_v26 = vld [vmem:[#allocation7 + $0x48] sm:$0xf]  ;;  %v3456_v28 = vld [vmem:[#allocation7 + $0x50] sm:$0xf0]  ;;  %v2950_v34 = vor.u32 %v3432_v25, %v2949_v24  ;;  %v4056_v10 = vld [vmem:[#allocation2] sm:$0xff] }
  0x27   :  { %693 = vmatpush.bf16.msra.mxu3 %v4033_v11  ;;  %v3443_v29 = vld [vmem:[#allocation5 + $0xac] sm:$0xf]  ;;  %v2999_v30 = vld [vmem:[#allocation5 + $0xb4] sm:$0xf0]  ;;  %v3440_v32 = vld [vmem:[#allocation5 + $0x94] sm:$0xf]  ;;  %v4045_v35 = vor.u32 %v3456_v28, %v3045_v26 }
  0x28   :  { %5358 = vst [vmem:[#allocation23_spill] sm:$0xff] %v4039_v23  ;;  %v3002_v31 = vor.u32 %v3443_v29, %v2999_v30  ;;  %v2987_v33 = vld [vmem:[#allocation5 + $0x9c] sm:$0xf0]  ;;  %v2937_v36 = vld [vmem:[#allocation5 + $0x30] sm:$0xf]  ;;  %s2880_s14 = sshll.u32 %s3926_s30, 4  ;;  %s2881_s14 = int_to_ptr.vmem [resolvable:$true] %s2880_s14 }
  0x29   :  { %5359 = vst [vmem:[#allocation24_spill] sm:$0xff] %v4045_v35  ;;  %v3429_v37 = vld [vmem:[#allocation5 + $0x38] sm:$0xf0]  ;;  %v3033_v38 = vld [vmem:[#allocation7 + $0x30] sm:$0xf]  ;;  %v2990_v39 = vor.u32 %v3440_v32, %v2987_v33  ;;  %s2882_s18 = sshll.u32 %s5218_s13, 4  ;;  %s2883_s18 = int_to_ptr.hbm [resolvable:$true] %s2882_s18 }
  0x2a   :  { %357 = vmatpush.bf16.msra.mxu0 %v2974_v16  ;;  %384 = vmatpush.bf16.msra.mxu1 %v3002_v31  ;;  %v3453_v40 = vld [vmem:[#allocation7 + $0x38] sm:$0xf0]  ;;  %v2975_v42 = vld [vmem:[#allocation5 + $0x84] sm:$0xf0]  ;;  %v2938_v43 = vor.u32 %v3429_v37, %v2937_v36  ;;  %v2925_v44 = vld [vmem:[#allocation5 + $0x18] sm:$0xf] }
  0x2b   :  { %694 = vmatpush.bf16.msra.mxu3 %v4036_v17  ;;  %v3437_v41 = vld [vmem:[#allocation5 + $0x7c] sm:$0xf]  ;;  %v3426_v45 = vld [vmem:[#allocation5 + $0x20] sm:$0xf0]  ;;  %v3021_v46 = vld [vmem:[#allocation7 + $0x18] sm:$0xf]  ;;  %v4048_v47 = vor.u32 %v3453_v40, %v3033_v38 }
  0x2c   :  { %v3450_v48 = vld [vmem:[#allocation7 + $0x20] sm:$0xf0]  ;;  %v2978_v49 = vor.u32 %v3437_v41, %v2975_v42  ;;  %v2963_v51 = vld [vmem:[#allocation5 + $0x6c] sm:$0xf0]  ;;  %v3445_v53 = vld [vmem:[#allocation5 + $0xb8] sm:$0xf0]  ;;  %v2926_v55 = vor.u32 %v3426_v45, %v2925_v44 }
  0x2d   :  { %5360 = vst [vmem:[#allocation25_spill] sm:$0xff] %v4048_v47  ;;  %v3434_v50 = vld [vmem:[#allocation5 + $0x64] sm:$0xf]  ;;  %v3005_v52 = vld [vmem:[#allocation5 + $0xb0] sm:$0xf]  ;;  %v4051_v59 = vor.u32 %v3450_v48, %v3021_v46 }
  0x2e   :  { %358 = vmatpush.bf16.msra.mxu0 %v2962_v22  ;;  %385 = vmatpush.bf16.msra.mxu1 %v2990_v39  ;;  %v3006_v54 = vor.u32 %v3445_v53, %v3005_v52  ;;  %v2913_v56 = vld [vmem:[#allocation5] sm:$0xf]  ;;  %v3423_v57 = vld [vmem:[#allocation5 + $0x8] sm:$0xf0]  ;;  %v3095_v62 = vld [vmem:[#allocation7 + $0xb4] sm:$0xf0]  ;;  %v2966_v63 = vor.u32 %v3434_v50, %v2963_v51 }
  0x2f   :  { %695 = vmatpush.bf16.msra.mxu3 %v4039_v23  ;;  %v3009_v58 = vld [vmem:[#allocation7] sm:$0xf]  ;;  %5361 = vst [vmem:[#allocation26_spill] sm:$0xff] %v4051_v59  ;;  %v3447_v60 = vld [vmem:[#allocation7 + $0x8] sm:$0xf0]  ;;  %v2914_v6 = vor.u32 %v3423_v57, %v2913_v56 }
  0x30   :  { %v3467_v61 = vld [vmem:[#allocation7 + $0xac] sm:$0xf]  ;;  %v3101_v0 = vld [vmem:[#allocation7 + $0xb0] sm:$0xf]  ;;  %v3469_v1 = vld [vmem:[#allocation7 + $0xb8] sm:$0xf0]  ;;  %413 = vmatpush.bf16.msra.mxu2 %v3006_v54  ;;  %v4054_v9 = vor.u32 %v3447_v60, %v3009_v58 }
  0x31   :  { %v2993_v2 = vld [vmem:[#allocation5 + $0x98] sm:$0xf]  ;;  %v3431_v3 = vld [vmem:[#allocation5 + $0x4c] sm:$0xf]  ;;  %v3442_v5 = vld [vmem:[#allocation5 + $0xa0] sm:$0xf0]  ;;  %v4058_v12 = vor.u32 %v3469_v1, %v3101_v0  ;;  %v4060_v15 = vor.u32 %v3467_v61, %v3095_v62 }
  0x32   :  { %359 = vmatpush.bf16.msra.mxu0 %v2950_v34  ;;  %386 = vmatpush.bf16.msra.mxu1 %v2978_v49  ;;  %v2951_v4 = vld [vmem:[#allocation5 + $0x54] sm:$0xf0]  ;;  %v2994_v8 = vor.u32 %v3442_v5, %v2993_v2  ;;  %5362 = vst [vmem:[#allocation27_spill] sm:$0xff] %v4054_v9  ;;  %v3464_v13 = vld [vmem:[#allocation7 + $0x94] sm:$0xf] }
  0x33   :  { %696 = vmatpush.bf16.msra.mxu3 %v4045_v35  ;;  %5363 = vst [vmem:[#allocation28_spill] sm:$0xff] %v4058_v12  ;;  %v3089_v14 = vld [vmem:[#allocation7 + $0x98] sm:$0xf]  ;;  %v3466_v16 = vld [vmem:[#allocation7 + $0xa0] sm:$0xf0]  ;;  %v2954_v18 = vor.u32 %v3431_v3, %v2951_v4 }
  0x34   :  { %5364 = vst [vmem:[#allocation29_spill] sm:$0xff] %v4060_v15  ;;  %414 = vmatpush.bf16.msra.mxu2 %v2994_v8  ;;  %v2981_v19 = vld [vmem:[#allocation5 + $0x80] sm:$0xf]  ;;  %v3439_v20 = vld [vmem:[#allocation5 + $0x88] sm:$0xf0]  ;;  %v4064_v28 = vor.u32 %v3466_v16, %v3089_v14 }
  0x35   :  { %v3083_v21 = vld [vmem:[#allocation7 + $0x9c] sm:$0xf0]  ;;  %v3428_v22 = vld [vmem:[#allocation5 + $0x34] sm:$0xf]  ;;  %v2982_v25 = vor.u32 %v3439_v20, %v2981_v19  ;;  %v3461_v26 = vld [vmem:[#allocation7 + $0x7c] sm:$0xf] }
  0x36   :  { %360 = vmatpush.bf16.msra.mxu0 %v2938_v43  ;;  %387 = vmatpush.bf16.msra.mxu1 %v2966_v63  ;;  %v2939_v24 = vld [vmem:[#allocation5 + $0x3c] sm:$0xf0]  ;;  %5365 = vst [vmem:[#allocation30_spill] sm:$0xff] %v4064_v28  ;;  %v4067_v30 = vor.u32 %v3464_v13, %v3083_v21  ;;  %v3463_v31 = vld [vmem:[#allocation7 + $0x88] sm:$0xf0] }
  0x37   :  { %697 = vmatpush.bf16.msra.mxu3 %v4048_v47  ;;  %v3077_v29 = vld [vmem:[#allocation7 + $0x80] sm:$0xf]  ;;  %v2942_v32 = vor.u32 %v3428_v22, %v2939_v24  ;;  %v2969_v33 = vld [vmem:[#allocation5 + $0x68] sm:$0xf]  ;;  %v3436_v34 = vld [vmem:[#allocation5 + $0x70] sm:$0xf0] }
  0x38   :  { %5366 = vst [vmem:[#allocation31_spill] sm:$0xff] %v4067_v30  ;;  %v3071_v36 = vld [vmem:[#allocation7 + $0x84] sm:$0xf0]  ;;  %v3425_v37 = vld [vmem:[#allocation5 + $0x1c] sm:$0xf]  ;;  %415 = vmatpush.bf16.msra.mxu2 %v2982_v25  ;;  %v2970_v39 = vor.u32 %v3436_v34, %v2969_v33  ;;  %v4072_v42 = vor.u32 %v3463_v31, %v3077_v29 }
  0x39   :  { %v2927_v38 = vld [vmem:[#allocation5 + $0x24] sm:$0xf0]  ;;  %v2957_v40 = vld [vmem:[#allocation5 + $0x50] sm:$0xf]  ;;  %v3433_v41 = vld [vmem:[#allocation5 + $0x58] sm:$0xf0]  ;;  %v4075_v43 = vor.u32 %v3461_v26, %v3071_v36 }
  0x3a   :  { %361 = vmatpush.bf16.msra.mxu0 %v2926_v55  ;;  %388 = vmatpush.bf16.msra.mxu1 %v2954_v18  ;;  %5367 = vst [vmem:[#allocation32_spill] sm:$0xff] %v4072_v42  ;;  %v3458_v44 = vld [vmem:[#allocation7 + $0x64] sm:$0xf]  ;;  %v3065_v45 = vld [vmem:[#allocation7 + $0x68] sm:$0xf]  ;;  %v2930_v48 = vor.u32 %v3425_v37, %v2927_v38  ;;  %v2958_v52 = vor.u32 %v3433_v41, %v2957_v40 }
  0x3b   :  { %698 = vmatpush.bf16.msra.mxu3 %v4051_v59  ;;  %5368 = vst [vmem:[#allocation33_spill] sm:$0xff] %v4075_v43  ;;  %v3460_v46 = vld [vmem:[#allocation7 + $0x70] sm:$0xf0]  ;;  %v3059_v49 = vld [vmem:[#allocation7 + $0x6c] sm:$0xf0]  ;;  %v442_v40 = vld [vmem:[%s5206_s1] sm:$0xff] }
  0x3c   :  { %v3422_v50 = vld [vmem:[#allocation5 + $0x4] sm:$0xf]  ;;  %v2915_v51 = vld [vmem:[#allocation5 + $0xc] sm:$0xf0]  ;;  %416 = vmatpush.bf16.msra.mxu2 %v2970_v39  ;;  %v2945_v53 = vld [vmem:[#allocation5 + $0x38] sm:$0xf]  ;;  %v4078_v55 = vor.u32 %v3460_v46, %v3065_v45  ;;  %v4081_v56 = vor.u32 %v3458_v44, %v3059_v49 }
  0x3d   :  { %v3430_v54 = vld [vmem:[#allocation5 + $0x40] sm:$0xf0]  ;;  %v2918_v57 = vor.u32 %v3422_v50, %v2915_v51  ;;  %v3053_v58 = vld [vmem:[#allocation7 + $0x50] sm:$0xf]  ;;  %v3457_v60 = vld [vmem:[#allocation7 + $0x58] sm:$0xf0] }
  0x3e   :  { %362 = vmatpush.bf16.msra.mxu0 %v2914_v6  ;;  %389 = vmatpush.bf16.msra.mxu1 %v2942_v32  ;;  %5369 = vst [vmem:[#allocation34_spill] sm:$0xff] %v4078_v55  ;;  %v3455_v61 = vld [vmem:[#allocation7 + $0x4c] sm:$0xf]  ;;  %v3047_v62 = vld [vmem:[#allocation7 + $0x54] sm:$0xf0]  ;;  %v2946_v63 = vor.u32 %v3430_v54, %v2945_v53  ;;  %v4084_v2 = vor.u32 %v3457_v60, %v3053_v58  ;;  %v3420_v39 = vld [vmem:[#allocation2 + $0x10] sm:$0xff] }
  0x3f   :  { %699 = vmatpush.bf16.msra.mxu3 %v4054_v9  ;;  %5370 = vst [vmem:[#allocation35_spill] sm:$0xff] %v4081_v56  ;;  %v2933_v0 = vld [vmem:[#allocation5 + $0x20] sm:$0xf]  ;;  %v3427_v1 = vld [vmem:[#allocation5 + $0x28] sm:$0xf0]  ;;  %v4087_v3 = vor.u32 %v3455_v61, %v3047_v62  ;;  %vm563_vm0 = vcmp.gt.s32.totalorder %v442_v40, 0 }
  0x40   :  { %417 = vmatpush.bf16.msra.mxu2 %v2958_v52  ;;  %5371 = vst [vmem:[#allocation36_spill] sm:$0xff] %v4084_v2  ;;  %v3041_v4 = vld [vmem:[#allocation7 + $0x38] sm:$0xf]  ;;  %v3454_v5 = vld [vmem:[#allocation7 + $0x40] sm:$0xf0]  ;;  %v3419_v6 = vld [vmem:[#allocation2 + $0x8] sm:$0xff]  ;;  %v2934_v14 = vor.u32 %v3427_v1, %v2933_v0 }
  0x41   :  { %363 = vmatmul.bf16.vlgmr.msra.gmra.mxu0 %v4056_v10  ;;  %5372 = vst [vmem:[#allocation37_spill] sm:$0xff] %v4087_v3  ;;  %v3452_v8 = vld [vmem:[#allocation7 + $0x34] sm:$0xf]  ;;  %v3035_v13 = vld [vmem:[#allocation7 + $0x3c] sm:$0xf0]  ;;  %v4091_v16 = vor.u32 %v3454_v5, %v3041_v4  ;;  %v945_v41 = vsel %vm563_vm0, 1, %v5221_v27 }
  0x42   :  { %718 = vmatpush.bf16.msrb.mxu0 %v4058_v12  ;;  %700 = vmatmul.bf16.vlgmr.msra.gmra.mxu3 %v5221_v27  ;;  %v4094_v18 = vor.u32 %v3452_v8, %v3035_v13  ;;  %v3449_v19 = vld [vmem:[#allocation7 + $0x1c] sm:$0xf]  ;;  %v2921_v20 = vld [vmem:[#allocation5 + $0x8] sm:$0xf]  ;;  %v3424_v21 = vld [vmem:[#allocation5 + $0x10] sm:$0xf0] }
  0x43   :  { %705 = vmatpush.bf16.msrb.mxu3 %v4060_v15  ;;  %390 = vmatpush.bf16.msra.mxu1 %v2930_v48  ;;  %v3023_v22 = vld [vmem:[#allocation7 + $0x24] sm:$0xf0]  ;;  %v3029_v24 = vld [vmem:[#allocation7 + $0x20] sm:$0xf]  ;;  %v3451_v25 = vld [vmem:[#allocation7 + $0x28] sm:$0xf0]  ;;  %v2922_v26 = vor.u32 %v3424_v21, %v2921_v20 }
  0x44   :  { %418 = vmatpush.bf16.msra.mxu2 %v2946_v63  ;;  %5373 = vst [vmem:[#allocation38_spill] sm:$0xff] %v4094_v18  ;;  %v4097_v29 = vor.u32 %v3451_v25, %v3029_v24  ;;  %v4100_v31 = vor.u32 %v3449_v19, %v3023_v22  ;;  %v3017_v32 = vld [vmem:[#allocation7 + $0x8] sm:$0xf]  ;;  %v3448_v33 = vld [vmem:[#allocation7 + $0x10] sm:$0xf0]  ;;  %947 = vperm.xlu0 %3547, %v945_v41   ;;  %vm1167_vm1 = vcmp.gt.s32.totalorder %v442_v40, 1 }
  0x45   :  { %v3446_v34 = vld [vmem:[#allocation7 + $0x4] sm:$0xf]  ;;  %v3011_v36 = vld [vmem:[#allocation7 + $0xc] sm:$0xf0]  ;;  %v4103_v37 = vor.u32 %v3448_v33, %v3017_v32  ;;  %v3421_v44 = vld [vmem:[#allocation2 + $0x18] sm:$0xff]  ;;  %vm2272_vm2 = vcmp.gt.s32.totalorder %v442_v40, 6 }
  0x46   :  { %719 = vmatpush.bf16.msrb.mxu0 %v4064_v28  ;;  %5374 = vst [vmem:[#allocation39_spill] sm:$0xff] %v4100_v31  ;;  %v4106_v38 = vor.u32 %v3446_v34, %v3011_v36  ;;  %v2399_v45 = vsel %vm2272_vm2, 1, %v5221_v27  ;;  %v3189_v46 = vld [vmem:[#allocation10 + $0xa8] sm:$0xf]  ;;  %v3516_v48 = vld [vmem:[#allocation10 + $0xb0] sm:$0xf0] }
  0x47   :  { %706 = vmatpush.bf16.msrb.mxu3 %v4067_v30  ;;  %391 = vmatpush.bf16.msra.mxu1 %v2918_v57  ;;  %v4119_v49 = vor.u32 %v3516_v48, %v3189_v46  ;;  %v3177_v50 = vld [vmem:[#allocation10 + $0x90] sm:$0xf]  ;;  %v3513_v51 = vld [vmem:[#allocation10 + $0x98] sm:$0xf0]  ;;  %v3165_v53 = vld [vmem:[#allocation10 + $0x78] sm:$0xf] }
  0x48   :  { %419 = vmatpush.bf16.msra.mxu2 %v2934_v14  ;;  %5375 = vst [vmem:[#allocation40_spill] sm:$0xff] %v4106_v38  ;;  %v4122_v52 = vor.u32 %v3513_v51, %v3177_v50  ;;  %v3510_v54 = vld [vmem:[#allocation10 + $0x80] sm:$0xf0]  ;;  %v3153_v58 = vld [vmem:[#allocation10 + $0x60] sm:$0xf] }
  0x49   :  { %v4125_v57 = vor.u32 %v3510_v54, %v3165_v53  ;;  %v3507_v60 = vld [vmem:[#allocation10 + $0x68] sm:$0xf0]  ;;  %v3191_v63 = vld [vmem:[#allocation10 + $0xb4] sm:$0xf0]  ;;  %v3197_v0 = vld [vmem:[#allocation10 + $0xb0] sm:$0xf] }
  0x4a   :  { %720 = vmatpush.bf16.msrb.mxu0 %v4072_v42  ;;  %392 = vmatmul.bf16.vlgmr.msra.gmra.mxu1 %v4056_v10  ;;  %v4128_v61 = vor.u32 %v3507_v60, %v3153_v58  ;;  %v3515_v62 = vld [vmem:[#allocation10 + $0xac] sm:$0xf]  ;;  %v3517_v4 = vld [vmem:[#allocation10 + $0xb8] sm:$0xf0]  ;;  %v3504_v8 = vld [vmem:[#allocation10 + $0x50] sm:$0xf0] }
  0x4b   :  { %707 = vmatpush.bf16.msrb.mxu3 %v4075_v43  ;;  %859 = vmatpush.bf16.msrb.mxu1 %v4119_v49  ;;  %v4130_v1 = vor.u32 %v3515_v62, %v3191_v63  ;;  %v4133_v5 = vor.u32 %v3517_v4, %v3197_v0  ;;  %v3512_v13 = vld [vmem:[#allocation10 + $0x94] sm:$0xf]  ;;  %v3179_v19 = vld [vmem:[#allocation10 + $0x9c] sm:$0xf0]  ;;  %v3185_v20 = vld [vmem:[#allocation10 + $0x98] sm:$0xf] }
  0x4c   :  { %420 = vmatpush.bf16.msra.mxu2 %v2922_v26  ;;  %v3514_v21 = vld [vmem:[#allocation10 + $0xa0] sm:$0xf0]  ;;  %v4139_v22 = vor.u32 %v3512_v13, %v3179_v19  ;;  %v3129_v25 = vld [vmem:[#allocation10 + $0x30] sm:$0xf]  ;;  %v3501_v26 = vld [vmem:[#allocation10 + $0x38] sm:$0xf0] }
  0x4d   :  { %v4141_v24 = vor.u32 %v3514_v21, %v3185_v20  ;;  %v4144_v32 = vor.u32 %v3501_v26, %v3129_v25  ;;  %v3509_v33 = vld [vmem:[#allocation10 + $0x7c] sm:$0xf]  ;;  %v3167_v34 = vld [vmem:[#allocation10 + $0x84] sm:$0xf0]  ;;  %v3173_v36 = vld [vmem:[#allocation10 + $0x80] sm:$0xf] }
  0x4e   :  { %721 = vmatpush.bf16.msrb.mxu0 %v4078_v55  ;;  %5376 = vst [vmem:[#allocation41_spill] sm:$0xff] %v4139_v22  ;;  %v3511_v40 = vld [vmem:[#allocation10 + $0x88] sm:$0xf0]  ;;  %v4153_v41 = vld [vmem:[%s5208_s3] sm:$0x7] }
  0x4f   :  { %708 = vmatpush.bf16.msrb.mxu3 %v4081_v56  ;;  %421 = vmatmul.bf16.vlgmr.msra.gmra.mxu2 %v4056_v10  ;;  %v1294_v10 = vsel %vm1167_vm1, 1, %v5221_v27  ;;  %v3117_v46 = vld [vmem:[#allocation10 + $0x18] sm:$0xf]  ;;  %v3498_v48 = vld [vmem:[#allocation10 + $0x20] sm:$0xf0]  ;;  %v4173_v63 = vperm.slane %v4153_v41, 0 }
  0x50   :  { %1296 = vperm.xlu0 %3547, %v1294_v10   ;;  %860 = vmatpush.bf16.msrb.mxu1 %v4122_v52  ;;  %v4165_v50 = vor.u32 %v3498_v48, %v3117_v46  ;;  %v3506_v51 = vld [vmem:[#allocation10 + $0x64] sm:$0xf]  ;;  %v3155_v53 = vld [vmem:[#allocation10 + $0x6c] sm:$0xf0]  ;;  %v3161_v54 = vld [vmem:[#allocation10 + $0x68] sm:$0xf] }
  0x51   :  { %368 = vmatmul.bf16.gmra.mxu0 %v3419_v6  ;;  %872 = vmatpush.bf16.msrb.mxu2 %v4130_v1  ;;  %v4167_v58 = vor.u32 %v3506_v51, %v3155_v53  ;;  %v3508_v60 = vld [vmem:[#allocation10 + $0x70] sm:$0xf0]  ;;  %5380 = vst [vmem:[#allocation45_spill] sm:$0xff] %v4173_v63  ;;  %v3105_v4 = vld [vmem:[#allocation10] sm:$0xf] }
  0x52   :  { %722 = vmatpush.bf16.msrb.mxu0 %v4084_v2  ;;  %v4170_v62 = vor.u32 %v3508_v60, %v3161_v54  ;;  %v3503_v13 = vld [vmem:[#allocation10 + $0x4c] sm:$0xf]  ;;  %v3143_v19 = vld [vmem:[#allocation10 + $0x54] sm:$0xf0]  ;;  %v3149_v20 = vld [vmem:[#allocation10 + $0x50] sm:$0xf] }
  0x53   :  { %709 = vmatpush.bf16.msrb.mxu3 %v4087_v3  ;;  %v4182_v25 = vor.u32 %v3503_v13, %v3143_v19  ;;  %v3505_v26 = vld [vmem:[#allocation10 + $0x58] sm:$0xf0]  ;;  %v3491_v48 = vld [vmem:[#allocation8 + $0xac] sm:$0xf]  ;;  %v3289_v51 = vld [vmem:[#allocation8 + $0xb4] sm:$0xf0] }
  0x54   :  { %861 = vmatpush.bf16.msrb.mxu1 %v4125_v57  ;;  %5379 = vst [vmem:[#allocation44_spill] sm:$0xff] %v4170_v62  ;;  %v4193_v54 = vor.u32 %v3491_v48, %v3289_v51  ;;  %v3500_v60 = vld [vmem:[#allocation10 + $0x34] sm:$0xf]  ;;  %v3277_v51 = vld [vmem:[#allocation8 + $0x9c] sm:$0xf0] }
  0x55   :  { %873 = vmatpush.bf16.msrb.mxu2 %v4139_v22  ;;  %v3488_v48 = vld [vmem:[#allocation8 + $0x94] sm:$0xf] }
  0x56   :  { %723 = vmatpush.bf16.msrb.mxu0 %v4091_v16  ;;  %5384 = vst [vmem:[#allocation49_spill] sm:$0xff] %v4193_v54 }
  0x57   :  { %710 = vmatpush.bf16.msrb.mxu3 %v4094_v18 }
  0x58   :  { %2401 = vperm.xlu0 %3547, %v2399_v45   ;;  %862 = vmatpush.bf16.msrb.mxu1 %v4128_v61  ;;  %v4161_v45 = vld [vmem:[%s5210_s5] sm:$0x7] }
  0x59   :  { %v4176_v0 = vperm.slane %v4161_v45, 0 }
  0x5a   :  { %724 = vmatpush.bf16.msrb.mxu0 %v4097_v29  ;;  %397 = vmatmul.bf16.gmra.mxu1 %v3419_v6 }
  0x5b   :  { %711 = vmatpush.bf16.msrb.mxu3 %v4100_v31  ;;  %5381 = vst [vmem:[#allocation46_spill] sm:$0xff] %v4176_v0 }
  0x5e   :  { %725 = vmatpush.bf16.msrb.mxu0 %v4103_v37 }
  0x5f   :  { %712 = vmatpush.bf16.msrb.mxu3 %v4106_v38  ;;  %426 = vmatmul.bf16.gmra.mxu2 %v3419_v6  ;;  %v3141_v6 = vld [vmem:[#allocation10 + $0x48] sm:$0xf] }
  0x60   :  { %v4137_v14 = vor.u32 %v3504_v8, %v3141_v6  ;;  %v3495_v6 = vld [vmem:[#allocation10 + $0x8] sm:$0xf0] }
  0x61   :  { %373 = vmatmul.bf16.gmra.mxu0 %v3420_v39  ;;  %v4180_v8 = vor.u32 %v3495_v6, %v3105_v4  ;;  %v3131_v4 = vld [vmem:[#allocation10 + $0x3c] sm:$0xf0]  ;;  %v3137_v6 = vld [vmem:[#allocation10 + $0x38] sm:$0xf] }
  0x62   :  { %713 = vmatmul.bf16.vlgmr.msrb.gmra.mxu3 %v5221_v27  ;;  %863 = vmatpush.bf16.msrb.mxu1 %v4137_v14  ;;  %v4199_v19 = vor.u32 %v3500_v60, %v3131_v4  ;;  %v3119_v60 = vld [vmem:[#allocation10 + $0x24] sm:$0xf0]  ;;  %v3125_v4 = vld [vmem:[#allocation10 + $0x20] sm:$0xf] }
  0x63   :  { %885 = vmatpush.bf16.msra.mxu3 %v4133_v5 }
  0x66   :  { %864 = vmatpush.bf16.msrb.mxu1 %v4144_v32 }
  0x67   :  { %886 = vmatpush.bf16.msra.mxu3 %v4141_v24 }
  0x6a   :  { %402 = vmatmul.bf16.gmra.mxu1 %v3420_v39 }
  0x6b   :  { %865 = vmatpush.bf16.msrb.mxu1 %v4165_v50 }
  0x6f   :  { %431 = vmatmul.bf16.gmra.mxu2 %v3420_v39  ;;  %v4148_v39 = vor.u32 %v3509_v33, %v3167_v34  ;;  %v3287_v33 = vld [vmem:[#allocation8 + $0xa8] sm:$0xf]  ;;  %v3492_v34 = vld [vmem:[#allocation8 + $0xb0] sm:$0xf0]  ;;  %866 = vmatpush.bf16.msrb.mxu1 %v4180_v8 }
  0x70   :  { %v4189_v46 = vor.u32 %v3492_v34, %v3287_v33 }
  0x71   :  { %378 = vmatmul.bf16.gmra.mxu0 %v3421_v44  ;;  %5377 = vst [vmem:[#allocation42_spill] sm:$0xff] %v4148_v39  ;;  %874 = vmatpush.bf16.msrb.mxu2 %v4148_v39 }
  0x72   :  { %1080 = vmatpush.bf16.msra.mxu0 %v4189_v46 }
  0x73   :  { %1093 = vmatpush.bf16.msra.mxu1 %v4193_v54 }
  0x75   :  { %875 = vmatpush.bf16.msrb.mxu2 %v4167_v58 }
  0x79   :  { %876 = vmatpush.bf16.msrb.mxu2 %v4182_v25 }
  0x7a   :  { %407 = vmatmul.bf16.gmra.mxu1 %v3421_v44 }
  0x7d   :  { %877 = vmatpush.bf16.msrb.mxu2 %v4199_v19 }
  0x7f   :  { %436 = vmatmul.bf16.gmra.mxu2 %v3421_v44  ;;  %v4156_v44 = vor.u32 %v3511_v40, %v3173_v36  ;;  %v4187_v40 = vor.u32 %v3505_v26, %v3149_v20  ;;  %v3502_v20 = vld [vmem:[#allocation10 + $0x40] sm:$0xf0]  ;;  %v3275_v26 = vld [vmem:[#allocation8 + $0x90] sm:$0xf] }
  0x80   :  { %v4201_v33 = vor.u32 %v3502_v20, %v3137_v6 }
  0x81   :  { %726 = vmatmul.bf16.vlgmr.msrb.gmra.mxu0 %v5221_v27  ;;  %5378 = vst [vmem:[#allocation43_spill] sm:$0xff] %v4156_v44  ;;  %887 = vmatpush.bf16.msra.mxu3 %v4156_v44  ;;  %v3295_v44 = vld [vmem:[#allocation8 + $0xb0] sm:$0xf] }
  0x82   :  { %5383 = vst [vmem:[#allocation48_spill] sm:$0xff] %v4187_v40 }
  0x83   :  { %5385 = vst [vmem:[#allocation50_spill] sm:$0xff] %v4201_v33 }
  0x85   :  { %888 = vmatpush.bf16.msra.mxu3 %v4170_v62 }
  0x89   :  { %889 = vmatpush.bf16.msra.mxu3 %v4187_v40 }
  0x8a   :  { %867 = vmatmul.bf16.vlgmr.msrb.gmra.mxu1 %v5221_v27  ;;  %v3486_v27 = vld [vmem:[#allocation8 + $0x80] sm:$0xf0] }
  0x8d   :  { %890 = vmatpush.bf16.msra.mxu3 %v4201_v33  ;;  %v3265_v33 = vld [vmem:[#allocation8 + $0x84] sm:$0xf0] }
  0xbe   :  { %v364_v10 = vpop.f32.mrf.mxu0 }
  0xbf   :  { %v365_v13 = vadd.f32 %v364_v10, %v4173_v63  ;;  %v3497_v10 = vld [vmem:[#allocation10 + $0x1c] sm:$0xf] }
  0xc0   :  { %v4212_v20 = vor.u32 %v3497_v10, %v3119_v60  ;;  %v3494_v10 = vld [vmem:[#allocation10 + $0x4] sm:$0xf]  ;;  %v3107_v60 = vld [vmem:[#allocation10 + $0xc] sm:$0xf0] }
  0xc2   :  { %878 = vmatpush.bf16.msrb.mxu2 %v4212_v20 }
  0xc5   :  { %v701_v21 = vpop.f32.mrf.mxu3 }
  0xc6   :  { %v4184_v36 = vpop.f32.mrf.mxu0  ;;  %v702_v53 = vadd.f32 %v701_v21, %v4176_v0  ;;  %v3489_v21 = vld [vmem:[#allocation8 + $0x98] sm:$0xf0] }
  0xc7   :  { %5382 = vst [vmem:[#allocation47_spill] sm:$0xff] %v4184_v36  ;;  %v4203_v34 = vor.u32 %v3489_v21, %v3275_v26  ;;  %v4207_v36 = vor.u32 %v3488_v48, %v3277_v51  ;;  %v3499_v26 = vld [vmem:[#allocation10 + $0x28] sm:$0xf0]  ;;  %v3263_v21 = vld [vmem:[#allocation8 + $0x78] sm:$0xf] }
  0xc8   :  { %v898_v0 = vadd.f32 %v702_v53, %v365_v13  ;;  %v4214_v13 = vor.u32 %v3499_v26, %v3125_v4  ;;  %v4216_v48 = vor.u32 %v3486_v27, %v3263_v21  ;;  %v3485_v51 = vld [vmem:[#allocation8 + $0x7c] sm:$0xf]  ;;  %v3113_v4 = vld [vmem:[#allocation10 + $0x8] sm:$0xf]  ;;  %v4227_v27 = vor.u32 %v3494_v10, %v3107_v60  ;;  %v3496_v26 = vld [vmem:[#allocation10 + $0x10] sm:$0xf0] }
  0xc9   :  { %5386 = vst [vmem:[#allocation51_spill] sm:$0xff] %v4203_v34  ;;  %1081 = vmatpush.bf16.msra.mxu0 %v4203_v34  ;;  %1094 = vmatpush.bf16.msra.mxu1 %v4207_v36  ;;  %v3483_v21 = vld [vmem:[#allocation8 + $0x68] sm:$0xf0]  ;;  %v3239_v60 = vld [vmem:[#allocation8 + $0x48] sm:$0xf] }
  0xca   :  { %5387 = vst [vmem:[#allocation52_spill] sm:$0xff] %v4207_v36  ;;  %v3199_v40 = vmul.f32 -1.442695, %v898_v0  ;;  %891 = vmatpush.bf16.msra.mxu3 %v4214_v13  ;;  %v3251_v0 = vld [vmem:[#allocation8 + $0x60] sm:$0xf]  ;;  %879 = vmatpush.bf16.msrb.mxu2 %v4227_v27 }
  0xcb   :  { %5388 = vst [vmem:[#allocation53_spill] sm:$0xff] %v4214_v13 }
  0xcc   :  { %5389 = vst [vmem:[#allocation54_spill] sm:$0xff] %v4216_v48  ;;  %3551 = vpow2.f32 %v3199_v40  ;;  %v3227_v40 = vld [vmem:[#allocation8 + $0x30] sm:$0xf] }
  0xcd   :  { %v703_v6 = vpop.f32.mrf.mxu3  ;;  %1082 = vmatpush.bf16.msra.mxu0 %v4216_v48  ;;  %5392 = vst [vmem:[#allocation57_spill] sm:$0xff] %v4227_v27  ;;  %v3493_v48 = vld [vmem:[#allocation8 + $0xb8] sm:$0xf0] }
  0xce   :  { %v369_v53 = vpop.f32.mrf.mxu0  ;;  %v4222_v6 = vor.u32 %v3485_v51, %v3265_v33  ;;  %v3482_v33 = vld [vmem:[#allocation8 + $0x64] sm:$0xf]  ;;  %v3253_v51 = vld [vmem:[#allocation8 + $0x6c] sm:$0xf0]  ;;  %v4238_v10 = vor.u32 %v3493_v48, %v3295_v44  ;;  %v5401_v48 = vmov 0  }
  0xcf   :  { %v4219_v62 = vadd.f32 %v369_v53, %v4173_v63  ;;  %v4229_v53 = vor.u32 %v3496_v26, %v3113_v4  ;;  %v4234_v13 = vor.u32 %v3482_v33, %v3253_v51  ;;  %v3479_v4 = vld [vmem:[#allocation8 + $0x4c] sm:$0xf]  ;;  %v3490_v33 = vld [vmem:[#allocation8 + $0xa0] sm:$0xf0]  ;;  %880 = vmatmul.bf16.vlgmr.msrb.gmra.mxu2 %v5401_v48 }
  0xd0   :  { %5391 = vst [vmem:[#allocation56_spill] sm:$0xff] %v4222_v6  ;;  %1095 = vmatpush.bf16.msra.mxu1 %v4222_v6  ;;  %v3480_v6 = vld [vmem:[#allocation8 + $0x50] sm:$0xf0]  ;;  %1106 = vmatpush.bf16.msra.mxu2 %v4238_v10 }
  0xd1   :  { %5390 = vst [vmem:[#allocation55_spill] sm:$0xff] %v4219_v62  ;;  %v4231_v62 = vor.u32 %v3483_v21, %v3251_v0  ;;  %892 = vmatpush.bf16.msra.mxu3 %v4229_v53  ;;  %v4242_v26 = vor.u32 %v3480_v6, %v3239_v60  ;;  %v3241_v0 = vld [vmem:[#allocation8 + $0x54] sm:$0xf0]  ;;  %v3477_v6 = vld [vmem:[#allocation8 + $0x38] sm:$0xf0] }
  0xd2   :  { %5393 = vst [vmem:[#allocation58_spill] sm:$0xff] %v4229_v53  ;;  %v3283_v21 = vld [vmem:[#allocation8 + $0x98] sm:$0xf]  ;;  %v4247_v53 = vor.u32 %v3479_v4, %v3241_v0  ;;  %v3476_v60 = vld [vmem:[#allocation8 + $0x34] sm:$0xf] }
  0xd3   :  { %5394 = vst [vmem:[#allocation59_spill] sm:$0xff] %v4231_v62  ;;  %1083 = vmatpush.bf16.msra.mxu0 %v4231_v62  ;;  %v4249_v44 = vor.u32 %v3490_v33, %v3283_v21  ;;  %v3271_v4 = vld [vmem:[#allocation8 + $0x80] sm:$0xf]  ;;  %v3487_v0 = vld [vmem:[#allocation8 + $0x88] sm:$0xf0] }
  0xd4   :  { %5395 = vst [vmem:[#allocation60_spill] sm:$0xff] %v4234_v13  ;;  %1096 = vmatpush.bf16.msra.mxu1 %v4234_v13  ;;  %893 = vmatmul.bf16.vlgmr.msra.gmra.mxu3 %v5401_v48  ;;  %v4261_v33 = vor.u32 %v3487_v0, %v3271_v4  ;;  %v3552_v48 = vpop.eup %3551  ;;  %v3474_v4 = vld [vmem:[#allocation8 + $0x20] sm:$0xf0]  ;;  %v3473_v0 = vld [vmem:[#allocation8 + $0x1c] sm:$0xf] }
  0xd5   :  { %5396 = vst [vmem:[#allocation61_spill] sm:$0xff] %v4238_v10  ;;  %1169 = vmatpush.bf16.msrb.mxu3 %v4030_v7  ;;  %v3229_v7 = vld [vmem:[#allocation8 + $0x3c] sm:$0xf0]  ;;  %1107 = vmatpush.bf16.msra.mxu2 %v4249_v44  ;;  %v3259_v13 = vld [vmem:[#allocation8 + $0x68] sm:$0xf] }
  0xd6   :  { %5397 = vst [vmem:[#allocation62_spill] sm:$0xff] %v4242_v26  ;;  %v4244_v51 = vpop.f32.mrf.mxu0  ;;  %v4259_v21 = vor.u32 %v3476_v60, %v3229_v7  ;;  %v3215_v60 = vld [vmem:[#allocation8 + $0x18] sm:$0xf] }
  0xd7   :  { %5398 = vst [vmem:[#allocation63_spill] sm:$0xff] %v4244_v51  ;;  %1084 = vmatpush.bf16.msra.mxu0 %v4242_v26  ;;  %v4256_v51 = vor.u32 %v3477_v6, %v3227_v40  ;;  %v4265_v26 = vperm.slane %v4153_v41, 1  ;;  %v4269_v40 = vadd.f32 1.0, %v3552_v48 }
  0xd8   :  { %5399 = vst [vmem:[#allocation64_spill] sm:$0xff] %v4247_v53  ;;  %1097 = vmatpush.bf16.msra.mxu1 %v4247_v53  ;;  %v4272_v53 = vperm.slane %v4161_v45, 1 }
  0xd9   :  { %5400 = vst [vmem:[#allocation65_spill] sm:$0xff] %v4249_v44  ;;  %1170 = vmatpush.bf16.msrb.mxu3 %v4033_v11  ;;  %v393_v11 = vpop.f32.mrf.mxu1  ;;  %1108 = vmatpush.bf16.msra.mxu2 %v4261_v33  ;;  %3553 = vrcp.f32 %v4269_v40  ;;  %vm908_vm4 = vweird.f32 %v4269_v40 }
  0xda   :  { %5402 = vst [vmem:[#allocation66_spill] sm:$0xff] %v4256_v51  ;;  %v394_v48 = vadd.f32 %v393_v11, %v4265_v26 }
  0xdb   :  { %5403 = vst [vmem:[#allocation67_spill] sm:$0xff] %v4259_v21  ;;  %1085 = vmatpush.bf16.msra.mxu0 %v4256_v51  ;;  %v4278_v51 = vor.u32 %v3474_v4, %v3215_v60  ;;  %v3203_v60 = vld [vmem:[#allocation8] sm:$0xf]  ;;  %v3471_v4 = vld [vmem:[#allocation8 + $0x8] sm:$0xf0] }
  0xdc   :  { %5404 = vst [vmem:[#allocation68_spill] sm:$0xff] %v4261_v33  ;;  %1098 = vmatpush.bf16.msra.mxu1 %v4259_v21  ;;  %v3217_v21 = vld [vmem:[#allocation8 + $0x24] sm:$0xf0]  ;;  %v4291_v11 = vor.u32 %v3471_v4, %v3203_v60 }
  0xdd   :  { %5405 = vst [vmem:[#allocation69_spill] sm:$0xff] %v4265_v26  ;;  %1171 = vmatpush.bf16.msrb.mxu3 %v4036_v17  ;;  %v3484_v17 = vld [vmem:[#allocation8 + $0x70] sm:$0xf0]  ;;  %v4281_v62 = vor.u32 %v3473_v0, %v3217_v21  ;;  %v3205_v21 = vld [vmem:[#allocation8 + $0xc] sm:$0xf0] }
  0xde   :  { %v374_v6 = vpop.f32.mrf.mxu0  ;;  %5406 = vst [vmem:[#allocation70_spill] sm:$0xff] %v4272_v53  ;;  %v4284_v44 = vor.u32 %v3484_v17, %v3259_v13  ;;  %v3247_v0 = vld [vmem:[#allocation8 + $0x50] sm:$0xf]  ;;  %v3481_v17 = vld [vmem:[#allocation8 + $0x58] sm:$0xf0] }
  0xdf   :  { %v4276_v7 = vadd.f32 %v374_v6, %v4173_v63  ;;  %5408 = vst [vmem:[#allocation72_spill] sm:$0xff] %v4278_v51  ;;  %1086 = vmatpush.bf16.msra.mxu0 %v4278_v51  ;;  %v3554_v60 = vpop.eup %3553 }
  0xe0   :  { %5409 = vst [vmem:[#allocation73_spill] sm:$0xff] %v4281_v62  ;;  %1099 = vmatpush.bf16.msra.mxu1 %v4281_v62  ;;  %1109 = vmatpush.bf16.msra.mxu2 %v4284_v44  ;;  %vm909_vm3 = vweird.f32 %v3554_v60 }
  0xe1   :  { %5407 = vst [vmem:[#allocation71_spill] sm:$0xff] %v4276_v7  ;;  %1172 = vmatpush.bf16.msrb.mxu3 %v4039_v23  ;;  %v3470_v7 = vld [vmem:[#allocation8 + $0x4] sm:$0xf]  ;;  %vm910_vm5 = vmor %vm908_vm4, %vm909_vm3 }
  0xe2   :  { %5410 = vst [vmem:[#allocation74_spill] sm:$0xff] %v4284_v44  ;;  %v4293_v26 = vor.u32 %v3470_v7, %v3205_v21  ;;  %v3478_v7 = vld [vmem:[#allocation8 + $0x40] sm:$0xf0]  ;;  %v3223_v21 = vld [vmem:[#allocation8 + $0x20] sm:$0xf] }
  0xe3   :  { %5411 = vst [vmem:[#allocation75_spill] sm:$0xff] %v4291_v11  ;;  %1087 = vmatpush.bf16.msra.mxu0 %v4291_v11 }
  0xe4   :  { %5412 = vst [vmem:[#allocation76_spill] sm:$0xff] %v4293_v26  ;;  %1100 = vmatpush.bf16.msra.mxu1 %v4293_v26 }
  0xe5   :  { %v714_v33 = vpop.f32.mrf.mxu3  ;;  %1173 = vmatpush.bf16.msrb.mxu3 %v4045_v35 }
  0xe6   :  { %v715_v6 = vadd.f32 %v714_v33, %v4272_v53  ;;  %v4296_v33 = vpop.f32.mrf.mxu0  ;;  %v4299_v53 = vor.u32 %v3481_v17, %v3247_v0  ;;  %v3475_v0 = vld [vmem:[#allocation8 + $0x28] sm:$0xf0]  ;;  %v904_v17 = vmul.f32 %v3554_v60, %v4269_v40 }
  0xe7   :  { %5413 = vst [vmem:[#allocation77_spill] sm:$0xff] %v4296_v33  ;;  %1182 = vmatpush.bf16.msrb.mxu0 %v4060_v15 }
  0xe8   :  { %v918_v13 = vadd.f32 %v715_v6, %v394_v48  ;;  %5414 = vst [vmem:[#allocation78_spill] sm:$0xff] %v4299_v53  ;;  %1110 = vmatpush.bf16.msra.mxu2 %v4299_v53  ;;  %1195 = vmatpush.bf16.msrb.mxu1 %v4058_v12  ;;  %v3235_v48 = vld [vmem:[#allocation8 + $0x38] sm:$0xf]  ;;  %v905_v12 = vsub.f32 1.0, %v904_v17 }
  0xe9   :  { %1174 = vmatpush.bf16.msrb.mxu3 %v4048_v47  ;;  %v4306_v6 = vor.u32 %v3478_v7, %v3235_v48 }
  0xea   :  { %v3200_v23 = vmul.f32 -1.442695, %v918_v13  ;;  %v4312_v13 = vor.u32 %v3475_v0, %v3223_v21 }
  0xeb   :  { %5415 = vst [vmem:[#allocation79_spill] sm:$0xff] %v4306_v6  ;;  %1183 = vmatpush.bf16.msrb.mxu0 %v4067_v30 }
  0xec   :  { %3555 = vpow2.f32 %v3200_v23  ;;  %1111 = vmatpush.bf16.msra.mxu2 %v4306_v6  ;;  %1196 = vmatpush.bf16.msrb.mxu1 %v4064_v28  ;;  %5416 = vst [vmem:[#allocation80_spill] sm:$0xff] %v4312_v13  ;;  %v3472_v28 = vld [vmem:[#allocation8 + $0x10] sm:$0xf0] }
  0xed   :  { %v716_v4 = vpop.f32.mrf.mxu3  ;;  %1175 = vmatpush.bf16.msrb.mxu3 %v4051_v59 }
  0xee   :  { %v379_v23 = vpop.f32.mrf.mxu0  ;;  %v3211_v4 = vld [vmem:[#allocation8 + $0x8] sm:$0xf] }
  0xef   :  { %v4316_v48 = vadd.f32 %v379_v23, %v4173_v63  ;;  %1184 = vmatpush.bf16.msrb.mxu0 %v4075_v43  ;;  %v4324_v21 = vor.u32 %v3472_v28, %v3211_v4 }
  0xf0   :  { %1112 = vmatpush.bf16.msra.mxu2 %v4312_v13  ;;  %1197 = vmatpush.bf16.msrb.mxu1 %v4072_v42  ;;  %v422_v42 = vpop.f32.mrf.mxu2 }
  0xf1   :  { %5417 = vst [vmem:[#allocation81_spill] sm:$0xff] %v4316_v48  ;;  %1176 = vmatpush.bf16.msrb.mxu3 %v4054_v9  ;;  %v4346_v48 = vperm.slane %v4161_v45, 2 }
  0xf2   :  { %v3556_v33 = vpop.eup %3555  ;;  %5418 = vst [vmem:[#allocation82_spill] sm:$0xff] %v4324_v21 }
  0xf3   :  { %v4319_v7 = vadd.f32 1.0, %v3556_v33  ;;  %1185 = vmatpush.bf16.msrb.mxu0 %v4081_v56  ;;  %v906_v33 = vmul.f32 %v3554_v60, %v905_v12  ;;  %v914_v12 = vand.u32 2147483648, %v4269_v40 }
  0xf4   :  { %1113 = vmatpush.bf16.msra.mxu2 %v4324_v21  ;;  %1198 = vmatpush.bf16.msrb.mxu1 %v4078_v55 }
  0xf5   :  { %3557 = vrcp.f32 %v4319_v7  ;;  %1221 = vmatpush.bf16.msra.mxu3 %v4130_v1  ;;  %v907_v23 = vadd.f32 %v3554_v60, %v906_v33  ;;  %vm928_vm7 = vweird.f32 %v4319_v7 }
  0xf6   :  { %v4332_v0 = vpop.f32.mrf.mxu0 }
  0xf7   :  { %5419 = vst [vmem:[#allocation83_spill] sm:$0xff] %v4332_v0  ;;  %1186 = vmatpush.bf16.msrb.mxu0 %v4087_v3  ;;  %v4343_v0 = vperm.slane %v4153_v41, 2  ;;  %v911_v33 = vsel %vm910_vm5, %v3554_v60, %v907_v23  ;;  %v934_v23 = vand.u32 2147483648, %v4319_v7 }
  0xf8   :  { %1208 = vmatpush.bf16.msrb.mxu2 %v4119_v49  ;;  %1199 = vmatpush.bf16.msrb.mxu1 %v4084_v2  ;;  %v912_v2 = vand.u32 2147483647, %v4269_v40 }
  0xf9   :  { %1222 = vmatpush.bf16.msra.mxu3 %v4139_v22  ;;  %v423_v41 = vadd.f32 %v422_v42, %v4343_v0  ;;  %v4362_v42 = vpop.f32.mrf.mxu1 }
  0xfa   :  { %vm913_vm6 = vcmp.eq.f32.partialorder %v912_v2, 8.507059e+37 }
  0xfb   :  { %v3558_v28 = vpop.eup %3557  ;;  %1187 = vmatpush.bf16.msrb.mxu0 %v4094_v18 }
  0xfc   :  { %v924_v17 = vmul.f32 %v3558_v28, %v4319_v7  ;;  %1209 = vmatpush.bf16.msrb.mxu2 %v4122_v52  ;;  %1200 = vmatpush.bf16.msrb.mxu1 %v4091_v16  ;;  %vm929_vm8 = vweird.f32 %v3558_v28 }
  0xfd   :  { %1223 = vmatpush.bf16.msra.mxu3 %v4148_v39  ;;  %vm930_vm9 = vmor %vm928_vm7, %vm929_vm8 }
  0xfe   :  { %v925_v4 = vsub.f32 1.0, %v924_v17  ;;  %v727_v39 = vpop.f32.mrf.mxu0  ;;  %v915_v17 = vor.u32 1.1754944e-38, %v914_v12  ;;  %v932_v12 = vand.u32 2147483647, %v4319_v7 }
  0xff   :  { %v728_v45 = vadd.f32 %v727_v39, %v4346_v48  ;;  %1188 = vmatpush.bf16.msrb.mxu0 %v4100_v31  ;;  %v935_v39 = vor.u32 1.1754944e-38, %v934_v23 }
 0x100   :  { %v926_v55 = vmul.f32 %v3558_v28, %v925_v4  ;;  %1210 = vmatpush.bf16.msrb.mxu2 %v4125_v57  ;;  %v916_v40 = vsel %vm913_vm6, %v915_v17, %v911_v33  ;;  %1201 = vmatpush.bf16.msrb.mxu1 %v4097_v29  ;;  %vm933_vm10 = vcmp.eq.f32.partialorder %v932_v12, 8.507059e+37 }
 0x101   :  { %1224 = vmatpush.bf16.msra.mxu3 %v4167_v58  ;;  %v938_v60 = vmul.f32 %v916_v40, %v728_v45 }
 0x102   :  { %v927_v22 = vadd.f32 %v3558_v28, %v926_v55 }
 0x103   :  { %v939_v2 = vadd.f32 %v938_v60, %v423_v41  ;;  %1189 = vmatpush.bf16.msrb.mxu0 %v4106_v38  ;;  %v4370_v41 = vpop.permute.xlu0 %947 }
 0x104   :  { %1211 = vmatpush.bf16.msrb.mxu2 %v4128_v61  ;;  %v931_v55 = vsel %vm930_vm9, %v3558_v28, %v927_v22  ;;  %1202 = vmatpush.bf16.msrb.mxu1 %v4103_v37  ;;  %v4372_v22 = vpop.f32.mrf.mxu1  ;;  %vm949_vm11 = vcmp.eq.s32.totalorder %v4370_v41, 1 }
 0x105   :  { %1225 = vmatpush.bf16.msra.mxu3 %v4182_v25  ;;  %3559 = vtanh.f32 %v939_v2  ;;  %v936_v7 = vsel %vm933_vm10, %v935_v39, %v931_v55  ;;  %5420 = vst [vmem:[#allocation84_spill] sm:$0xff] %v4372_v22  ;;  %vm4382_vm12 = vmpackc.low %vm949_vm11, %vm949_vm11  ;;  %v4403_v2 = vpop.f32.mrf.mxu2  ;;  %v5424_v55 = vld [vmem:[#allocation65_spill] sm:$0xff]  ;;  %v5425_v39 = vld [vmem:[#allocation43_spill] sm:$0xff] }
 0x106   :  { %v729_v4 = vpop.f32.mrf.mxu0  ;;  %v941_v33 = vsub.f32 1.0, %v936_v7  ;;  %v943_v45 = vmul.f32 0.0, %v936_v7  ;;  %v5427_v7 = vld [vmem:[#allocation56_spill] sm:$0xff] }
 0x107   :  { %v5426_v4 = vld [vmem:[#allocation54_spill] sm:$0xff]  ;;  %v5433_v22 = vld [vmem:[#allocation60_spill] sm:$0xff] }
 0x108   :  { %1212 = vmatpush.bf16.msrb.mxu2 %v4137_v14 }
 0x109   :  { %1226 = vmatpush.bf16.msra.mxu3 %v4199_v19 }
 0x10b   :  { %v3560_v17 = vpop.eup %3559 }
 0x10c   :  { %1213 = vmatpush.bf16.msrb.mxu2 %v4144_v32  ;;  %v942_v28 = vmul.f32 %v3560_v17, %v941_v33  ;;  %v4399_v12 = vpop.f32.mrf.mxu1  ;;  %v5428_v33 = vld [vmem:[#allocation68_spill] sm:$0xff] }
 0x10d   :  { %1227 = vmatpush.bf16.msra.mxu3 %v4212_v20  ;;  %5423 = vst [vmem:[#allocation85_spill] sm:$0xff] %v4399_v12  ;;  %v4413_v17 = vpop.f32.mrf.mxu2  ;;  %v5432_v12 = vld [vmem:[#allocation59_spill] sm:$0xff] }
 0x10e   :  { %v4376_v40 = vadd.f32 %v943_v45, %v942_v28  ;;  %5429 = vst [vmem:[#allocation43_spill] sm:$0xff] %v4413_v17  ;;  %v5431_v45 = vld [vmem:[#allocation44_spill] sm:$0xff] }
 0x10f   :  { %v5436_v17 = vld [vmem:[#allocation64_spill] sm:$0xff] }
 0x110   :  { %1214 = vmatpush.bf16.msrb.mxu2 %v4165_v50  ;;  %v3298_v23 = vpack.c.bf16 %v4376_v40, %v4376_v40 }
 0x111   :  { %1228 = vmatpush.bf16.msra.mxu3 %v4227_v27 }
 0x112   :  { %3299 = vmatmul.msk.bf16.vlgmr.msra.gmra.mxu0 %vm4382_vm12, %v3298_v23  ;;  %3302 = vmatmul.msk.bf16.vlgmr.msra.gmra.mxu1 %vm4382_vm12, %v3298_v23 }
 0x113   :  { %3305 = vmatmul.msk.bf16.vlgmr.msra.gmra.mxu2 %vm4382_vm12, %v3298_v23  ;;  %3310 = vmatmul.msk.bf16.vlgmr.msrb.gmra.mxu3 %vm4382_vm12, %v3298_v23 }
 0x114   :  { %1215 = vmatpush.bf16.msrb.mxu2 %v4180_v8  ;;  %1234 = vmatpush.bf16.msra.mxu0 %v4133_v5  ;;  %v4415_v28 = vpop.f32.mrf.mxu1 }
 0x115   :  { %1301 = vmatpush.bf16.msra.mxu1 %v4189_v46  ;;  %1327 = vmatpush.bf16.msrb.mxu3 %v4238_v10  ;;  %5430 = vst [vmem:[#allocation86_spill] sm:$0xff] %v4415_v28  ;;  %v4429_v28 = vpop.f32.mrf.mxu2 }
 0x116   :  { %5437 = vst [vmem:[#allocation44_spill] sm:$0xff] %v4429_v28  ;;  %v5444_v28 = vld [vmem:[#allocation20_spill] sm:$0xff] }
 0x118   :  { %1314 = vmatpush.bf16.msra.mxu2 %v4193_v54  ;;  %1235 = vmatpush.bf16.msra.mxu0 %v4141_v24 }
 0x119   :  { %1302 = vmatpush.bf16.msra.mxu1 %v4203_v34  ;;  %1328 = vmatpush.bf16.msrb.mxu3 %v5424_v55 }
 0x11c   :  { %1315 = vmatpush.bf16.msra.mxu2 %v4207_v36  ;;  %1236 = vmatpush.bf16.msra.mxu0 %v5425_v39 }
 0x11d   :  { %1303 = vmatpush.bf16.msra.mxu1 %v5426_v4  ;;  %1329 = vmatpush.bf16.msrb.mxu3 %v5428_v33  ;;  %v5435_v33 = vld [vmem:[#allocation62_spill] sm:$0xff]  ;;  %v5441_v4 = vld [vmem:[#allocation67_spill] sm:$0xff] }
 0x120   :  { %1316 = vmatpush.bf16.msra.mxu2 %v5427_v7  ;;  %1237 = vmatpush.bf16.msra.mxu0 %v5431_v45  ;;  %v5434_v7 = vld [vmem:[#allocation48_spill] sm:$0xff] }
 0x121   :  { %1304 = vmatpush.bf16.msra.mxu1 %v5432_v12  ;;  %1330 = vmatpush.bf16.msrb.mxu3 %v4284_v44  ;;  %v5438_v12 = vld [vmem:[#allocation50_spill] sm:$0xff]  ;;  %v4433_v44 = vpop.f32.mrf.mxu1 }
 0x122   :  { %3313 = vmatmul.msk.bf16.vlgmr.msrb.gmra.mxu0 %vm4382_vm12, %v3298_v23  ;;  %3316 = vmatmul.msk.bf16.vlgmr.msrb.gmra.mxu1 %vm4382_vm12, %v3298_v23  ;;  %5440 = vst [vmem:[#allocation48_spill] sm:$0xff] %v4433_v44  ;;  %v5442_v23 = vld [vmem:[#allocation53_spill] sm:$0xff]  ;;  %v4445_v44 = vpop.f32.mrf.mxu2 }
 0x123   :  { %5445 = vst [vmem:[#allocation87_spill] sm:$0xff] %v4445_v44 }
 0x124   :  { %1317 = vmatpush.bf16.msra.mxu2 %v5433_v22  ;;  %1238 = vmatpush.bf16.msra.mxu0 %v5434_v7  ;;  %v5439_v22 = vld [vmem:[#allocation66_spill] sm:$0xff] }
 0x125   :  { %1305 = vmatpush.bf16.msra.mxu1 %v5435_v33  ;;  %1331 = vmatpush.bf16.msrb.mxu3 %v4299_v53  ;;  %v5443_v53 = vld [vmem:[#allocation58_spill] sm:$0xff] }
 0x128   :  { %1318 = vmatpush.bf16.msra.mxu2 %v5436_v17  ;;  %1239 = vmatpush.bf16.msra.mxu0 %v5438_v12  ;;  %v5458_v17 = vld [vmem:[#allocation47_spill] sm:$0xff] }
 0x129   :  { %1306 = vmatpush.bf16.msra.mxu1 %v5439_v22  ;;  %1332 = vmatpush.bf16.msrb.mxu3 %v4306_v6  ;;  %v4449_v6 = vpop.f32.mrf.mxu1  ;;  %v367_v33 = vadd.f32 %v5458_v17, %v4173_v63 }
 0x12a   :  { %5446 = vst [vmem:[#allocation88_spill] sm:$0xff] %v4449_v6 }
 0x12c   :  { %1319 = vmatpush.bf16.msra.mxu2 %v5441_v4  ;;  %1240 = vmatpush.bf16.msra.mxu0 %v5442_v23 }
 0x12d   :  { %1307 = vmatpush.bf16.msra.mxu1 %v4278_v51  ;;  %1333 = vmatpush.bf16.msrb.mxu3 %v4312_v13  ;;  %v5447_v51 = vld [vmem:[#allocation21_spill] sm:$0xff]  ;;  %v5448_v13 = vld [vmem:[#allocation22_spill] sm:$0xff] }
 0x130   :  { %1320 = vmatpush.bf16.msra.mxu2 %v4281_v62  ;;  %1241 = vmatpush.bf16.msra.mxu0 %v5443_v53 }
 0x131   :  { %1308 = vmatpush.bf16.msra.mxu1 %v4291_v11  ;;  %1334 = vmatpush.bf16.msrb.mxu3 %v4324_v21  ;;  %v4455_v11 = vpop.f32.mrf.mxu2  ;;  %v4457_v62 = vpop.f32.mrf.mxu1 }
 0x132   :  { %5449 = vst [vmem:[#allocation89_spill] sm:$0xff] %v4455_v11 }
 0x133   :  { %5450 = vst [vmem:[#allocation90_spill] sm:$0xff] %v4457_v62 }
 0x134   :  { %1390 = vmatpush.bf16.msrb.mxu0 %v5444_v28  ;;  %1321 = vmatpush.bf16.msra.mxu2 %v4293_v26 }
 0x135   :  { %1403 = vmatpush.bf16.msrb.mxu1 %v4060_v15  ;;  %v5451_v15 = vld [vmem:[#allocation23_spill] sm:$0xff] }
 0x138   :  { %1391 = vmatpush.bf16.msrb.mxu0 %v5447_v51 }
 0x139   :  { %1404 = vmatpush.bf16.msrb.mxu1 %v4067_v30  ;;  %v4465_v6 = vpop.f32.mrf.mxu2  ;;  %v868_v44 = vpop.f32.mrf.mxu1 }
 0x13a   :  { %5452 = vst [vmem:[#allocation91_spill] sm:$0xff] %v4465_v6  ;;  %v555_v6 = vld [vmem:[%s5214_s9] sm:$0x7] }
 0x13b   :  { %v4503_v63 = vperm.slane %v555_v6, 2 }
 0x13c   :  { %1392 = vmatpush.bf16.msrb.mxu0 %v5448_v13 }
 0x13d   :  { %1405 = vmatpush.bf16.msrb.mxu1 %v4075_v43 }
 0x140   :  { %1393 = vmatpush.bf16.msrb.mxu0 %v5451_v15 }
 0x141   :  { %1406 = vmatpush.bf16.msrb.mxu1 %v4081_v56  ;;  %v870_v62 = vpop.f32.mrf.mxu1  ;;  %v4471_v11 = vpop.f32.mrf.mxu2 }
 0x142   :  { %5453 = vst [vmem:[#allocation92_spill] sm:$0xff] %v4471_v11 }
 0x144   :  { %1394 = vmatpush.bf16.msrb.mxu0 %v4045_v35 }
 0x145   :  { %1407 = vmatpush.bf16.msrb.mxu1 %v4087_v3 }
 0x148   :  { %1395 = vmatpush.bf16.msrb.mxu0 %v4048_v47 }
 0x149   :  { %1408 = vmatpush.bf16.msrb.mxu1 %v4094_v18  ;;  %v4481_v18 = vperm.slane %v555_v6, 1 }
 0x14b   :  { %5454 = vst [vmem:[#allocation93_spill] sm:$0xff] %v4481_v18 }
 0x14c   :  { %1396 = vmatpush.bf16.msrb.mxu0 %v4051_v59 }
 0x14d   :  { %1409 = vmatpush.bf16.msrb.mxu1 %v4100_v31  ;;  %v547_v31 = vld [vmem:[%s5212_s7] sm:$0x7] }
 0x14e   :  { %v4485_v62 = vperm.slane %v547_v31, 0  ;;  %v4487_v11 = vperm.slane %v547_v31, 1 }
 0x150   :  { %1397 = vmatpush.bf16.msrb.mxu0 %v4054_v9  ;;  %v4483_v9 = vperm.slane %v555_v6, 0  ;;  %5456 = vst [vmem:[#allocation95_spill] sm:$0xff] %v4485_v62 }
 0x151   :  { %1410 = vmatpush.bf16.msrb.mxu1 %v4106_v38  ;;  %5457 = vst [vmem:[#allocation96_spill] sm:$0xff] %v4487_v11 }
 0x152   :  { %v881_v3 = vpop.f32.mrf.mxu2  ;;  %5455 = vst [vmem:[#allocation94_spill] sm:$0xff] %v4483_v9  ;;  %v869_v59 = vadd.f32 %v868_v44, %v4483_v9 }
 0x153   :  { %v882_v38 = vadd.f32 %v881_v3, %v4481_v18  ;;  %v5459_v3 = vld [vmem:[#allocation46_spill] sm:$0xff] }
 0x157   :  { %v4473_v56 = vpop.f32.mrf.mxu3 }
 0x15a   :  { %v883_v30 = vpop.f32.mrf.mxu2 }
 0x15f   :  { %v896_v43 = vpop.f32.mrf.mxu3 }
 0x18f   :  { %v1089_v43 = vpop.f32.mrf.mxu0  ;;  %v1102_v30 = vpop.f32.mrf.mxu1 }
 0x190   :  { %v1090_v21 = vadd.f32 %v1089_v43, %v4485_v62  ;;  %v1103_v47 = vadd.f32 %v1102_v30, %v4487_v11 }
 0x192   :  { %v1119_v26 = vadd.f32 %v1090_v21, %v869_v59  ;;  %v1139_v35 = vadd.f32 %v1103_v47, %v882_v38 }
 0x194   :  { %v3306_v15 = vmul.f32 -1.442695, %v1119_v26  ;;  %v3307_v4 = vmul.f32 -1.442695, %v1139_v35  ;;  %v5460_v26 = vld [vmem:[#allocation69_spill] sm:$0xff] }
 0x196   :  { %3561 = vpow2.f32 %v3306_v15  ;;  %v1115_v22 = vpop.f32.mrf.mxu2  ;;  %v1178_v13 = vpop.f32.mrf.mxu3 }
 0x197   :  { %3563 = vpow2.f32 %v3307_v4  ;;  %v1179_v18 = vadd.f32 %v1178_v13, %v5459_v3  ;;  %v1091_v51 = vpop.f32.mrf.mxu0  ;;  %v1104_v28 = vpop.f32.mrf.mxu1  ;;  %v396_v13 = vadd.f32 %v4362_v42, %v5460_v26  ;;  %v4505_v42 = vperm.slane %v547_v31, 2 }
 0x198   :  { %v5461_v51 = vld [vmem:[#allocation70_spill] sm:$0xff] }
 0x199   :  { %v1247_v44 = vadd.f32 %v1179_v18, %v367_v33  ;;  %5462 = vst [vmem:[#allocation47_spill] sm:$0xff] %v4505_v42 }
 0x19b   :  { %v3326_v9 = vmul.f32 -1.442695, %v1247_v44 }
 0x19c   :  { %v3562_v43 = vpop.eup %3561 }
 0x19d   :  { %v3564_v62 = vpop.eup %3563  ;;  %v1123_v30 = vadd.f32 1.0, %v3562_v43  ;;  %3565 = vpow2.f32 %v3326_v9 }
 0x19e   :  { %v4496_v47 = vadd.f32 1.0, %v3564_v62  ;;  %v1117_v35 = vpop.f32.mrf.mxu2  ;;  %v1180_v59 = vpop.f32.mrf.mxu3 }
 0x19f   :  { %3567 = vrcp.f32 %v1123_v30  ;;  %v1191_v15 = vpop.f32.mrf.mxu0  ;;  %v1204_v38 = vpop.f32.mrf.mxu1  ;;  %vm1129_vm14 = vweird.f32 %v1123_v30 }
 0x1a0   :  { %3569 = vrcp.f32 %v4496_v47  ;;  %v1192_v21 = vadd.f32 %v1191_v15, %v5461_v51  ;;  %v1135_v15 = vand.u32 2147483648, %v1123_v30  ;;  %vm1149_vm0 = vweird.f32 %v4496_v47 }
 0x1a2   :  { %v1267_v4 = vadd.f32 %v1192_v21, %v396_v13  ;;  %v1133_v13 = vand.u32 2147483647, %v1123_v30  ;;  %v1136_v6 = vor.u32 1.1754944e-38, %v1135_v15 }
 0x1a3   :  { %v3566_v18 = vpop.eup %3565 }
 0x1a4   :  { %v1251_v33 = vadd.f32 1.0, %v3566_v18  ;;  %v3327_v28 = vmul.f32 -1.442695, %v1267_v4  ;;  %vm1134_vm1 = vcmp.eq.f32.partialorder %v1133_v13, 8.507059e+37 }
 0x1a5   :  { %v3568_v17 = vpop.eup %3567 }
 0x1a6   :  { %v3570_v9 = vpop.eup %3569  ;;  %v1125_v62 = vmul.f32 %v3568_v17, %v1123_v30  ;;  %3571 = vrcp.f32 %v1251_v33  ;;  %vm1130_vm13 = vweird.f32 %v3568_v17  ;;  %v1155_v30 = vand.u32 2147483648, %v4496_v47 }
 0x1a7   :  { %v1145_v44 = vmul.f32 %v3570_v9, %v4496_v47  ;;  %3573 = vpow2.f32 %v3327_v28  ;;  %v1193_v43 = vpop.f32.mrf.mxu0  ;;  %v1206_v35 = vpop.f32.mrf.mxu1  ;;  %v895_v28 = vadd.f32 %v4473_v56, %v4503_v63  ;;  %vm1131_vm15 = vmor %vm1129_vm14, %vm1130_vm13  ;;  %vm1150_vm2 = vweird.f32 %v3570_v9 }
 0x1a8   :  { %v1126_v59 = vsub.f32 1.0, %v1125_v62  ;;  %v1116_v43 = vadd.f32 %v1115_v22, %v4505_v42  ;;  %v1263_v3 = vand.u32 2147483648, %v1251_v33  ;;  %v1153_v56 = vand.u32 2147483647, %v4496_v47  ;;  %vm1151_vm4 = vmor %vm1149_vm0, %vm1150_vm2 }
 0x1a9   :  { %v1146_v11 = vsub.f32 1.0, %v1145_v44  ;;  %v1261_v15 = vand.u32 2147483647, %v1251_v33  ;;  %vm1257_vm5 = vweird.f32 %v1251_v33  ;;  %v425_v47 = vadd.f32 %v4403_v2, %v4343_v0 }
 0x1aa   :  { %v1127_v51 = vmul.f32 %v3568_v17, %v1126_v59  ;;  %vm1154_vm7 = vcmp.eq.f32.partialorder %v1153_v56, 8.507059e+37 }
 0x1ab   :  { %v1147_v21 = vmul.f32 %v3570_v9, %v1146_v11  ;;  %vm1262_vm8 = vcmp.eq.f32.partialorder %v1261_v15, 8.507059e+37 }
 0x1ac   :  { %v3572_v18 = vpop.eup %3571  ;;  %v1128_v4 = vadd.f32 %v3568_v17, %v1127_v51 }
 0x1ad   :  { %v3574_v26 = vpop.eup %3573  ;;  %v1253_v62 = vmul.f32 %v3572_v18, %v1251_v33  ;;  %v1148_v59 = vadd.f32 %v3570_v9, %v1147_v21  ;;  %vm1258_vm3 = vweird.f32 %v3572_v18  ;;  %v1156_v21 = vor.u32 1.1754944e-38, %v1155_v30 }
 0x1ae   :  { %v1132_v31 = vsel %vm1131_vm15, %v3568_v17, %v1128_v4  ;;  %v1271_v44 = vadd.f32 1.0, %v3574_v26  ;;  %vm1259_vm6 = vmor %vm1257_vm5, %vm1258_vm3  ;;  %v1264_v4 = vor.u32 1.1754944e-38, %v1263_v3 }
 0x1af   :  { %v1137_v35 = vsel %vm1134_vm1, %v1136_v6, %v1132_v31  ;;  %v1254_v11 = vsub.f32 1.0, %v1253_v62  ;;  %v1152_v13 = vsel %vm1151_vm4, %v3570_v9, %v1148_v59 }
 0x1b0   :  { %v1159_v51 = vmul.f32 %v1137_v35, %v895_v28  ;;  %3575 = vrcp.f32 %v1271_v44  ;;  %v1205_v28 = vadd.f32 %v1204_v38, %v4346_v48  ;;  %v1157_v31 = vsel %vm1154_vm7, %v1156_v21, %v1152_v13 }
 0x1b1   :  { %v1255_v22 = vmul.f32 %v3572_v18, %v1254_v11  ;;  %v1162_v9 = vsub.f32 1.0, %v1157_v31  ;;  %v1281_v3 = vand.u32 2147483647, %v1271_v44  ;;  %vm1277_vm10 = vweird.f32 %v1271_v44 }
 0x1b2   :  { %v1160_v17 = vadd.f32 %v1159_v51, %v1116_v43  ;;  %v1164_v51 = vmul.f32 0.0, %v1157_v31 }
 0x1b3   :  { %v1256_v26 = vadd.f32 %v3572_v18, %v1255_v22  ;;  %v1283_v22 = vand.u32 2147483648, %v1271_v44  ;;  %vm1282_vm14 = vcmp.eq.f32.partialorder %v1281_v3, 8.507059e+37 }
 0x1b4   :  { %3577 = vtanh.f32 %v1160_v17 }
 0x1b5   :  { %v1260_v6 = vsel %vm1259_vm6, %v3572_v18, %v1256_v26  ;;  %v1284_v15 = vor.u32 1.1754944e-38, %v1283_v22  ;;  %v5470_v22 = vld [vmem:[#allocation34_spill] sm:$0xff] }
 0x1b6   :  { %v3576_v62 = vpop.eup %3575  ;;  %v1265_v35 = vsel %vm1262_vm8, %v1264_v4, %v1260_v6  ;;  %v5464_v6 = vld [vmem:[#allocation28_spill] sm:$0xff] }
 0x1b7   :  { %v1273_v11 = vmul.f32 %v3576_v62, %v1271_v44  ;;  %v1287_v43 = vmul.f32 %v1265_v35, %v1205_v28  ;;  %vm1278_vm9 = vweird.f32 %v3576_v62  ;;  %v4529_v44 = vld [vmem:[%s5206_s1] sm:$0xff]  ;;  %v950_v28 = vsel %vm949_vm11, %v4376_v40, 0.0  ;;  %v5466_v40 = vld [vmem:[#allocation30_spill] sm:$0xff] }
 0x1b8   :  { %vm1279_vm13 = vmor %vm1277_vm10, %vm1278_vm9  ;;  %5463 = vst [vmem:[#allocation97_spill] sm:$0xff] %v4529_v44  ;;  %vm1388_vm15 = vcmp.gt.s32.totalorder %v4529_v44, 2  ;;  %vm1609_vm0 = vcmp.gt.s32.totalorder %v4529_v44, 3 }
 0x1b9   :  { %v1274_v59 = vsub.f32 1.0, %v1273_v11  ;;  %v1288_v33 = vadd.f32 %v1287_v43, %v425_v47  ;;  %v4541_v11 = vpop.permute.xlu0 %1296 }
 0x1ba   :  { %v3578_v30 = vpop.eup %3577  ;;  %vm1298_vm1 = vcmp.eq.s32.totalorder %v4541_v11, 1 }
 0x1bb   :  { %v1163_v56 = vmul.f32 %v3578_v30, %v1162_v9  ;;  %v1275_v17 = vmul.f32 %v3576_v62, %v1274_v59  ;;  %3579 = vtanh.f32 %v1288_v33  ;;  %v5467_v33 = vld [vmem:[#allocation41_spill] sm:$0xff]  ;;  %v5468_v30 = vld [vmem:[#allocation32_spill] sm:$0xff] }
 0x1bd   :  { %v4518_v38 = vadd.f32 %v1164_v51, %v1163_v56  ;;  %v1276_v18 = vadd.f32 %v3576_v62, %v1275_v17  ;;  %v5469_v51 = vld [vmem:[#allocation42_spill] sm:$0xff]  ;;  %v5471_v56 = vld [vmem:[#allocation36_spill] sm:$0xff] }
 0x1be   :  { %v5472_v17 = vld [vmem:[#allocation54_spill] sm:$0xff] }
 0x1bf   :  { %v1280_v2 = vsel %vm1279_vm13, %v3576_v62, %v1276_v18  ;;  %v3318_v13 = vpack.c.bf16 %v4518_v38, %v4518_v38  ;;  %v5465_v62 = vmov 0   ;;  %v5473_v18 = vld [vmem:[#allocation56_spill] sm:$0xff] }
 0x1c0   :  { %v1285_v26 = vsel %vm1282_vm14, %v1284_v15, %v1280_v2  ;;  %v1515_v31 = vsel %vm1388_vm15, 1, %v5465_v62  ;;  %v1736_v59 = vsel %vm1609_vm0, 1, %v5465_v62  ;;  %v5474_v15 = vld [vmem:[#allocation20_spill] sm:$0xff] }
 0x1c1   :  { %v3580_v21 = vpop.eup %3579  ;;  %v1290_v4 = vsub.f32 1.0, %v1285_v26  ;;  %3319 = vmatmul.msk.bf16.vlgmr.msrb.gmra.mxu2 %vm4382_vm12, %v3318_v13  ;;  %3322 = vmatmul.msk.bf16.vlgmr.msra.gmra.mxu3 %vm4382_vm12, %v3318_v13  ;;  %v1292_v47 = vmul.f32 %v1285_v26, %v950_v28  ;;  %v5475_v2 = vld [vmem:[#allocation68_spill] sm:$0xff] }
 0x1c2   :  { %3325 = vmatmul.msk.bf16.vlgmr.msra.gmra.mxu0 %vm4382_vm12, %v3318_v13  ;;  %1416 = vmatpush.bf16.msrb.mxu2 %v5464_v6  ;;  %vm2493_vm12 = vcmp.gt.s32.totalorder %v4529_v44, 7  ;;  %v5476_v13 = vld [vmem:[#allocation59_spill] sm:$0xff]  ;;  %v5477_v26 = vld [vmem:[#allocation60_spill] sm:$0xff]  ;;  %v5489_v44 = vld [vmem:[#allocation73_spill] sm:$0xff] }
 0x1c3   :  { %v1291_v35 = vmul.f32 %v3580_v21, %v1290_v4  ;;  %1517 = vperm.xlu1 %3548, %v1515_v31   ;;  %1429 = vmatpush.bf16.msra.mxu3 %v4119_v49  ;;  %v2620_v3 = vsel %vm2493_vm12, 1, %v5465_v62  ;;  %v5478_v21 = vld [vmem:[#allocation21_spill] sm:$0xff]  ;;  %v5479_v4 = vld [vmem:[#allocation74_spill] sm:$0xff]  ;;  %v5481_v31 = vld [vmem:[#allocation64_spill] sm:$0xff] }
 0x1c4   :  { %1442 = vmatpush.bf16.msra.mxu0 %v4130_v1  ;;  %v5488_v62 = vld [vmem:[#allocation72_spill] sm:$0xff] }
 0x1c5   :  { %v1293_v43 = vadd.f32 %v1292_v47, %v1291_v35  ;;  %v5482_v35 = vld [vmem:[#allocation22_spill] sm:$0xff] }
 0x1c6   :  { %1417 = vmatpush.bf16.msrb.mxu2 %v5466_v40  ;;  %v5483_v47 = vld [vmem:[#allocation78_spill] sm:$0xff] }
 0x1c7   :  { %v4548_v60 = vsel %vm1298_vm1, %v1293_v43, %v950_v28  ;;  %1430 = vmatpush.bf16.msra.mxu3 %v4122_v52  ;;  %v5480_v28 = vld [vmem:[#allocation62_spill] sm:$0xff] }
 0x1c8   :  { %v1300_v9 = vpack.c.bf16 %v4548_v60, %v4548_v60  ;;  %1443 = vmatpush.bf16.msra.mxu0 %v5467_v33  ;;  %v5484_v43 = vld [vmem:[#allocation66_spill] sm:$0xff] }
 0x1ca   :  { %1309 = vmatmul.bf16.vlgmr.msra.gmra.mxu1 %v1300_v9  ;;  %1418 = vmatpush.bf16.msrb.mxu2 %v5468_v30 }
 0x1cb   :  { %1738 = vperm.xlu1 %3548, %v1736_v59   ;;  %1431 = vmatpush.bf16.msra.mxu3 %v4125_v57  ;;  %v5486_v59 = vld [vmem:[#allocation23_spill] sm:$0xff] }
 0x1cc   :  { %1455 = vmatpush.bf16.msra.mxu1 %v4133_v5  ;;  %1444 = vmatpush.bf16.msra.mxu0 %v5469_v51 }
 0x1ce   :  { %1419 = vmatpush.bf16.msrb.mxu2 %v5470_v22 }
 0x1cf   :  { %1432 = vmatpush.bf16.msra.mxu3 %v4128_v61 }
 0x1d0   :  { %1456 = vmatpush.bf16.msra.mxu1 %v4141_v24  ;;  %1445 = vmatpush.bf16.msra.mxu0 %v4167_v58 }
 0x1d1   :  { %1322 = vmatmul.bf16.vlgmr.msra.gmra.mxu2 %v1300_v9  ;;  %1335 = vmatmul.bf16.vlgmr.msrb.gmra.mxu3 %v1300_v9 }
 0x1d2   :  { %1398 = vmatmul.bf16.vlgmr.msrb.gmra.mxu0 %v1300_v9  ;;  %1420 = vmatpush.bf16.msrb.mxu2 %v5471_v56 }
 0x1d3   :  { %2622 = vperm.xlu1 %3548, %v2620_v3   ;;  %1433 = vmatpush.bf16.msra.mxu3 %v4137_v14  ;;  %v5487_v3 = vld [vmem:[#allocation79_spill] sm:$0xff] }
 0x1d4   :  { %1457 = vmatpush.bf16.msra.mxu1 %v5425_v39  ;;  %1446 = vmatpush.bf16.msra.mxu0 %v4182_v25 }
 0x1d6   :  { %1421 = vmatpush.bf16.msrb.mxu2 %v4091_v16 }
 0x1d7   :  { %1434 = vmatpush.bf16.msra.mxu3 %v4144_v32 }
 0x1d8   :  { %1458 = vmatpush.bf16.msra.mxu1 %v5431_v45  ;;  %1447 = vmatpush.bf16.msra.mxu0 %v4199_v19 }
 0x1da   :  { %1411 = vmatmul.bf16.vlgmr.msrb.gmra.mxu1 %v1300_v9  ;;  %1422 = vmatpush.bf16.msrb.mxu2 %v4097_v29 }
 0x1db   :  { %1435 = vmatpush.bf16.msra.mxu3 %v4165_v50 }
 0x1dc   :  { %1459 = vmatpush.bf16.msra.mxu1 %v5434_v7  ;;  %1448 = vmatpush.bf16.msra.mxu0 %v4212_v20 }
 0x1de   :  { %1423 = vmatpush.bf16.msrb.mxu2 %v4103_v37 }
 0x1df   :  { %1436 = vmatpush.bf16.msra.mxu3 %v4180_v8 }
 0x1e0   :  { %1460 = vmatpush.bf16.msra.mxu1 %v5438_v12  ;;  %1449 = vmatpush.bf16.msra.mxu0 %v4227_v27 }
 0x1e1   :  { %1424 = vmatmul.bf16.vlgmr.msrb.gmra.mxu2 %v1300_v9  ;;  %v5485_v9 = vld [vmem:[#allocation67_spill] sm:$0xff] }
 0x1e2   :  { %1522 = vmatpush.bf16.msra.mxu2 %v4189_v46 }
 0x1e3   :  { %1535 = vmatpush.bf16.msrb.mxu3 %v4193_v54 }
 0x1e4   :  { %1548 = vmatpush.bf16.msrb.mxu0 %v4238_v10  ;;  %1461 = vmatpush.bf16.msra.mxu1 %v5442_v23  ;;  %v5510_v10 = vld [vmem:[#allocation93_spill] sm:$0xff] }
 0x1e6   :  { %1523 = vmatpush.bf16.msra.mxu2 %v4203_v34 }
 0x1e7   :  { %1536 = vmatpush.bf16.msrb.mxu3 %v4207_v36 }
 0x1e8   :  { %1549 = vmatpush.bf16.msrb.mxu0 %v5424_v55  ;;  %1462 = vmatpush.bf16.msra.mxu1 %v5443_v53  ;;  %v5508_v55 = vld [vmem:[#allocation46_spill] sm:$0xff] }
 0x1ea   :  { %1524 = vmatpush.bf16.msra.mxu2 %v5472_v17 }
 0x1eb   :  { %1537 = vmatpush.bf16.msrb.mxu3 %v5473_v18 }
 0x1ec   :  { %1611 = vmatpush.bf16.msrb.mxu1 %v5474_v15  ;;  %1550 = vmatpush.bf16.msrb.mxu0 %v5475_v2  ;;  %v5509_v15 = vld [vmem:[#allocation55_spill] sm:$0xff] }
 0x1ee   :  { %1525 = vmatpush.bf16.msra.mxu2 %v5476_v13 }
 0x1ef   :  { %1538 = vmatpush.bf16.msrb.mxu3 %v5477_v26 }
 0x1f0   :  { %1612 = vmatpush.bf16.msrb.mxu1 %v5478_v21  ;;  %1551 = vmatpush.bf16.msrb.mxu0 %v5479_v4  ;;  %v5490_v4 = vld [vmem:[#allocation24_spill] sm:$0xff] }
 0x1f2   :  { %1526 = vmatpush.bf16.msra.mxu2 %v5480_v28  ;;  %v5491_v28 = vld [vmem:[#allocation80_spill] sm:$0xff] }
 0x1f3   :  { %1539 = vmatpush.bf16.msrb.mxu3 %v5481_v31  ;;  %v5492_v31 = vld [vmem:[#allocation75_spill] sm:$0xff] }
 0x1f4   :  { %1613 = vmatpush.bf16.msrb.mxu1 %v5482_v35  ;;  %1552 = vmatpush.bf16.msrb.mxu0 %v5483_v47  ;;  %v5493_v35 = vld [vmem:[#allocation29_spill] sm:$0xff]  ;;  %v5494_v47 = vld [vmem:[#allocation76_spill] sm:$0xff] }
 0x1f6   :  { %1527 = vmatpush.bf16.msra.mxu2 %v5484_v43  ;;  %v5495_v43 = vld [vmem:[#allocation25_spill] sm:$0xff] }
 0x1f7   :  { %1540 = vmatpush.bf16.msrb.mxu3 %v5485_v9  ;;  %v5496_v9 = vld [vmem:[#allocation82_spill] sm:$0xff] }
 0x1f8   :  { %1614 = vmatpush.bf16.msrb.mxu1 %v5486_v59  ;;  %1553 = vmatpush.bf16.msrb.mxu0 %v5487_v3  ;;  %v5497_v59 = vld [vmem:[#allocation31_spill] sm:$0xff]  ;;  %v5498_v3 = vld [vmem:[#allocation26_spill] sm:$0xff] }
 0x1fa   :  { %1528 = vmatpush.bf16.msra.mxu2 %v5488_v62  ;;  %v5499_v62 = vld [vmem:[#allocation33_spill] sm:$0xff] }
 0x1fb   :  { %1541 = vmatpush.bf16.msrb.mxu3 %v5489_v44  ;;  %v5500_v44 = vld [vmem:[#allocation27_spill] sm:$0xff] }
 0x1fc   :  { %1615 = vmatpush.bf16.msrb.mxu1 %v5490_v4  ;;  %1554 = vmatpush.bf16.msrb.mxu0 %v5491_v28  ;;  %v5501_v4 = vld [vmem:[#allocation35_spill] sm:$0xff]  ;;  %v5502_v28 = vld [vmem:[#allocation37_spill] sm:$0xff] }
 0x1fe   :  { %1529 = vmatpush.bf16.msra.mxu2 %v5492_v31  ;;  %v5503_v31 = vld [vmem:[#allocation38_spill] sm:$0xff] }
 0x1ff   :  { %1542 = vmatpush.bf16.msrb.mxu3 %v5494_v47  ;;  %v5505_v47 = vld [vmem:[#allocation40_spill] sm:$0xff] }
 0x200   :  { %1616 = vmatpush.bf16.msrb.mxu1 %v5495_v43  ;;  %1555 = vmatpush.bf16.msrb.mxu0 %v5496_v9 }
 0x202   :  { %1624 = vmatpush.bf16.msrb.mxu2 %v5493_v35  ;;  %v5504_v35 = vld [vmem:[#allocation39_spill] sm:$0xff] }
 0x204   :  { %1617 = vmatpush.bf16.msrb.mxu1 %v5498_v3  ;;  %v5506_v3 = vld [vmem:[#allocation94_spill] sm:$0xff] }
 0x206   :  { %1625 = vmatpush.bf16.msrb.mxu2 %v5497_v59 }
 0x208   :  { %1618 = vmatpush.bf16.msrb.mxu1 %v5500_v44 }
 0x20a   :  { %1626 = vmatpush.bf16.msrb.mxu2 %v5499_v62  ;;  %v5507_v62 = vld [vmem:[#allocation95_spill] sm:$0xff] }
 0x20e   :  { %1627 = vmatpush.bf16.msrb.mxu2 %v5501_v4 }
 0x212   :  { %1628 = vmatpush.bf16.msrb.mxu2 %v5502_v28 }
 0x216   :  { %1629 = vmatpush.bf16.msrb.mxu2 %v5503_v31 }
 0x21a   :  { %1630 = vmatpush.bf16.msrb.mxu2 %v5504_v35 }
 0x21e   :  { %1631 = vmatpush.bf16.msrb.mxu2 %v5505_v47 }
 0x23f   :  { %v1243_v43 = vpop.f32.mrf.mxu0 }
 0x244   :  { %v1217_v9 = vpop.f32.mrf.mxu2  ;;  %v1230_v26 = vpop.f32.mrf.mxu3 }
 0x245   :  { %v1218_v2 = vadd.f32 %v1217_v9, %v5506_v3  ;;  %v1231_v27 = vadd.f32 %v1230_v26, %v5510_v10  ;;  %v5511_v3 = vld [vmem:[#allocation96_spill] sm:$0xff] }
 0x247   :  { %v1245_v59 = vpop.f32.mrf.mxu0  ;;  %v1310_v13 = vpop.f32.mrf.mxu1 }
 0x248   :  { %v1311_v21 = vadd.f32 %v1310_v13, %v5507_v62 }
 0x24a   :  { %v1340_v44 = vadd.f32 %v1311_v21, %v1218_v2  ;;  %v5512_v2 = vld [vmem:[#allocation69_spill] sm:$0xff]  ;;  %v5513_v21 = vld [vmem:[#allocation84_spill] sm:$0xff] }
 0x24c   :  { %v3328_v18 = vmul.f32 -1.442695, %v1340_v44  ;;  %v1219_v4 = vpop.f32.mrf.mxu2  ;;  %v1232_v17 = vpop.f32.mrf.mxu3 }
 0x24d   :  { %v399_v4 = vadd.f32 %v5513_v21, %v5512_v2 }
 0x24e   :  { %3581 = vpow2.f32 %v3328_v18 }
 0x24f   :  { %v1312_v28 = vpop.f32.mrf.mxu1  ;;  %v1399_v31 = vpop.f32.mrf.mxu0 }
 0x250   :  { %v1400_v35 = vadd.f32 %v1399_v31, %v5508_v55  ;;  %v5514_v28 = vld [vmem:[#allocation70_spill] sm:$0xff] }
 0x252   :  { %v1468_v47 = vadd.f32 %v1400_v35, %v5509_v15 }
 0x254   :  { %v3582_v53 = vpop.eup %3581  ;;  %v3330_v36 = vmul.f32 -1.442695, %v1468_v47  ;;  %v1323_v34 = vpop.f32.mrf.mxu2 }
 0x255   :  { %v1336_v59 = vpop.f32.mrf.mxu3  ;;  %v1344_v9 = vadd.f32 1.0, %v3582_v53  ;;  %v1324_v13 = vadd.f32 %v1323_v34, %v5511_v3 }
 0x256   :  { %3583 = vpow2.f32 %v3330_v36  ;;  %v1337_v2 = vadd.f32 %v1336_v59, %v4505_v42 }
 0x257   :  { %3585 = vrcp.f32 %v1344_v9  ;;  %v1360_v44 = vadd.f32 %v1324_v13, %v1231_v27  ;;  %v1401_v17 = vpop.f32.mrf.mxu0  ;;  %v1412_v18 = vpop.f32.mrf.mxu1  ;;  %vm1350_vm3 = vweird.f32 %v1344_v9 }
 0x258   :  { %v1413_v31 = vadd.f32 %v1412_v18, %v5514_v28  ;;  %v1356_v17 = vand.u32 2147483648, %v1344_v9  ;;  %v1354_v18 = vand.u32 2147483647, %v1344_v9 }
 0x259   :  { %v3329_v15 = vmul.f32 -1.442695, %v1360_v44 }
 0x25a   :  { %v1488_v35 = vadd.f32 %v1413_v31, %v399_v4  ;;  %vm1355_vm5 = vcmp.eq.f32.partialorder %v1354_v18, 8.507059e+37 }
 0x25b   :  { %3587 = vpow2.f32 %v3329_v15  ;;  %v1357_v15 = vor.u32 1.1754944e-38, %v1356_v17 }
 0x25c   :  { %v3584_v47 = vpop.eup %3583  ;;  %v3331_v55 = vmul.f32 -1.442695, %v1488_v35  ;;  %v1325_v62 = vpop.f32.mrf.mxu2 }
 0x25d   :  { %v1338_v26 = vpop.f32.mrf.mxu3  ;;  %v3586_v53 = vpop.eup %3585  ;;  %v1472_v10 = vadd.f32 1.0, %v3584_v47 }
 0x25e   :  { %v1346_v34 = vmul.f32 %v3586_v53, %v1344_v9  ;;  %3589 = vpow2.f32 %v3331_v55  ;;  %vm1351_vm2 = vweird.f32 %v3586_v53  ;;  %v1244_v55 = vadd.f32 %v1243_v43, %v4503_v63 }
 0x25f   :  { %3591 = vrcp.f32 %v1472_v10  ;;  %v1414_v36 = vpop.f32.mrf.mxu1  ;;  %vm1352_vm4 = vmor %vm1350_vm3, %vm1351_vm2  ;;  %v1482_v9 = vand.u32 2147483647, %v1472_v10  ;;  %vm1478_vm7 = vweird.f32 %v1472_v10 }
 0x260   :  { %v1347_v27 = vsub.f32 1.0, %v1346_v34 }
 0x261   :  { %v3588_v13 = vpop.eup %3587  ;;  %vm1483_vm9 = vcmp.eq.f32.partialorder %v1482_v9, 8.507059e+37 }
 0x262   :  { %v1364_v3 = vadd.f32 1.0, %v3588_v13  ;;  %v1348_v21 = vmul.f32 %v3586_v53, %v1347_v27  ;;  %v1484_v13 = vand.u32 2147483648, %v1472_v10 }
 0x264   :  { %v3590_v44 = vpop.eup %3589  ;;  %3593 = vrcp.f32 %v1364_v3  ;;  %v1349_v4 = vadd.f32 %v3586_v53, %v1348_v21  ;;  %v1425_v31 = vpop.f32.mrf.mxu2  ;;  %v1376_v18 = vand.u32 2147483648, %v1364_v3  ;;  %v1374_v59 = vand.u32 2147483647, %v1364_v3 }
 0x265   :  { %v3592_v62 = vpop.eup %3591  ;;  %v1492_v35 = vadd.f32 1.0, %v3590_v44  ;;  %vm1370_vm13 = vweird.f32 %v1364_v3 }
 0x266   :  { %v1353_v47 = vsel %vm1352_vm4, %v3586_v53, %v1349_v4  ;;  %v1474_v26 = vmul.f32 %v3592_v62, %v1472_v10  ;;  %vm1479_vm6 = vweird.f32 %v3592_v62  ;;  %v1485_v4 = vor.u32 1.1754944e-38, %v1484_v13 }
 0x267   :  { %v1358_v34 = vsel %vm1355_vm5, %v1357_v15, %v1353_v47  ;;  %3595 = vrcp.f32 %v1492_v35  ;;  %vm1480_vm8 = vmor %vm1478_vm7, %vm1479_vm6  ;;  %vm1375_vm0 = vcmp.eq.f32.partialorder %v1374_v59, 8.507059e+37  ;;  %vm1498_vm12 = vweird.f32 %v1492_v35 }
 0x268   :  { %v1380_v36 = vmul.f32 %v1358_v34, %v1244_v55  ;;  %v1475_v27 = vsub.f32 1.0, %v1474_v26  ;;  %v1426_v55 = vadd.f32 %v1425_v31, %v4346_v48  ;;  %v1502_v31 = vand.u32 2147483647, %v1492_v35 }
 0x26a   :  { %v3594_v28 = vpop.eup %3593  ;;  %v1476_v21 = vmul.f32 %v3592_v62, %v1475_v27  ;;  %v1381_v54 = vadd.f32 %v1380_v36, %v1337_v2  ;;  %v5515_v27 = vld [vmem:[#allocation43_spill] sm:$0xff]  ;;  %vm1503_vm3 = vcmp.eq.f32.partialorder %v1502_v31, 8.507059e+37  ;;  %v5524_v31 = vld [vmem:[#allocation65_spill] sm:$0xff] }
 0x26b   :  { %v1366_v23 = vmul.f32 %v3594_v28, %v1364_v3  ;;  %vm1371_vm10 = vweird.f32 %v3594_v28  ;;  %v428_v2 = vadd.f32 %v5515_v27, %v4343_v0  ;;  %v1166_v3 = vsel %vm949_vm11, %v4518_v38, 0.0 }
 0x26c   :  { %v1477_v17 = vadd.f32 %v3592_v62, %v1476_v21  ;;  %v1427_v44 = vpop.f32.mrf.mxu2  ;;  %3597 = vtanh.f32 %v1381_v54  ;;  %v1377_v21 = vor.u32 1.1754944e-38, %v1376_v18  ;;  %vm1372_vm14 = vmor %vm1370_vm13, %vm1371_vm10 }
 0x26d   :  { %v3596_v43 = vpop.eup %3595  ;;  %v1367_v53 = vsub.f32 1.0, %v1366_v23  ;;  %v1504_v44 = vand.u32 2147483648, %v1492_v35 }
 0x26e   :  { %v1494_v15 = vmul.f32 %v3596_v43, %v1492_v35  ;;  %v1481_v47 = vsel %vm1480_vm8, %v3592_v62, %v1477_v17  ;;  %vm1499_vm15 = vweird.f32 %v3596_v43 }
 0x26f   :  { %v1368_v26 = vmul.f32 %v3594_v28, %v1367_v53  ;;  %v1486_v34 = vsel %vm1483_vm9, %v1485_v4, %v1481_v47  ;;  %vm1500_vm2 = vmor %vm1498_vm12, %vm1499_vm15  ;;  %v1505_v54 = vor.u32 1.1754944e-38, %v1504_v44  ;;  %v5522_v44 = vld [vmem:[#allocation58_spill] sm:$0xff] }
 0x270   :  { %v1495_v10 = vsub.f32 1.0, %v1494_v15  ;;  %v1508_v36 = vmul.f32 %v1486_v34, %v1426_v55  ;;  %v4640_v34 = vpop.permute.xlu1 %1517 }
 0x271   :  { %v1369_v23 = vadd.f32 %v3594_v28, %v1368_v26  ;;  %vm1519_vm4 = vcmp.eq.s32.totalorder %v4640_v34, 1  ;;  %v5571_v34 = vmov 0  }
 0x272   :  { %v1509_v13 = vadd.f32 %v1508_v36, %v428_v2  ;;  %v1496_v42 = vmul.f32 %v3596_v43, %v1495_v10  ;;  %v3598_v4 = vpop.eup %3597  ;;  %v5517_v2 = vld [vmem:[#allocation53_spill] sm:$0xff] }
 0x273   :  { %v1373_v62 = vsel %vm1372_vm14, %v3594_v28, %v1369_v23  ;;  %v5518_v10 = vld [vmem:[#allocation57_spill] sm:$0xff]  ;;  %v5520_v23 = vld [vmem:[#allocation51_spill] sm:$0xff] }
 0x274   :  { %v1378_v9 = vsel %vm1375_vm0, %v1377_v21, %v1373_v62  ;;  %3599 = vtanh.f32 %v1509_v13  ;;  %v1497_v17 = vadd.f32 %v3596_v43, %v1496_v42  ;;  %v5519_v36 = vld [vmem:[#allocation61_spill] sm:$0xff]  ;;  %v5521_v21 = vld [vmem:[#allocation52_spill] sm:$0xff]  ;;  %v5525_v62 = vld [vmem:[#allocation54_spill] sm:$0xff] }
 0x275   :  { %v1383_v53 = vsub.f32 1.0, %v1378_v9  ;;  %v1385_v55 = vmul.f32 %v1378_v9, %v1166_v3  ;;  %v5523_v13 = vld [vmem:[#allocation20_spill] sm:$0xff] }
 0x276   :  { %v1501_v18 = vsel %vm1500_vm2, %v3596_v43, %v1497_v17  ;;  %v5526_v9 = vld [vmem:[#allocation56_spill] sm:$0xff]  ;;  %v5527_v17 = vld [vmem:[#allocation21_spill] sm:$0xff] }
 0x277   :  { %v1384_v15 = vmul.f32 %v3598_v4, %v1383_v53  ;;  %v1506_v47 = vsel %vm1503_vm3, %v1505_v54, %v1501_v18  ;;  %v5528_v53 = vld [vmem:[#allocation68_spill] sm:$0xff]  ;;  %v5529_v54 = vld [vmem:[#allocation59_spill] sm:$0xff]  ;;  %v5532_v18 = vld [vmem:[#allocation74_spill] sm:$0xff] }
 0x278   :  { %v1511_v26 = vsub.f32 1.0, %v1506_v47  ;;  %v1513_v35 = vmul.f32 %v1506_v47, %v4548_v60  ;;  %v5530_v4 = vld [vmem:[#allocation60_spill] sm:$0xff]  ;;  %v5535_v47 = vld [vmem:[#allocation23_spill] sm:$0xff] }
 0x279   :  { %v1386_v28 = vadd.f32 %v1385_v55, %v1384_v15  ;;  %v5533_v15 = vld [vmem:[#allocation62_spill] sm:$0xff]  ;;  %v5534_v55 = vld [vmem:[#allocation64_spill] sm:$0xff] }
 0x27a   :  { %v3600_v59 = vpop.eup %3599 }
 0x27b   :  { %v1512_v42 = vmul.f32 %v3600_v59, %v1511_v26  ;;  %v4645_v27 = vsel %vm1298_vm1, %v1386_v28, %v1166_v3  ;;  %v5531_v3 = vld [vmem:[#allocation22_spill] sm:$0xff]  ;;  %v5538_v59 = vld [vmem:[#allocation67_spill] sm:$0xff] }
 0x27c   :  { %v1389_v41 = vpack.c.bf16 %v4645_v27, %v4645_v27  ;;  %v5536_v26 = vld [vmem:[#allocation78_spill] sm:$0xff] }
 0x27d   :  { %v1514_v38 = vadd.f32 %v1513_v35, %v1512_v42  ;;  %v5537_v28 = vld [vmem:[#allocation66_spill] sm:$0xff]  ;;  %v5539_v42 = vld [vmem:[#allocation24_spill] sm:$0xff]  ;;  %v5540_v35 = vld [vmem:[#allocation79_spill] sm:$0xff] }
 0x27e   :  { %1437 = vmatmul.bf16.vlgmr.msra.gmra.mxu3 %v1389_v41  ;;  %1450 = vmatmul.bf16.vlgmr.msra.gmra.mxu0 %v1389_v41 }
 0x27f   :  { %v4653_v43 = vsel %vm1519_vm4, %v1514_v38, %v4548_v60  ;;  %1463 = vmatmul.bf16.vlgmr.msra.gmra.mxu1 %v1389_v41  ;;  %1637 = vmatpush.bf16.msra.mxu3 %v5464_v6  ;;  %v5516_v60 = vld [vmem:[#allocation49_spill] sm:$0xff]  ;;  %v5541_v41 = vld [vmem:[#allocation72_spill] sm:$0xff] }
 0x280   :  { %v1521_v11 = vpack.c.bf16 %v4653_v43, %v4653_v43  ;;  %1650 = vmatpush.bf16.msra.mxu0 %v4119_v49  ;;  %1663 = vmatpush.bf16.msra.mxu1 %v4130_v1  ;;  %v5542_v38 = vld [vmem:[#allocation73_spill] sm:$0xff] }
 0x282   :  { %1530 = vmatmul.bf16.vlgmr.msra.gmra.mxu2 %v1521_v11 }
 0x283   :  { %1638 = vmatpush.bf16.msra.mxu3 %v5466_v40  ;;  %1676 = vmatpush.bf16.msra.mxu2 %v4133_v5 }
 0x284   :  { %1651 = vmatpush.bf16.msra.mxu0 %v4122_v52  ;;  %1664 = vmatpush.bf16.msra.mxu1 %v5467_v33 }
 0x287   :  { %1639 = vmatpush.bf16.msra.mxu3 %v5468_v30  ;;  %1677 = vmatpush.bf16.msra.mxu2 %v4141_v24 }
 0x288   :  { %1652 = vmatpush.bf16.msra.mxu0 %v4125_v57  ;;  %1665 = vmatpush.bf16.msra.mxu1 %v5469_v51 }
 0x28b   :  { %1640 = vmatpush.bf16.msra.mxu3 %v5470_v22  ;;  %1678 = vmatpush.bf16.msra.mxu2 %v5425_v39 }
 0x28c   :  { %1653 = vmatpush.bf16.msra.mxu0 %v4128_v61  ;;  %1666 = vmatpush.bf16.msra.mxu1 %v4167_v58 }
 0x28e   :  { %1543 = vmatmul.bf16.vlgmr.msrb.gmra.mxu3 %v1521_v11  ;;  %1556 = vmatmul.bf16.vlgmr.msrb.gmra.mxu0 %v1521_v11 }
 0x28f   :  { %1619 = vmatmul.bf16.vlgmr.msrb.gmra.mxu1 %v1521_v11  ;;  %1641 = vmatpush.bf16.msra.mxu3 %v5471_v56 }
 0x290   :  { %1654 = vmatpush.bf16.msra.mxu0 %v4137_v14  ;;  %1679 = vmatpush.bf16.msra.mxu2 %v5431_v45 }
 0x291   :  { %1667 = vmatpush.bf16.msra.mxu1 %v4182_v25 }
 0x292   :  { %1632 = vmatmul.bf16.vlgmr.msrb.gmra.mxu2 %v1521_v11 }
 0x293   :  { %1642 = vmatpush.bf16.msra.mxu3 %v4091_v16 }
 0x294   :  { %1655 = vmatpush.bf16.msra.mxu0 %v4144_v32  ;;  %1680 = vmatpush.bf16.msra.mxu2 %v5434_v7 }
 0x295   :  { %1668 = vmatpush.bf16.msra.mxu1 %v4199_v19 }
 0x297   :  { %1643 = vmatpush.bf16.msra.mxu3 %v4097_v29 }
 0x298   :  { %1656 = vmatpush.bf16.msra.mxu0 %v4165_v50  ;;  %1681 = vmatpush.bf16.msra.mxu2 %v5438_v12 }
 0x299   :  { %1669 = vmatpush.bf16.msra.mxu1 %v4212_v20 }
 0x29b   :  { %1644 = vmatpush.bf16.msra.mxu3 %v4103_v37 }
 0x29c   :  { %1657 = vmatpush.bf16.msra.mxu0 %v4180_v8  ;;  %1682 = vmatpush.bf16.msra.mxu2 %v5517_v2 }
 0x29d   :  { %1670 = vmatpush.bf16.msra.mxu1 %v5518_v10 }
 0x29e   :  { %1645 = vmatmul.bf16.vlgmr.msra.gmra.mxu3 %v1521_v11  ;;  %v5543_v11 = vld [vmem:[#allocation25_spill] sm:$0xff] }
 0x29f   :  { %1743 = vmatpush.bf16.msrb.mxu3 %v4189_v46 }
 0x2a0   :  { %1756 = vmatpush.bf16.msrb.mxu0 %v5516_v60  ;;  %1683 = vmatpush.bf16.msra.mxu2 %v5522_v44 }
 0x2a1   :  { %1769 = vmatpush.bf16.msrb.mxu1 %v5519_v36 }
 0x2a3   :  { %1744 = vmatpush.bf16.msrb.mxu3 %v5520_v23  ;;  %v5563_v23 = vld [vmem:[#allocation93_spill] sm:$0xff] }
 0x2a4   :  { %1757 = vmatpush.bf16.msrb.mxu0 %v5521_v21  ;;  %1832 = vmatpush.bf16.msrb.mxu2 %v5523_v13 }
 0x2a5   :  { %1770 = vmatpush.bf16.msrb.mxu1 %v5524_v31 }
 0x2a7   :  { %1745 = vmatpush.bf16.msrb.mxu3 %v5525_v62 }
 0x2a8   :  { %1758 = vmatpush.bf16.msrb.mxu0 %v5526_v9  ;;  %1833 = vmatpush.bf16.msrb.mxu2 %v5527_v17  ;;  %v5560_v9 = vld [vmem:[#allocation45_spill] sm:$0xff] }
 0x2a9   :  { %1771 = vmatpush.bf16.msrb.mxu1 %v5528_v53 }
 0x2ab   :  { %1746 = vmatpush.bf16.msrb.mxu3 %v5529_v54  ;;  %v5559_v54 = vld [vmem:[#allocation95_spill] sm:$0xff] }
 0x2ac   :  { %1759 = vmatpush.bf16.msrb.mxu0 %v5530_v4  ;;  %1834 = vmatpush.bf16.msrb.mxu2 %v5531_v3  ;;  %v5558_v4 = vld [vmem:[#allocation94_spill] sm:$0xff] }
 0x2ad   :  { %1772 = vmatpush.bf16.msrb.mxu1 %v5532_v18 }
 0x2af   :  { %1747 = vmatpush.bf16.msrb.mxu3 %v5533_v15  ;;  %v5544_v15 = vld [vmem:[#allocation80_spill] sm:$0xff] }
 0x2b0   :  { %1760 = vmatpush.bf16.msrb.mxu0 %v5534_v55  ;;  %1835 = vmatpush.bf16.msrb.mxu2 %v5535_v47  ;;  %v5545_v55 = vld [vmem:[#allocation75_spill] sm:$0xff]  ;;  %v5546_v47 = vld [vmem:[#allocation29_spill] sm:$0xff] }
 0x2b1   :  { %1773 = vmatpush.bf16.msrb.mxu1 %v5536_v26  ;;  %v5547_v26 = vld [vmem:[#allocation76_spill] sm:$0xff] }
 0x2b3   :  { %1748 = vmatpush.bf16.msrb.mxu3 %v5537_v28  ;;  %v5548_v28 = vld [vmem:[#allocation26_spill] sm:$0xff] }
 0x2b4   :  { %1761 = vmatpush.bf16.msrb.mxu0 %v5538_v59  ;;  %1836 = vmatpush.bf16.msrb.mxu2 %v5539_v42  ;;  %v5549_v59 = vld [vmem:[#allocation82_spill] sm:$0xff]  ;;  %v5550_v42 = vld [vmem:[#allocation31_spill] sm:$0xff] }
 0x2b5   :  { %1774 = vmatpush.bf16.msrb.mxu1 %v5540_v35  ;;  %v5551_v35 = vld [vmem:[#allocation27_spill] sm:$0xff] }
 0x2b7   :  { %1749 = vmatpush.bf16.msrb.mxu3 %v5541_v41  ;;  %v5552_v41 = vld [vmem:[#allocation33_spill] sm:$0xff] }
 0x2b8   :  { %1762 = vmatpush.bf16.msrb.mxu0 %v5542_v38  ;;  %1837 = vmatpush.bf16.msrb.mxu2 %v5543_v11  ;;  %v5553_v38 = vld [vmem:[#allocation35_spill] sm:$0xff]  ;;  %v5554_v11 = vld [vmem:[#allocation37_spill] sm:$0xff] }
 0x2b9   :  { %1775 = vmatpush.bf16.msrb.mxu1 %v5544_v15  ;;  %v5555_v15 = vld [vmem:[#allocation38_spill] sm:$0xff] }
 0x2bb   :  { %1750 = vmatpush.bf16.msrb.mxu3 %v5545_v55  ;;  %v5556_v55 = vld [vmem:[#allocation39_spill] sm:$0xff] }
 0x2bc   :  { %1763 = vmatpush.bf16.msrb.mxu0 %v5547_v26  ;;  %1838 = vmatpush.bf16.msrb.mxu2 %v5548_v28 }
 0x2bd   :  { %1776 = vmatpush.bf16.msrb.mxu1 %v5549_v59 }
 0x2bf   :  { %1845 = vmatpush.bf16.msra.mxu3 %v5546_v47  ;;  %v5557_v47 = vld [vmem:[#allocation40_spill] sm:$0xff] }
 0x2c0   :  { %1839 = vmatpush.bf16.msrb.mxu2 %v5551_v35 }
 0x2c3   :  { %1846 = vmatpush.bf16.msra.mxu3 %v5550_v42 }
 0x2c7   :  { %1847 = vmatpush.bf16.msra.mxu3 %v5552_v41 }
 0x2cb   :  { %1848 = vmatpush.bf16.msra.mxu3 %v5553_v38 }
 0x2cf   :  { %1849 = vmatpush.bf16.msra.mxu3 %v5554_v11 }
 0x2d3   :  { %1850 = vmatpush.bf16.msra.mxu3 %v5555_v15 }
 0x2d7   :  { %1851 = vmatpush.bf16.msra.mxu3 %v5556_v55  ;;  %v5561_v55 = vld [vmem:[#allocation63_spill] sm:$0xff] }
 0x2d8   :  { %v372_v62 = vadd.f32 %v5561_v55, %v5560_v9  ;;  %v5566_v55 = vld [vmem:[#allocation85_spill] sm:$0xff] }
 0x2db   :  { %1852 = vmatpush.bf16.msra.mxu3 %v5557_v47  ;;  %v5562_v47 = vld [vmem:[#allocation46_spill] sm:$0xff] }
 0x2fb   :  { %v1451_v26 = vpop.f32.mrf.mxu0 }
 0x2fc   :  { %v1464_v28 = vpop.f32.mrf.mxu1 }
 0x301   :  { %v1438_v18 = vpop.f32.mrf.mxu3 }
 0x302   :  { %v1439_v35 = vadd.f32 %v1438_v18, %v5558_v4  ;;  %v1452_v18 = vadd.f32 %v1451_v26, %v5563_v23  ;;  %v5564_v4 = vld [vmem:[#allocation96_spill] sm:$0xff] }
 0x303   :  { %v1453_v59 = vpop.f32.mrf.mxu0 }
 0x304   :  { %v1466_v3 = vpop.f32.mrf.mxu1 }
 0x305   :  { %v1531_v42 = vpop.f32.mrf.mxu2 }
 0x306   :  { %v1532_v41 = vadd.f32 %v1531_v42, %v5559_v54  ;;  %v5565_v54 = vld [vmem:[#allocation69_spill] sm:$0xff] }
 0x307   :  { %v401_v9 = vadd.f32 %v5566_v55, %v5565_v54  ;;  %v5568_v54 = vld [vmem:[#allocation47_spill] sm:$0xff] }
 0x308   :  { %v1561_v53 = vadd.f32 %v1532_v41, %v1439_v35 }
 0x309   :  { %v1440_v38 = vpop.f32.mrf.mxu3 }
 0x30a   :  { %v3332_v17 = vmul.f32 -1.442695, %v1561_v53 }
 0x30b   :  { %v1557_v11 = vpop.f32.mrf.mxu0 }
 0x30c   :  { %3601 = vpow2.f32 %v3332_v17  ;;  %v1620_v15 = vpop.f32.mrf.mxu1  ;;  %v1558_v36 = vadd.f32 %v1557_v11, %v5568_v54 }
 0x30d   :  { %v1621_v31 = vadd.f32 %v1620_v15, %v5562_v47  ;;  %v1533_v13 = vpop.f32.mrf.mxu2 }
 0x30e   :  { %v5567_v13 = vld [vmem:[#allocation70_spill] sm:$0xff] }
 0x30f   :  { %v1689_v44 = vadd.f32 %v1621_v31, %v372_v62 }
 0x311   :  { %v3334_v59 = vmul.f32 -1.442695, %v1689_v44  ;;  %v1544_v3 = vpop.f32.mrf.mxu3 }
 0x312   :  { %v3602_v21 = vpop.eup %3601  ;;  %v1545_v42 = vadd.f32 %v1544_v3, %v5564_v4 }
 0x313   :  { %v1565_v35 = vadd.f32 1.0, %v3602_v21  ;;  %3603 = vpow2.f32 %v3334_v59  ;;  %v1559_v53 = vpop.f32.mrf.mxu0 }
 0x314   :  { %v1581_v41 = vadd.f32 %v1545_v42, %v1452_v18  ;;  %v1622_v17 = vpop.f32.mrf.mxu1 }
 0x315   :  { %3605 = vrcp.f32 %v1565_v35  ;;  %v1633_v38 = vpop.f32.mrf.mxu2  ;;  %v1577_v53 = vand.u32 2147483648, %v1565_v35  ;;  %vm1571_vm1 = vweird.f32 %v1565_v35 }
 0x316   :  { %v3333_v15 = vmul.f32 -1.442695, %v1581_v41  ;;  %v1634_v31 = vadd.f32 %v1633_v38, %v5567_v13  ;;  %v1575_v41 = vand.u32 2147483647, %v1565_v35 }
 0x318   :  { %3607 = vpow2.f32 %v3333_v15  ;;  %v1709_v44 = vadd.f32 %v1634_v31, %v401_v9  ;;  %v1578_v15 = vor.u32 1.1754944e-38, %v1577_v53  ;;  %vm1576_vm6 = vcmp.eq.f32.partialorder %v1575_v41, 8.507059e+37 }
 0x319   :  { %v3604_v62 = vpop.eup %3603  ;;  %v1546_v47 = vpop.f32.mrf.mxu3 }
 0x31a   :  { %v1693_v26 = vadd.f32 1.0, %v3604_v62  ;;  %v3335_v23 = vmul.f32 -1.442695, %v1709_v44  ;;  %v1465_v44 = vadd.f32 %v1464_v28, %v4503_v63 }
 0x31b   :  { %v3606_v3 = vpop.eup %3605 }
 0x31c   :  { %v1567_v21 = vmul.f32 %v3606_v3, %v1565_v35  ;;  %3609 = vrcp.f32 %v1693_v26  ;;  %vm1572_vm11 = vweird.f32 %v3606_v3  ;;  %vm1699_vm8 = vweird.f32 %v1693_v26 }
 0x31d   :  { %3611 = vpow2.f32 %v3335_v23  ;;  %v1635_v59 = vpop.f32.mrf.mxu2  ;;  %vm1573_vm5 = vmor %vm1571_vm1, %vm1572_vm11 }
 0x31e   :  { %v3608_v18 = vpop.eup %3607  ;;  %v1568_v42 = vsub.f32 1.0, %v1567_v21 }
 0x31f   :  { %v1585_v17 = vadd.f32 1.0, %v3608_v18 }
 0x320   :  { %v1569_v4 = vmul.f32 %v3606_v3, %v1568_v42  ;;  %v1705_v42 = vand.u32 2147483648, %v1693_v26 }
 0x321   :  { %3613 = vrcp.f32 %v1585_v17  ;;  %v1646_v38 = vpop.f32.mrf.mxu3  ;;  %v1597_v41 = vand.u32 2147483648, %v1585_v17  ;;  %v1595_v11 = vand.u32 2147483647, %v1585_v17  ;;  %vm1591_vm14 = vweird.f32 %v1585_v17 }
 0x322   :  { %v3610_v55 = vpop.eup %3609  ;;  %v1570_v9 = vadd.f32 %v3606_v3, %v1569_v4  ;;  %v1703_v4 = vand.u32 2147483647, %v1693_v26 }
 0x323   :  { %v3612_v47 = vpop.eup %3611  ;;  %v1695_v31 = vmul.f32 %v3610_v55, %v1693_v26  ;;  %vm1700_vm7 = vweird.f32 %v3610_v55  ;;  %v1598_v26 = vor.u32 1.1754944e-38, %v1597_v41  ;;  %vm1596_vm0 = vcmp.eq.f32.partialorder %v1595_v11, 8.507059e+37 }
 0x324   :  { %v1574_v23 = vsel %vm1573_vm5, %v3606_v3, %v1570_v9  ;;  %v1713_v62 = vadd.f32 1.0, %v3612_v47  ;;  %vm1701_vm9 = vmor %vm1699_vm8, %vm1700_vm7  ;;  %v1706_v3 = vor.u32 1.1754944e-38, %v1705_v42  ;;  %v1647_v9 = vadd.f32 %v1646_v38, %v4346_v48 }
 0x325   :  { %v1579_v21 = vsel %vm1576_vm6, %v1578_v15, %v1574_v23  ;;  %v1696_v59 = vsub.f32 1.0, %v1695_v31  ;;  %vm1704_vm10 = vcmp.eq.f32.partialorder %v1703_v4, 8.507059e+37  ;;  %v5569_v23 = vld [vmem:[#allocation44_spill] sm:$0xff] }
 0x326   :  { %v1601_v18 = vmul.f32 %v1579_v21, %v1465_v44  ;;  %3615 = vrcp.f32 %v1713_v62  ;;  %v430_v21 = vadd.f32 %v5569_v23, %v4343_v0  ;;  %v1725_v38 = vand.u32 2147483648, %v1713_v62 }
 0x327   :  { %v3614_v13 = vpop.eup %3613  ;;  %v1697_v10 = vmul.f32 %v3610_v55, %v1696_v59  ;;  %vm1719_vm2 = vweird.f32 %v1713_v62 }
 0x328   :  { %v1587_v35 = vmul.f32 %v3614_v13, %v1585_v17  ;;  %v1602_v2 = vadd.f32 %v1601_v18, %v1558_v36  ;;  %vm1592_vm13 = vweird.f32 %v3614_v13 }
 0x329   :  { %v1698_v53 = vadd.f32 %v3610_v55, %v1697_v10  ;;  %v1648_v60 = vpop.f32.mrf.mxu3  ;;  %vm1593_vm15 = vmor %vm1591_vm14, %vm1592_vm13 }
 0x32a   :  { %v1588_v28 = vsub.f32 1.0, %v1587_v35  ;;  %3617 = vtanh.f32 %v1602_v2 }
 0x32b   :  { %v1702_v47 = vsel %vm1701_vm9, %v3610_v55, %v1698_v53  ;;  %v1723_v55 = vand.u32 2147483647, %v1713_v62 }
 0x32c   :  { %v3616_v15 = vpop.eup %3615  ;;  %v1589_v31 = vmul.f32 %v3614_v13, %v1588_v28  ;;  %v1707_v44 = vsel %vm1704_vm10, %v1706_v3, %v1702_v47  ;;  %v1726_v3 = vor.u32 1.1754944e-38, %v1725_v38  ;;  %v5574_v38 = vld [vmem:[#allocation57_spill] sm:$0xff] }
 0x32d   :  { %v1715_v10 = vmul.f32 %v3616_v15, %v1713_v62  ;;  %v1729_v36 = vmul.f32 %v1707_v44, %v1647_v9  ;;  %vm1720_vm12 = vweird.f32 %v3616_v15  ;;  %vm1724_vm11 = vcmp.eq.f32.partialorder %v1723_v55, 8.507059e+37  ;;  %v5575_v55 = vld [vmem:[#allocation61_spill] sm:$0xff] }
 0x32e   :  { %v1590_v60 = vadd.f32 %v3614_v13, %v1589_v31  ;;  %vm1721_vm3 = vmor %vm1719_vm2, %vm1720_vm12 }
 0x32f   :  { %v1716_v59 = vsub.f32 1.0, %v1715_v10  ;;  %v1730_v18 = vadd.f32 %v1729_v36, %v430_v21  ;;  %v4753_v10 = vpop.permute.xlu1 %1738 }
 0x330   :  { %v1594_v42 = vsel %vm1593_vm15, %v3614_v13, %v1590_v60  ;;  %v3618_v28 = vpop.eup %3617  ;;  %vm1740_vm5 = vcmp.eq.s32.totalorder %v4753_v10, 1 }
 0x331   :  { %v1717_v4 = vmul.f32 %v3616_v15, %v1716_v59  ;;  %3619 = vtanh.f32 %v1730_v18  ;;  %v1599_v35 = vsel %vm1596_vm0, %v1598_v26, %v1594_v42  ;;  %v5572_v59 = vld [vmem:[#allocation49_spill] sm:$0xff]  ;;  %v5576_v42 = vld [vmem:[#allocation51_spill] sm:$0xff] }
 0x332   :  { %v1604_v53 = vsub.f32 1.0, %v1599_v35  ;;  %v1606_v17 = vmul.f32 %v1599_v35, %v4645_v27  ;;  %v5573_v18 = vld [vmem:[#allocation53_spill] sm:$0xff]  ;;  %v5578_v35 = vld [vmem:[#allocation58_spill] sm:$0xff] }
 0x333   :  { %v1718_v2 = vadd.f32 %v3616_v15, %v1717_v4  ;;  %v5577_v4 = vld [vmem:[#allocation52_spill] sm:$0xff] }
 0x334   :  { %v1605_v9 = vmul.f32 %v3618_v28, %v1604_v53  ;;  %v5579_v53 = vld [vmem:[#allocation20_spill] sm:$0xff]  ;;  %v5580_v28 = vld [vmem:[#allocation65_spill] sm:$0xff] }
 0x335   :  { %v1722_v41 = vsel %vm1721_vm3, %v3616_v15, %v1718_v2  ;;  %v5570_v15 = vld [vmem:[#allocation97_spill] sm:$0xff]  ;;  %v5581_v2 = vld [vmem:[#allocation54_spill] sm:$0xff] }
 0x336   :  { %v1727_v47 = vsel %vm1724_vm11, %v1726_v3, %v1722_v41  ;;  %v1607_v31 = vadd.f32 %v1606_v17, %v1605_v9  ;;  %vm1830_vm1 = vcmp.gt.s32.totalorder %v5570_v15, 4  ;;  %v5582_v3 = vld [vmem:[#allocation56_spill] sm:$0xff]  ;;  %v5583_v9 = vld [vmem:[#allocation21_spill] sm:$0xff]  ;;  %v5585_v41 = vld [vmem:[#allocation59_spill] sm:$0xff] }
 0x337   :  { %v3620_v11 = vpop.eup %3619  ;;  %v1732_v44 = vsub.f32 1.0, %v1727_v47  ;;  %v1734_v62 = vmul.f32 %v1727_v47, %v4653_v43  ;;  %v5584_v17 = vld [vmem:[#allocation68_spill] sm:$0xff] }
 0x338   :  { %v4748_v13 = vsel %vm1519_vm4, %v1607_v31, %v4645_v27  ;;  %v1957_v27 = vsel %vm1830_vm1, 1, %v5571_v34  ;;  %vm2051_vm4 = vcmp.gt.s32.totalorder %v5570_v15, 5  ;;  %v5586_v47 = vld [vmem:[#allocation60_spill] sm:$0xff]  ;;  %v5587_v31 = vld [vmem:[#allocation22_spill] sm:$0xff]  ;;  %v5594_v15 = vld [vmem:[#allocation67_spill] sm:$0xff] }
 0x339   :  { %v1733_v23 = vmul.f32 %v3620_v11, %v1732_v44  ;;  %v1610_v21 = vpack.c.bf16 %v4748_v13, %v4748_v13  ;;  %1959 = vperm.xlu2 %3549, %v1957_v27   ;;  %v5588_v11 = vld [vmem:[#allocation74_spill] sm:$0xff]  ;;  %v5596_v27 = vld [vmem:[#allocation79_spill] sm:$0xff] }
 0x33a   :  { %v5589_v44 = vld [vmem:[#allocation62_spill] sm:$0xff] }
 0x33b   :  { %v1735_v36 = vadd.f32 %v1734_v62, %v1733_v23  ;;  %1658 = vmatmul.bf16.vlgmr.msra.gmra.mxu0 %v1610_v21  ;;  %1671 = vmatmul.bf16.vlgmr.msra.gmra.mxu1 %v1610_v21  ;;  %v5590_v23 = vld [vmem:[#allocation64_spill] sm:$0xff]  ;;  %v5591_v62 = vld [vmem:[#allocation23_spill] sm:$0xff] }
 0x33c   :  { %1684 = vmatmul.bf16.vlgmr.msra.gmra.mxu2 %v1610_v21  ;;  %1858 = vmatpush.bf16.msra.mxu0 %v5464_v6  ;;  %v5592_v21 = vld [vmem:[#allocation78_spill] sm:$0xff] }
 0x33d   :  { %v4762_v60 = vsel %vm1740_vm5, %v1735_v36, %v4653_v43  ;;  %1871 = vmatpush.bf16.msra.mxu1 %v4119_v49  ;;  %1884 = vmatpush.bf16.msra.mxu2 %v4130_v1  ;;  %v2178_v43 = vsel %vm2051_vm4, 1, %v5571_v34  ;;  %v5593_v36 = vld [vmem:[#allocation66_spill] sm:$0xff]  ;;  %v5595_v34 = vld [vmem:[#allocation24_spill] sm:$0xff] }
 0x33e   :  { %v1742_v26 = vpack.c.bf16 %v4762_v60, %v4762_v60 }
 0x340   :  { %1751 = vmatmul.bf16.vlgmr.msrb.gmra.mxu3 %v1742_v26  ;;  %1859 = vmatpush.bf16.msra.mxu0 %v5466_v40 }
 0x341   :  { %1872 = vmatpush.bf16.msra.mxu1 %v4122_v52  ;;  %1897 = vmatpush.bf16.msrb.mxu3 %v4133_v5 }
 0x342   :  { %1885 = vmatpush.bf16.msra.mxu2 %v5467_v33  ;;  %2180 = vperm.xlu2 %3549, %v2178_v43   ;;  %v5598_v43 = vld [vmem:[#allocation73_spill] sm:$0xff] }
 0x344   :  { %1860 = vmatpush.bf16.msra.mxu0 %v5468_v30 }
 0x345   :  { %1873 = vmatpush.bf16.msra.mxu1 %v4125_v57  ;;  %1898 = vmatpush.bf16.msrb.mxu3 %v4141_v24 }
 0x346   :  { %1886 = vmatpush.bf16.msra.mxu2 %v5469_v51 }
 0x348   :  { %1861 = vmatpush.bf16.msra.mxu0 %v5470_v22 }
 0x349   :  { %1874 = vmatpush.bf16.msra.mxu1 %v4128_v61  ;;  %1899 = vmatpush.bf16.msrb.mxu3 %v5425_v39 }
 0x34a   :  { %1887 = vmatpush.bf16.msra.mxu2 %v4167_v58 }
 0x34b   :  { %1764 = vmatmul.bf16.vlgmr.msrb.gmra.mxu0 %v1742_v26  ;;  %1777 = vmatmul.bf16.vlgmr.msrb.gmra.mxu1 %v1742_v26 }
 0x34c   :  { %1840 = vmatmul.bf16.vlgmr.msrb.gmra.mxu2 %v1742_v26  ;;  %1862 = vmatpush.bf16.msra.mxu0 %v5471_v56 }
 0x34d   :  { %1875 = vmatpush.bf16.msra.mxu1 %v4137_v14  ;;  %1900 = vmatpush.bf16.msrb.mxu3 %v5431_v45 }
 0x34e   :  { %1888 = vmatpush.bf16.msra.mxu2 %v4182_v25 }
 0x350   :  { %1853 = vmatmul.bf16.vlgmr.msra.gmra.mxu3 %v1742_v26  ;;  %1863 = vmatpush.bf16.msra.mxu0 %v4091_v16 }
 0x351   :  { %1876 = vmatpush.bf16.msra.mxu1 %v4144_v32  ;;  %1901 = vmatpush.bf16.msrb.mxu3 %v5434_v7 }
 0x352   :  { %1889 = vmatpush.bf16.msra.mxu2 %v4199_v19 }
 0x354   :  { %1864 = vmatpush.bf16.msra.mxu0 %v4097_v29 }
 0x355   :  { %1877 = vmatpush.bf16.msra.mxu1 %v4165_v50  ;;  %1902 = vmatpush.bf16.msrb.mxu3 %v5438_v12 }
 0x356   :  { %1890 = vmatpush.bf16.msra.mxu2 %v4212_v20 }
 0x358   :  { %1865 = vmatpush.bf16.msra.mxu0 %v4103_v37 }
 0x359   :  { %1878 = vmatpush.bf16.msra.mxu1 %v4180_v8  ;;  %1903 = vmatpush.bf16.msrb.mxu3 %v5573_v18 }
 0x35a   :  { %1891 = vmatpush.bf16.msra.mxu2 %v5574_v38 }
 0x35b   :  { %1866 = vmatmul.bf16.vlgmr.msra.gmra.mxu0 %v1742_v26  ;;  %v5597_v26 = vld [vmem:[#allocation72_spill] sm:$0xff] }
 0x35c   :  { %1964 = vmatpush.bf16.msrb.mxu0 %v4189_v46 }
 0x35d   :  { %1977 = vmatpush.bf16.msrb.mxu1 %v5572_v59  ;;  %1904 = vmatpush.bf16.msrb.mxu3 %v5578_v35 }
 0x35e   :  { %1990 = vmatpush.bf16.msrb.mxu2 %v5575_v55 }
 0x360   :  { %1965 = vmatpush.bf16.msrb.mxu0 %v5576_v42 }
 0x361   :  { %1978 = vmatpush.bf16.msrb.mxu1 %v5577_v4  ;;  %2053 = vmatpush.bf16.msra.mxu3 %v5579_v53  ;;  %v5614_v53 = vld [vmem:[#allocation94_spill] sm:$0xff] }
 0x362   :  { %1991 = vmatpush.bf16.msrb.mxu2 %v5580_v28  ;;  %v5618_v4 = vld [vmem:[#allocation46_spill] sm:$0xff] }
 0x364   :  { %1966 = vmatpush.bf16.msrb.mxu0 %v5581_v2 }
 0x365   :  { %1979 = vmatpush.bf16.msrb.mxu1 %v5582_v3  ;;  %2054 = vmatpush.bf16.msra.mxu3 %v5583_v9  ;;  %v5600_v9 = vld [vmem:[#allocation80_spill] sm:$0xff] }
 0x366   :  { %1992 = vmatpush.bf16.msrb.mxu2 %v5584_v17 }
 0x368   :  { %1967 = vmatpush.bf16.msrb.mxu0 %v5585_v41 }
 0x369   :  { %1980 = vmatpush.bf16.msrb.mxu1 %v5586_v47  ;;  %2055 = vmatpush.bf16.msra.mxu3 %v5587_v31  ;;  %v5599_v31 = vld [vmem:[#allocation25_spill] sm:$0xff]  ;;  %v5615_v47 = vld [vmem:[#allocation95_spill] sm:$0xff] }
 0x36a   :  { %1993 = vmatpush.bf16.msrb.mxu2 %v5588_v11 }
 0x36c   :  { %1968 = vmatpush.bf16.msrb.mxu0 %v5589_v44 }
 0x36d   :  { %1981 = vmatpush.bf16.msrb.mxu1 %v5590_v23  ;;  %2056 = vmatpush.bf16.msra.mxu3 %v5591_v62  ;;  %v5601_v23 = vld [vmem:[#allocation75_spill] sm:$0xff]  ;;  %v5602_v62 = vld [vmem:[#allocation29_spill] sm:$0xff] }
 0x36e   :  { %1994 = vmatpush.bf16.msrb.mxu2 %v5592_v21  ;;  %v5603_v21 = vld [vmem:[#allocation76_spill] sm:$0xff] }
 0x370   :  { %1969 = vmatpush.bf16.msrb.mxu0 %v5593_v36  ;;  %v5604_v36 = vld [vmem:[#allocation26_spill] sm:$0xff] }
 0x371   :  { %1982 = vmatpush.bf16.msrb.mxu1 %v5594_v15  ;;  %2057 = vmatpush.bf16.msra.mxu3 %v5595_v34  ;;  %v5605_v15 = vld [vmem:[#allocation82_spill] sm:$0xff]  ;;  %v5606_v34 = vld [vmem:[#allocation31_spill] sm:$0xff] }
 0x372   :  { %1995 = vmatpush.bf16.msrb.mxu2 %v5596_v27  ;;  %v5607_v27 = vld [vmem:[#allocation27_spill] sm:$0xff] }
 0x374   :  { %1970 = vmatpush.bf16.msrb.mxu0 %v5597_v26  ;;  %v5608_v26 = vld [vmem:[#allocation33_spill] sm:$0xff] }
 0x375   :  { %1983 = vmatpush.bf16.msrb.mxu1 %v5598_v43  ;;  %2058 = vmatpush.bf16.msra.mxu3 %v5599_v31  ;;  %v5609_v43 = vld [vmem:[#allocation35_spill] sm:$0xff]  ;;  %v5610_v31 = vld [vmem:[#allocation37_spill] sm:$0xff] }
 0x376   :  { %1996 = vmatpush.bf16.msrb.mxu2 %v5600_v9  ;;  %v5611_v9 = vld [vmem:[#allocation38_spill] sm:$0xff] }
 0x378   :  { %1971 = vmatpush.bf16.msrb.mxu0 %v5601_v23  ;;  %v5612_v23 = vld [vmem:[#allocation39_spill] sm:$0xff] }
 0x379   :  { %1984 = vmatpush.bf16.msrb.mxu1 %v5603_v21  ;;  %2059 = vmatpush.bf16.msra.mxu3 %v5604_v36 }
 0x37a   :  { %1997 = vmatpush.bf16.msrb.mxu2 %v5605_v15 }
 0x37c   :  { %2066 = vmatpush.bf16.msra.mxu0 %v5602_v62  ;;  %v5613_v62 = vld [vmem:[#allocation40_spill] sm:$0xff] }
 0x37d   :  { %2060 = vmatpush.bf16.msra.mxu3 %v5607_v27 }
 0x380   :  { %2067 = vmatpush.bf16.msra.mxu0 %v5606_v34 }
 0x384   :  { %2068 = vmatpush.bf16.msra.mxu0 %v5608_v26 }
 0x388   :  { %2069 = vmatpush.bf16.msra.mxu0 %v5609_v43 }
 0x38c   :  { %2070 = vmatpush.bf16.msra.mxu0 %v5610_v31 }
 0x390   :  { %2071 = vmatpush.bf16.msra.mxu0 %v5611_v9  ;;  %v5616_v9 = vld [vmem:[#allocation93_spill] sm:$0xff] }
 0x394   :  { %2072 = vmatpush.bf16.msra.mxu0 %v5612_v23  ;;  %v5617_v23 = vld [vmem:[#allocation96_spill] sm:$0xff] }
 0x398   :  { %2073 = vmatpush.bf16.msra.mxu0 %v5613_v62 }
 0x3b8   :  { %v1659_v21 = vpop.f32.mrf.mxu0  ;;  %v1672_v36 = vpop.f32.mrf.mxu1 }
 0x3b9   :  { %v1660_v27 = vadd.f32 %v1659_v21, %v5614_v53  ;;  %v1673_v3 = vadd.f32 %v1672_v36, %v5616_v9  ;;  %v5621_v36 = vld [vmem:[#allocation86_spill] sm:$0xff] }
 0x3bf   :  { %v1685_v44 = vpop.f32.mrf.mxu2 }
 0x3c0   :  { %v1661_v15 = vpop.f32.mrf.mxu0  ;;  %v1674_v11 = vpop.f32.mrf.mxu1 }
 0x3c3   :  { %v1752_v34 = vpop.f32.mrf.mxu3 }
 0x3c4   :  { %v1753_v26 = vadd.f32 %v1752_v34, %v5615_v47  ;;  %v5620_v47 = vld [vmem:[#allocation69_spill] sm:$0xff] }
 0x3c5   :  { %v404_v9 = vadd.f32 %v5621_v36, %v5620_v47 }
 0x3c6   :  { %v1782_v35 = vadd.f32 %v1753_v26, %v1660_v27  ;;  %v5619_v26 = vld [vmem:[#allocation71_spill] sm:$0xff] }
 0x3c7   :  { %v1687_v43 = vpop.f32.mrf.mxu2 }
 0x3c8   :  { %v3336_v41 = vmul.f32 -1.442695, %v1782_v35  ;;  %v1765_v31 = vpop.f32.mrf.mxu0  ;;  %v1778_v17 = vpop.f32.mrf.mxu1 }
 0x3c9   :  { %v1766_v18 = vadd.f32 %v1765_v31, %v5617_v23  ;;  %v1779_v47 = vadd.f32 %v1778_v17, %v5568_v54 }
 0x3ca   :  { %3621 = vpow2.f32 %v3336_v41  ;;  %v5622_v41 = vld [vmem:[#allocation70_spill] sm:$0xff] }
 0x3cb   :  { %v1802_v62 = vadd.f32 %v1766_v18, %v1673_v3  ;;  %v1754_v2 = vpop.f32.mrf.mxu3 }
 0x3cd   :  { %v3337_v28 = vmul.f32 -1.442695, %v1802_v62 }
 0x3cf   :  { %3623 = vpow2.f32 %v3337_v28  ;;  %v1841_v11 = vpop.f32.mrf.mxu2 }
 0x3d0   :  { %v3622_v15 = vpop.eup %3621  ;;  %v1842_v21 = vadd.f32 %v1841_v11, %v5618_v4  ;;  %v1767_v53 = vpop.f32.mrf.mxu0 }
 0x3d1   :  { %v1780_v34 = vpop.f32.mrf.mxu1  ;;  %v1786_v27 = vadd.f32 1.0, %v3622_v15 }
 0x3d2   :  { %v1910_v35 = vadd.f32 %v1842_v21, %v5619_v26 }
 0x3d3   :  { %3625 = vrcp.f32 %v1786_v27  ;;  %v1854_v43 = vpop.f32.mrf.mxu3  ;;  %v1798_v23 = vand.u32 2147483648, %v1786_v27  ;;  %vm1792_vm7 = vweird.f32 %v1786_v27 }
 0x3d4   :  { %v3338_v31 = vmul.f32 -1.442695, %v1910_v35  ;;  %v1855_v18 = vadd.f32 %v1854_v43, %v5622_v41  ;;  %v1796_v43 = vand.u32 2147483647, %v1786_v27 }
 0x3d5   :  { %v3624_v2 = vpop.eup %3623 }
 0x3d6   :  { %v1806_v3 = vadd.f32 1.0, %v3624_v2  ;;  %3627 = vpow2.f32 %v3338_v31  ;;  %v1930_v28 = vadd.f32 %v1855_v18, %v404_v9  ;;  %vm1797_vm9 = vcmp.eq.f32.partialorder %v1796_v43, 8.507059e+37 }
 0x3d7   :  { %v1843_v62 = vpop.f32.mrf.mxu2 }
 0x3d8   :  { %3629 = vrcp.f32 %v1806_v3  ;;  %v1867_v11 = vpop.f32.mrf.mxu0  ;;  %v3339_v34 = vmul.f32 -1.442695, %v1930_v28  ;;  %v1799_v28 = vor.u32 1.1754944e-38, %v1798_v23  ;;  %v1686_v62 = vadd.f32 %v1685_v44, %v4503_v63 }
 0x3d9   :  { %v3626_v53 = vpop.eup %3625  ;;  %vm1812_vm13 = vweird.f32 %v1806_v3 }
 0x3da   :  { %v1788_v15 = vmul.f32 %v3626_v53, %v1786_v27  ;;  %3631 = vpow2.f32 %v3339_v34  ;;  %vm1793_vm6 = vweird.f32 %v3626_v53 }
 0x3db   :  { %v1856_v21 = vpop.f32.mrf.mxu3  ;;  %vm1794_vm8 = vmor %vm1792_vm7, %vm1793_vm6 }
 0x3dc   :  { %v3628_v26 = vpop.eup %3627  ;;  %v1789_v4 = vsub.f32 1.0, %v1788_v15 }
 0x3dd   :  { %v1914_v12 = vadd.f32 1.0, %v3628_v26 }
 0x3de   :  { %v3630_v36 = vpop.eup %3629  ;;  %v1790_v35 = vmul.f32 %v3626_v53, %v1789_v4  ;;  %v1818_v4 = vand.u32 2147483648, %v1806_v3 }
 0x3df   :  { %v1808_v41 = vmul.f32 %v3630_v36, %v1806_v3  ;;  %3633 = vrcp.f32 %v1914_v12  ;;  %vm1813_vm10 = vweird.f32 %v3630_v36  ;;  %v1926_v43 = vand.u32 2147483648, %v1914_v12 }
 0x3e0   :  { %v1791_v31 = vadd.f32 %v3626_v53, %v1790_v35  ;;  %v1869_v9 = vpop.f32.mrf.mxu0  ;;  %v3632_v18 = vpop.eup %3631  ;;  %vm1814_vm14 = vmor %vm1812_vm13, %vm1813_vm10  ;;  %v1819_v44 = vor.u32 1.1754944e-38, %v1818_v4  ;;  %v1924_v17 = vand.u32 2147483647, %v1914_v12  ;;  %vm1920_vm12 = vweird.f32 %v1914_v12 }
 0x3e1   :  { %v1809_v2 = vsub.f32 1.0, %v1808_v41  ;;  %v1934_v15 = vadd.f32 1.0, %v3632_v18  ;;  %v1816_v9 = vand.u32 2147483647, %v1806_v3  ;;  %v1927_v3 = vor.u32 1.1754944e-38, %v1926_v43 }
 0x3e2   :  { %v1795_v34 = vsel %vm1794_vm8, %v3626_v53, %v1791_v31  ;;  %vm1925_vm3 = vcmp.eq.f32.partialorder %v1924_v17, 8.507059e+37 }
 0x3e3   :  { %v1810_v21 = vmul.f32 %v3630_v36, %v1809_v2  ;;  %v1800_v26 = vsel %vm1797_vm9, %v1799_v28, %v1795_v34  ;;  %3635 = vrcp.f32 %v1934_v15  ;;  %vm1817_vm15 = vcmp.eq.f32.partialorder %v1816_v9, 8.507059e+37  ;;  %v5623_v9 = vld [vmem:[#allocation87_spill] sm:$0xff] }
 0x3e4   :  { %v1822_v42 = vmul.f32 %v1800_v26, %v1686_v62  ;;  %vm1940_vm1 = vweird.f32 %v1934_v15  ;;  %v1944_v43 = vand.u32 2147483647, %v1934_v15 }
 0x3e5   :  { %v3634_v35 = vpop.eup %3633  ;;  %v1811_v27 = vadd.f32 %v3630_v36, %v1810_v21 }
 0x3e6   :  { %v1823_v41 = vadd.f32 %v1822_v42, %v1779_v47  ;;  %v1916_v23 = vmul.f32 %v3634_v35, %v1914_v12  ;;  %vm1921_vm0 = vweird.f32 %v3634_v35  ;;  %v1946_v12 = vand.u32 2147483648, %v1934_v15 }
 0x3e7   :  { %v1815_v55 = vsel %vm1814_vm14, %v3630_v36, %v1811_v27  ;;  %vm1922_vm2 = vmor %vm1920_vm12, %vm1921_vm0  ;;  %v1868_v36 = vadd.f32 %v1867_v11, %v4346_v48  ;;  %vm1945_vm6 = vcmp.eq.f32.partialorder %v1944_v43, 8.507059e+37  ;;  %v5638_v43 = vld [vmem:[#allocation62_spill] sm:$0xff] }
 0x3e8   :  { %3637 = vtanh.f32 %v1823_v41  ;;  %v1917_v53 = vsub.f32 1.0, %v1916_v23  ;;  %v1820_v18 = vsel %vm1817_vm15, %v1819_v44, %v1815_v55  ;;  %v433_v41 = vadd.f32 %v5623_v9, %v4343_v0  ;;  %v5632_v9 = vld [vmem:[#allocation68_spill] sm:$0xff] }
 0x3e9   :  { %v3636_v31 = vpop.eup %3635  ;;  %v1825_v34 = vsub.f32 1.0, %v1820_v18  ;;  %v1827_v47 = vmul.f32 %v1820_v18, %v4748_v13 }
 0x3ea   :  { %v1918_v2 = vmul.f32 %v3634_v35, %v1917_v53  ;;  %v1936_v28 = vmul.f32 %v3636_v31, %v1934_v15  ;;  %vm1941_vm11 = vweird.f32 %v3636_v31 }
 0x3eb   :  { %vm1942_vm4 = vmor %vm1940_vm1, %vm1941_vm11 }
 0x3ec   :  { %v1919_v62 = vadd.f32 %v3634_v35, %v1918_v2  ;;  %v1937_v21 = vsub.f32 1.0, %v1936_v28 }
 0x3ee   :  { %v3638_v42 = vpop.eup %3637  ;;  %v1923_v26 = vsel %vm1922_vm2, %v3634_v35, %v1919_v62  ;;  %v1938_v55 = vmul.f32 %v3636_v31, %v1937_v21  ;;  %v1947_v35 = vor.u32 1.1754944e-38, %v1946_v12  ;;  %v5635_v12 = vld [vmem:[#allocation60_spill] sm:$0xff] }
 0x3ef   :  { %v1826_v4 = vmul.f32 %v3638_v42, %v1825_v34  ;;  %v1928_v27 = vsel %vm1925_vm3, %v1927_v3, %v1923_v26  ;;  %v5625_v42 = vld [vmem:[#allocation51_spill] sm:$0xff]  ;;  %v5628_v26 = vld [vmem:[#allocation65_spill] sm:$0xff] }
 0x3f0   :  { %v1950_v23 = vmul.f32 %v1928_v27, %v1868_v36  ;;  %v1939_v53 = vadd.f32 %v3636_v31, %v1938_v55  ;;  %v5627_v36 = vld [vmem:[#allocation52_spill] sm:$0xff]  ;;  %v5630_v27 = vld [vmem:[#allocation53_spill] sm:$0xff] }
 0x3f1   :  { %v1828_v44 = vadd.f32 %v1827_v47, %v1826_v4  ;;  %v5626_v47 = vld [vmem:[#allocation50_spill] sm:$0xff]  ;;  %v5631_v55 = vld [vmem:[#allocation56_spill] sm:$0xff] }
 0x3f2   :  { %v1951_v2 = vadd.f32 %v1950_v23, %v433_v41  ;;  %v1943_v18 = vsel %vm1942_vm4, %v3636_v31, %v1939_v53  ;;  %v5629_v4 = vld [vmem:[#allocation54_spill] sm:$0xff]  ;;  %v5633_v41 = vld [vmem:[#allocation59_spill] sm:$0xff] }
 0x3f3   :  { %v4857_v11 = vsel %vm1740_vm5, %v1828_v44, %v4748_v13  ;;  %v1948_v28 = vsel %vm1945_vm6, %v1947_v35, %v1943_v18  ;;  %v4864_v13 = vpop.permute.xlu2 %1959  ;;  %v5634_v23 = vld [vmem:[#allocation58_spill] sm:$0xff]  ;;  %v5636_v44 = vld [vmem:[#allocation20_spill] sm:$0xff]  ;;  %v5640_v18 = vld [vmem:[#allocation21_spill] sm:$0xff] }
 0x3f4   :  { %3639 = vtanh.f32 %v1951_v2  ;;  %v1831_v17 = vpack.c.bf16 %v4857_v11, %v4857_v11  ;;  %v1953_v15 = vsub.f32 1.0, %v1948_v28  ;;  %v1955_v62 = vmul.f32 %v1948_v28, %v4762_v60  ;;  %v5637_v53 = vld [vmem:[#allocation74_spill] sm:$0xff]  ;;  %v5639_v2 = vld [vmem:[#allocation64_spill] sm:$0xff]  ;;  %v5643_v28 = vld [vmem:[#allocation67_spill] sm:$0xff] }
 0x3f5   :  { %vm1961_vm5 = vcmp.eq.s32.totalorder %v4864_v13, 1  ;;  %v5641_v35 = vld [vmem:[#allocation78_spill] sm:$0xff] }
 0x3f6   :  { %1879 = vmatmul.bf16.vlgmr.msra.gmra.mxu1 %v1831_v17  ;;  %1892 = vmatmul.bf16.vlgmr.msra.gmra.mxu2 %v1831_v17 }
 0x3f7   :  { %1905 = vmatmul.bf16.vlgmr.msrb.gmra.mxu3 %v1831_v17  ;;  %2079 = vmatpush.bf16.msra.mxu1 %v5464_v6  ;;  %v5642_v17 = vld [vmem:[#allocation66_spill] sm:$0xff] }
 0x3f8   :  { %2092 = vmatpush.bf16.msra.mxu2 %v4119_v49  ;;  %2105 = vmatpush.bf16.msrb.mxu3 %v4130_v1 }
 0x3fa   :  { %v3640_v10 = vpop.eup %3639 }
 0x3fb   :  { %v1954_v31 = vmul.f32 %v3640_v10, %v1953_v15  ;;  %2080 = vmatpush.bf16.msra.mxu1 %v5466_v40  ;;  %v5644_v15 = vld [vmem:[#allocation22_spill] sm:$0xff]  ;;  %v5645_v10 = vld [vmem:[#allocation79_spill] sm:$0xff] }
 0x3fc   :  { %2093 = vmatpush.bf16.msra.mxu2 %v4122_v52  ;;  %2106 = vmatpush.bf16.msrb.mxu3 %v5467_v33 }
 0x3fd   :  { %v1956_v34 = vadd.f32 %v1955_v62, %v1954_v31  ;;  %v5646_v31 = vld [vmem:[#allocation72_spill] sm:$0xff]  ;;  %v5647_v62 = vld [vmem:[#allocation73_spill] sm:$0xff] }
 0x3ff   :  { %v4874_v21 = vsel %vm1961_vm5, %v1956_v34, %v4762_v60  ;;  %2081 = vmatpush.bf16.msra.mxu1 %v5468_v30  ;;  %v5624_v60 = vld [vmem:[#allocation61_spill] sm:$0xff]  ;;  %v5648_v34 = vld [vmem:[#allocation23_spill] sm:$0xff] }
 0x400   :  { %v1963_v3 = vpack.c.bf16 %v4874_v21, %v4874_v21  ;;  %2094 = vmatpush.bf16.msra.mxu2 %v4125_v57  ;;  %2107 = vmatpush.bf16.msrb.mxu3 %v5469_v51 }
 0x402   :  { %1972 = vmatmul.bf16.vlgmr.msrb.gmra.mxu0 %v1963_v3 }
 0x403   :  { %2082 = vmatpush.bf16.msra.mxu1 %v5470_v22  ;;  %2118 = vmatpush.bf16.msrb.mxu0 %v4133_v5 }
 0x404   :  { %2095 = vmatpush.bf16.msra.mxu2 %v4128_v61  ;;  %2108 = vmatpush.bf16.msrb.mxu3 %v4167_v58 }
 0x406   :  { %1985 = vmatmul.bf16.vlgmr.msrb.gmra.mxu1 %v1963_v3  ;;  %1998 = vmatmul.bf16.vlgmr.msrb.gmra.mxu2 %v1963_v3 }
 0x407   :  { %2061 = vmatmul.bf16.vlgmr.msra.gmra.mxu3 %v1963_v3  ;;  %2083 = vmatpush.bf16.msra.mxu1 %v5471_v56 }
 0x408   :  { %2096 = vmatpush.bf16.msra.mxu2 %v4137_v14  ;;  %2119 = vmatpush.bf16.msrb.mxu0 %v4141_v24 }
 0x409   :  { %2109 = vmatpush.bf16.msrb.mxu3 %v4182_v25 }
 0x40b   :  { %2084 = vmatpush.bf16.msra.mxu1 %v4091_v16 }
 0x40c   :  { %2097 = vmatpush.bf16.msra.mxu2 %v4144_v32  ;;  %2120 = vmatpush.bf16.msrb.mxu0 %v5425_v39 }
 0x40d   :  { %2110 = vmatpush.bf16.msrb.mxu3 %v4199_v19 }
 0x40f   :  { %2085 = vmatpush.bf16.msra.mxu1 %v4097_v29 }
 0x410   :  { %2098 = vmatpush.bf16.msra.mxu2 %v4165_v50  ;;  %2121 = vmatpush.bf16.msrb.mxu0 %v5431_v45 }
 0x411   :  { %2111 = vmatpush.bf16.msrb.mxu3 %v4212_v20 }
 0x412   :  { %2074 = vmatmul.bf16.vlgmr.msra.gmra.mxu0 %v1963_v3 }
 0x413   :  { %2086 = vmatpush.bf16.msra.mxu1 %v4103_v37 }
 0x414   :  { %2099 = vmatpush.bf16.msra.mxu2 %v4180_v8  ;;  %2122 = vmatpush.bf16.msrb.mxu0 %v5434_v7 }
 0x415   :  { %2112 = vmatpush.bf16.msrb.mxu3 %v5574_v38 }
 0x416   :  { %2087 = vmatmul.bf16.vlgmr.msra.gmra.mxu1 %v1963_v3  ;;  %v5649_v3 = vld [vmem:[#allocation80_spill] sm:$0xff] }
 0x417   :  { %2185 = vmatpush.bf16.msrb.mxu1 %v4189_v46 }
 0x418   :  { %2198 = vmatpush.bf16.msrb.mxu2 %v5572_v59  ;;  %2123 = vmatpush.bf16.msrb.mxu0 %v5626_v47 }
 0x419   :  { %2211 = vmatpush.bf16.msra.mxu3 %v5624_v60 }
 0x41b   :  { %2186 = vmatpush.bf16.msrb.mxu1 %v5625_v42 }
 0x41c   :  { %2199 = vmatpush.bf16.msrb.mxu2 %v5627_v36  ;;  %2124 = vmatpush.bf16.msrb.mxu0 %v5630_v27  ;;  %v5669_v36 = vld [vmem:[#allocation45_spill] sm:$0xff] }
 0x41d   :  { %2212 = vmatpush.bf16.msra.mxu3 %v5628_v26 }
 0x41f   :  { %2187 = vmatpush.bf16.msrb.mxu1 %v5629_v4 }
 0x420   :  { %2200 = vmatpush.bf16.msrb.mxu2 %v5631_v55  ;;  %2125 = vmatpush.bf16.msrb.mxu0 %v5634_v23  ;;  %v5668_v55 = vld [vmem:[#allocation96_spill] sm:$0xff] }
 0x421   :  { %2213 = vmatpush.bf16.msra.mxu3 %v5632_v9 }
 0x423   :  { %2188 = vmatpush.bf16.msrb.mxu1 %v5633_v41 }
 0x424   :  { %2201 = vmatpush.bf16.msrb.mxu2 %v5635_v12  ;;  %2274 = vmatpush.bf16.msra.mxu0 %v5636_v44 }
 0x425   :  { %2214 = vmatpush.bf16.msra.mxu3 %v5637_v53 }
 0x427   :  { %2189 = vmatpush.bf16.msrb.mxu1 %v5638_v43 }
 0x428   :  { %2202 = vmatpush.bf16.msrb.mxu2 %v5639_v2  ;;  %2275 = vmatpush.bf16.msra.mxu0 %v5640_v18  ;;  %v5650_v2 = vld [vmem:[#allocation75_spill] sm:$0xff]  ;;  %v5651_v18 = vld [vmem:[#allocation29_spill] sm:$0xff] }
 0x429   :  { %2215 = vmatpush.bf16.msra.mxu3 %v5641_v35  ;;  %v5652_v35 = vld [vmem:[#allocation76_spill] sm:$0xff] }
 0x42b   :  { %2190 = vmatpush.bf16.msrb.mxu1 %v5642_v17  ;;  %v5653_v17 = vld [vmem:[#allocation24_spill] sm:$0xff] }
 0x42c   :  { %2203 = vmatpush.bf16.msrb.mxu2 %v5643_v28  ;;  %2276 = vmatpush.bf16.msra.mxu0 %v5644_v15  ;;  %v5654_v28 = vld [vmem:[#allocation82_spill] sm:$0xff]  ;;  %v5655_v15 = vld [vmem:[#allocation31_spill] sm:$0xff] }
 0x42d   :  { %2216 = vmatpush.bf16.msra.mxu3 %v5645_v10  ;;  %v5656_v10 = vld [vmem:[#allocation25_spill] sm:$0xff] }
 0x42f   :  { %2191 = vmatpush.bf16.msrb.mxu1 %v5646_v31  ;;  %v5657_v31 = vld [vmem:[#allocation33_spill] sm:$0xff] }
 0x430   :  { %2204 = vmatpush.bf16.msrb.mxu2 %v5647_v62  ;;  %2277 = vmatpush.bf16.msra.mxu0 %v5648_v34  ;;  %v5658_v62 = vld [vmem:[#allocation26_spill] sm:$0xff]  ;;  %v5659_v34 = vld [vmem:[#allocation35_spill] sm:$0xff] }
 0x431   :  { %2217 = vmatpush.bf16.msra.mxu3 %v5649_v3  ;;  %v5660_v3 = vld [vmem:[#allocation27_spill] sm:$0xff] }
 0x433   :  { %2192 = vmatpush.bf16.msrb.mxu1 %v5650_v2  ;;  %v5661_v2 = vld [vmem:[#allocation37_spill] sm:$0xff] }
 0x434   :  { %2205 = vmatpush.bf16.msrb.mxu2 %v5652_v35  ;;  %2278 = vmatpush.bf16.msra.mxu0 %v5653_v17  ;;  %v5663_v35 = vld [vmem:[#allocation39_spill] sm:$0xff]  ;;  %v5664_v17 = vld [vmem:[#allocation40_spill] sm:$0xff] }
 0x435   :  { %2218 = vmatpush.bf16.msra.mxu3 %v5654_v28 }
 0x437   :  { %2287 = vmatpush.bf16.msra.mxu1 %v5651_v18  ;;  %v5662_v18 = vld [vmem:[#allocation38_spill] sm:$0xff] }
 0x438   :  { %2279 = vmatpush.bf16.msra.mxu0 %v5656_v10 }
 0x43b   :  { %2288 = vmatpush.bf16.msra.mxu1 %v5655_v15 }
 0x43c   :  { %2280 = vmatpush.bf16.msra.mxu0 %v5658_v62  ;;  %v5666_v62 = vld [vmem:[#allocation95_spill] sm:$0xff] }
 0x43f   :  { %2289 = vmatpush.bf16.msra.mxu1 %v5657_v31  ;;  %v5665_v31 = vld [vmem:[#allocation94_spill] sm:$0xff] }
 0x440   :  { %2281 = vmatpush.bf16.msra.mxu0 %v5660_v3 }
 0x443   :  { %2290 = vmatpush.bf16.msra.mxu1 %v5659_v34 }
 0x447   :  { %2291 = vmatpush.bf16.msra.mxu1 %v5661_v2  ;;  %v5667_v2 = vld [vmem:[#allocation93_spill] sm:$0xff] }
 0x44b   :  { %2292 = vmatpush.bf16.msra.mxu1 %v5662_v18 }
 0x44f   :  { %2293 = vmatpush.bf16.msra.mxu1 %v5663_v35 }
 0x453   :  { %2294 = vmatpush.bf16.msra.mxu1 %v5664_v17 }
 0x473   :  { %v1880_v28 = vpop.f32.mrf.mxu1 }
 0x474   :  { %v1881_v44 = vadd.f32 %v1880_v28, %v5665_v31  ;;  %v5670_v28 = vld [vmem:[#allocation77_spill] sm:$0xff] }
 0x475   :  { %v377_v31 = vadd.f32 %v5670_v28, %v5669_v36 }
 0x479   :  { %v1893_v15 = vpop.f32.mrf.mxu2 }
 0x47a   :  { %v1906_v43 = vpop.f32.mrf.mxu3  ;;  %v1894_v9 = vadd.f32 %v1893_v15, %v5667_v2 }
 0x47b   :  { %v1882_v10 = vpop.f32.mrf.mxu1 }
 0x47f   :  { %v1973_v53 = vpop.f32.mrf.mxu0 }
 0x480   :  { %v1974_v12 = vadd.f32 %v1973_v53, %v5666_v62  ;;  %v5671_v53 = vld [vmem:[#allocation46_spill] sm:$0xff] }
 0x481   :  { %v1895_v34 = vpop.f32.mrf.mxu2 }
 0x482   :  { %v2003_v23 = vadd.f32 %v1974_v12, %v1881_v44  ;;  %v1908_v3 = vpop.f32.mrf.mxu3 }
 0x483   :  { %v1986_v41 = vpop.f32.mrf.mxu1 }
 0x484   :  { %v3340_v18 = vmul.f32 -1.442695, %v2003_v23  ;;  %v1987_v35 = vadd.f32 %v1986_v41, %v5668_v55  ;;  %v5672_v41 = vld [vmem:[#allocation69_spill] sm:$0xff] }
 0x486   :  { %3641 = vpow2.f32 %v3340_v18  ;;  %v2023_v17 = vadd.f32 %v1987_v35, %v1894_v9  ;;  %v5673_v18 = vld [vmem:[#allocation48_spill] sm:$0xff]  ;;  %v5674_v35 = vld [vmem:[#allocation70_spill] sm:$0xff] }
 0x487   :  { %v1975_v27 = vpop.f32.mrf.mxu0  ;;  %v406_v9 = vadd.f32 %v5673_v18, %v5672_v41 }
 0x488   :  { %v3341_v4 = vmul.f32 -1.442695, %v2023_v17 }
 0x489   :  { %v1999_v26 = vpop.f32.mrf.mxu2 }
 0x48a   :  { %3643 = vpow2.f32 %v3341_v4  ;;  %v2062_v10 = vpop.f32.mrf.mxu3 }
 0x48b   :  { %v2063_v34 = vadd.f32 %v2062_v10, %v5671_v53  ;;  %v1988_v12 = vpop.f32.mrf.mxu1 }
 0x48c   :  { %v3642_v44 = vpop.eup %3641 }
 0x48d   :  { %v2007_v3 = vadd.f32 1.0, %v3642_v44  ;;  %v2131_v62 = vadd.f32 %v2063_v34, %v377_v31 }
 0x48f   :  { %3645 = vrcp.f32 %v2007_v3  ;;  %v2075_v23 = vpop.f32.mrf.mxu0  ;;  %v3342_v27 = vmul.f32 -1.442695, %v2131_v62  ;;  %v2019_v42 = vand.u32 2147483648, %v2007_v3  ;;  %vm2013_vm8 = vweird.f32 %v2007_v3 }
 0x490   :  { %v3644_v15 = vpop.eup %3643  ;;  %v2076_v17 = vadd.f32 %v2075_v23, %v5674_v35  ;;  %v2017_v23 = vand.u32 2147483647, %v2007_v3 }
 0x491   :  { %v2027_v4 = vadd.f32 1.0, %v3644_v15  ;;  %v2001_v55 = vpop.f32.mrf.mxu2  ;;  %3647 = vpow2.f32 %v3342_v27 }
 0x492   :  { %v2151_v2 = vadd.f32 %v2076_v17, %v406_v9  ;;  %v2064_v28 = vpop.f32.mrf.mxu3  ;;  %vm2018_vm10 = vcmp.eq.f32.partialorder %v2017_v23, 8.507059e+37 }
 0x493   :  { %3649 = vrcp.f32 %v2027_v4  ;;  %v2088_v10 = vpop.f32.mrf.mxu1  ;;  %v1907_v28 = vadd.f32 %v1906_v43, %v4503_v63  ;;  %vm2033_vm14 = vweird.f32 %v2027_v4 }
 0x494   :  { %v3343_v12 = vmul.f32 -1.442695, %v2151_v2  ;;  %v2020_v2 = vor.u32 1.1754944e-38, %v2019_v42 }
 0x495   :  { %v3646_v36 = vpop.eup %3645 }
 0x496   :  { %v2009_v44 = vmul.f32 %v3646_v36, %v2007_v3  ;;  %3651 = vpow2.f32 %v3343_v12  ;;  %vm2014_vm7 = vweird.f32 %v3646_v36 }
 0x497   :  { %v2077_v31 = vpop.f32.mrf.mxu0  ;;  %v3648_v34 = vpop.eup %3647  ;;  %vm2015_vm9 = vmor %vm2013_vm8, %vm2014_vm7 }
 0x498   :  { %v2010_v53 = vsub.f32 1.0, %v2009_v44  ;;  %v2135_v18 = vadd.f32 1.0, %v3648_v34  ;;  %v2000_v34 = vadd.f32 %v1999_v26, %v5568_v54 }
 0x499   :  { %v3650_v47 = vpop.eup %3649 }
 0x49a   :  { %v2029_v62 = vmul.f32 %v3650_v47, %v2027_v4  ;;  %v2011_v41 = vmul.f32 %v3646_v36, %v2010_v53  ;;  %3653 = vrcp.f32 %v2135_v18  ;;  %vm2034_vm13 = vweird.f32 %v3650_v47 }
 0x49b   :  { %v2090_v55 = vpop.f32.mrf.mxu1  ;;  %v2039_v53 = vand.u32 2147483648, %v2027_v4  ;;  %vm2035_vm15 = vmor %vm2033_vm14, %vm2034_vm13  ;;  %v2145_v23 = vand.u32 2147483647, %v2135_v18  ;;  %vm2141_vm2 = vweird.f32 %v2135_v18 }
 0x49c   :  { %v3652_v15 = vpop.eup %3651  ;;  %v2030_v9 = vsub.f32 1.0, %v2029_v62  ;;  %v2012_v27 = vadd.f32 %v3646_v36, %v2011_v41  ;;  %v2037_v41 = vand.u32 2147483647, %v2027_v4 }
 0x49d   :  { %v2155_v17 = vadd.f32 1.0, %v3652_v15  ;;  %v2040_v15 = vor.u32 1.1754944e-38, %v2039_v53  ;;  %vm2146_vm11 = vcmp.eq.f32.partialorder %v2145_v23, 8.507059e+37 }
 0x49e   :  { %v2031_v12 = vmul.f32 %v3650_v47, %v2030_v9  ;;  %v2016_v44 = vsel %vm2015_vm9, %v3646_v36, %v2012_v27  ;;  %vm2038_vm0 = vcmp.eq.f32.partialorder %v2037_v41, 8.507059e+37  ;;  %v2147_v9 = vand.u32 2147483648, %v2135_v18 }
 0x49f   :  { %v2021_v31 = vsel %vm2018_vm10, %v2020_v2, %v2016_v44  ;;  %3655 = vrcp.f32 %v2155_v17  ;;  %vm2161_vm4 = vweird.f32 %v2155_v17 }
 0x4a0   :  { %v2032_v35 = vadd.f32 %v3650_v47, %v2031_v12  ;;  %v2043_v55 = vmul.f32 %v2021_v31, %v1907_v28  ;;  %v3654_v60 = vpop.eup %3653  ;;  %v2148_v4 = vor.u32 1.1754944e-38, %v2147_v9  ;;  %v2165_v9 = vand.u32 2147483647, %v2155_v17 }
 0x4a1   :  { %v2137_v42 = vmul.f32 %v3654_v60, %v2135_v18  ;;  %vm2142_vm12 = vweird.f32 %v3654_v60 }
 0x4a2   :  { %v2044_v3 = vadd.f32 %v2043_v55, %v2000_v34  ;;  %v2036_v62 = vsel %vm2035_vm15, %v3650_v47, %v2032_v35  ;;  %vm2143_vm3 = vmor %vm2141_vm2, %vm2142_vm12  ;;  %v2089_v47 = vadd.f32 %v2088_v10, %v4346_v48  ;;  %vm2166_vm7 = vcmp.eq.f32.partialorder %v2165_v9, 8.507059e+37  ;;  %v5690_v9 = vld [vmem:[#allocation62_spill] sm:$0xff] }
 0x4a3   :  { %v2138_v43 = vsub.f32 1.0, %v2137_v42  ;;  %v2041_v27 = vsel %vm2038_vm0, %v2040_v15, %v2036_v62  ;;  %v2167_v62 = vand.u32 2147483648, %v2155_v17 }
 0x4a4   :  { %3657 = vtanh.f32 %v2044_v3  ;;  %v2046_v12 = vsub.f32 1.0, %v2041_v27  ;;  %v2048_v55 = vmul.f32 %v2041_v27, %v4857_v11  ;;  %v5675_v3 = vld [vmem:[#allocation89_spill] sm:$0xff] }
 0x4a5   :  { %v3656_v36 = vpop.eup %3655  ;;  %v2139_v44 = vmul.f32 %v3654_v60, %v2138_v43  ;;  %v435_v42 = vadd.f32 %v5675_v3, %v4343_v0  ;;  %v2168_v10 = vor.u32 1.1754944e-38, %v2167_v62  ;;  %v5684_v3 = vld [vmem:[#allocation68_spill] sm:$0xff]  ;;  %v5686_v62 = vld [vmem:[#allocation58_spill] sm:$0xff] }
 0x4a6   :  { %v2157_v2 = vmul.f32 %v3656_v36, %v2155_v17  ;;  %vm2162_vm1 = vweird.f32 %v3656_v36 }
 0x4a7   :  { %v2140_v28 = vadd.f32 %v3654_v60, %v2139_v44  ;;  %vm2163_vm6 = vmor %vm2161_vm4, %vm2162_vm1 }
 0x4a8   :  { %v2158_v26 = vsub.f32 1.0, %v2157_v2 }
 0x4a9   :  { %v2144_v35 = vsel %vm2143_vm3, %v3654_v60, %v2140_v28 }
 0x4aa   :  { %v3658_v31 = vpop.eup %3657  ;;  %v2159_v34 = vmul.f32 %v3656_v36, %v2158_v26  ;;  %v2149_v41 = vsel %vm2146_vm11, %v2148_v4, %v2144_v35  ;;  %v5680_v35 = vld [vmem:[#allocation65_spill] sm:$0xff] }
 0x4ab   :  { %v2047_v53 = vmul.f32 %v3658_v31, %v2046_v12  ;;  %v2171_v18 = vmul.f32 %v2149_v41, %v2089_v47  ;;  %v5677_v31 = vld [vmem:[#allocation51_spill] sm:$0xff]  ;;  %v5679_v47 = vld [vmem:[#allocation52_spill] sm:$0xff] }
 0x4ac   :  { %v2160_v15 = vadd.f32 %v3656_v36, %v2159_v34  ;;  %v5678_v34 = vld [vmem:[#allocation50_spill] sm:$0xff]  ;;  %v5683_v41 = vld [vmem:[#allocation56_spill] sm:$0xff] }
 0x4ad   :  { %v2049_v43 = vadd.f32 %v2048_v55, %v2047_v53  ;;  %v2172_v2 = vadd.f32 %v2171_v18, %v435_v42  ;;  %v5681_v53 = vld [vmem:[#allocation54_spill] sm:$0xff]  ;;  %v5682_v55 = vld [vmem:[#allocation53_spill] sm:$0xff]  ;;  %v5685_v42 = vld [vmem:[#allocation59_spill] sm:$0xff] }
 0x4ae   :  { %v2164_v44 = vsel %vm2163_vm6, %v3656_v36, %v2160_v15  ;;  %v5687_v15 = vld [vmem:[#allocation60_spill] sm:$0xff] }
 0x4af   :  { %v4963_v60 = vsel %vm1961_vm5, %v2049_v43, %v4857_v11  ;;  %3659 = vtanh.f32 %v2172_v2  ;;  %v2169_v27 = vsel %vm2166_vm7, %v2168_v10, %v2164_v44  ;;  %v4970_v11 = vpop.permute.xlu2 %2180  ;;  %v5688_v18 = vld [vmem:[#allocation20_spill] sm:$0xff]  ;;  %v5689_v43 = vld [vmem:[#allocation74_spill] sm:$0xff]  ;;  %v5692_v44 = vld [vmem:[#allocation21_spill] sm:$0xff] }
 0x4b0   :  { %v2052_v23 = vpack.c.bf16 %v4963_v60, %v4963_v60  ;;  %v2174_v17 = vsub.f32 1.0, %v2169_v27  ;;  %v2176_v26 = vmul.f32 %v2169_v27, %v4874_v21  ;;  %vm2182_vm5 = vcmp.eq.s32.totalorder %v4970_v11, 1  ;;  %v5691_v2 = vld [vmem:[#allocation64_spill] sm:$0xff]  ;;  %v5693_v10 = vld [vmem:[#allocation78_spill] sm:$0xff]  ;;  %v5695_v27 = vld [vmem:[#allocation67_spill] sm:$0xff] }
 0x4b2   :  { %2100 = vmatmul.bf16.vlgmr.msra.gmra.mxu2 %v2052_v23  ;;  %2113 = vmatmul.bf16.vlgmr.msrb.gmra.mxu3 %v2052_v23 }
 0x4b3   :  { %2126 = vmatmul.bf16.vlgmr.msrb.gmra.mxu0 %v2052_v23  ;;  %2300 = vmatpush.bf16.msra.mxu2 %v5464_v6  ;;  %v5694_v23 = vld [vmem:[#allocation66_spill] sm:$0xff] }
 0x4b4   :  { %2313 = vmatpush.bf16.msrb.mxu3 %v4119_v49  ;;  %2326 = vmatpush.bf16.msrb.mxu0 %v4130_v1 }
 0x4b5   :  { %v3660_v13 = vpop.eup %3659 }
 0x4b6   :  { %v2175_v36 = vmul.f32 %v3660_v13, %v2174_v17  ;;  %v5696_v17 = vld [vmem:[#allocation22_spill] sm:$0xff]  ;;  %v5697_v13 = vld [vmem:[#allocation79_spill] sm:$0xff] }
 0x4b7   :  { %2301 = vmatpush.bf16.msra.mxu2 %v5466_v40 }
 0x4b8   :  { %2314 = vmatpush.bf16.msrb.mxu3 %v4122_v52  ;;  %2327 = vmatpush.bf16.msrb.mxu0 %v5467_v33  ;;  %v2177_v28 = vadd.f32 %v2176_v26, %v2175_v36  ;;  %v5698_v36 = vld [vmem:[#allocation72_spill] sm:$0xff]  ;;  %v5699_v26 = vld [vmem:[#allocation73_spill] sm:$0xff] }
 0x4ba   :  { %v4980_v12 = vsel %vm2182_vm5, %v2177_v28, %v4874_v21  ;;  %v5676_v21 = vld [vmem:[#allocation61_spill] sm:$0xff]  ;;  %v5700_v28 = vld [vmem:[#allocation23_spill] sm:$0xff] }
 0x4bb   :  { %2302 = vmatpush.bf16.msra.mxu2 %v5468_v30  ;;  %v2184_v4 = vpack.c.bf16 %v4980_v12, %v4980_v12 }
 0x4bc   :  { %2315 = vmatpush.bf16.msrb.mxu3 %v4125_v57  ;;  %2328 = vmatpush.bf16.msrb.mxu0 %v5469_v51 }
 0x4bd   :  { %2193 = vmatmul.bf16.vlgmr.msrb.gmra.mxu1 %v2184_v4 }
 0x4be   :  { %2339 = vmatpush.bf16.msrb.mxu1 %v4133_v5 }
 0x4bf   :  { %2303 = vmatpush.bf16.msra.mxu2 %v5470_v22 }
 0x4c0   :  { %2316 = vmatpush.bf16.msrb.mxu3 %v4128_v61  ;;  %2329 = vmatpush.bf16.msrb.mxu0 %v4167_v58 }
 0x4c2   :  { %2206 = vmatmul.bf16.vlgmr.msrb.gmra.mxu2 %v2184_v4  ;;  %2219 = vmatmul.bf16.vlgmr.msra.gmra.mxu3 %v2184_v4 }
 0x4c3   :  { %2282 = vmatmul.bf16.vlgmr.msra.gmra.mxu0 %v2184_v4  ;;  %2304 = vmatpush.bf16.msra.mxu2 %v5471_v56 }
 0x4c4   :  { %2317 = vmatpush.bf16.msrb.mxu3 %v4137_v14  ;;  %2340 = vmatpush.bf16.msrb.mxu1 %v4141_v24 }
 0x4c5   :  { %2330 = vmatpush.bf16.msrb.mxu0 %v4182_v25 }
 0x4c7   :  { %2305 = vmatpush.bf16.msra.mxu2 %v4091_v16 }
 0x4c8   :  { %2318 = vmatpush.bf16.msrb.mxu3 %v4144_v32  ;;  %2341 = vmatpush.bf16.msrb.mxu1 %v5425_v39 }
 0x4c9   :  { %2331 = vmatpush.bf16.msrb.mxu0 %v4199_v19 }
 0x4cb   :  { %2306 = vmatpush.bf16.msra.mxu2 %v4097_v29 }
 0x4cc   :  { %2319 = vmatpush.bf16.msrb.mxu3 %v4165_v50  ;;  %2342 = vmatpush.bf16.msrb.mxu1 %v5431_v45 }
 0x4cd   :  { %2332 = vmatpush.bf16.msrb.mxu0 %v4212_v20  ;;  %2295 = vmatmul.bf16.vlgmr.msra.gmra.mxu1 %v2184_v4 }
 0x4cf   :  { %2307 = vmatpush.bf16.msra.mxu2 %v4103_v37 }
 0x4d0   :  { %2320 = vmatpush.bf16.msrb.mxu3 %v4180_v8  ;;  %2343 = vmatpush.bf16.msrb.mxu1 %v5434_v7 }
 0x4d1   :  { %2333 = vmatpush.bf16.msrb.mxu0 %v5574_v38 }
 0x4d2   :  { %2308 = vmatmul.bf16.vlgmr.msra.gmra.mxu2 %v2184_v4  ;;  %v5701_v4 = vld [vmem:[#allocation80_spill] sm:$0xff] }
 0x4d3   :  { %2406 = vmatpush.bf16.msrb.mxu2 %v4189_v46 }
 0x4d4   :  { %2419 = vmatpush.bf16.msra.mxu3 %v5572_v59  ;;  %2344 = vmatpush.bf16.msrb.mxu1 %v5678_v34 }
 0x4d5   :  { %2432 = vmatpush.bf16.msra.mxu0 %v5676_v21 }
 0x4d7   :  { %2407 = vmatpush.bf16.msrb.mxu2 %v5677_v31 }
 0x4d8   :  { %2420 = vmatpush.bf16.msra.mxu3 %v5679_v47  ;;  %2345 = vmatpush.bf16.msrb.mxu1 %v5682_v55  ;;  %v5722_v55 = vld [vmem:[#allocation96_spill] sm:$0xff] }
 0x4d9   :  { %2433 = vmatpush.bf16.msra.mxu0 %v5680_v35 }
 0x4db   :  { %2408 = vmatpush.bf16.msrb.mxu2 %v5681_v53 }
 0x4dc   :  { %2421 = vmatpush.bf16.msra.mxu3 %v5683_v41  ;;  %2346 = vmatpush.bf16.msrb.mxu1 %v5686_v62  ;;  %v5719_v41 = vld [vmem:[#allocation46_spill] sm:$0xff] }
 0x4dd   :  { %2434 = vmatpush.bf16.msra.mxu0 %v5684_v3 }
 0x4df   :  { %2409 = vmatpush.bf16.msrb.mxu2 %v5685_v42 }
 0x4e0   :  { %2422 = vmatpush.bf16.msra.mxu3 %v5687_v15  ;;  %2495 = vmatpush.bf16.msra.mxu1 %v5688_v18  ;;  %v5702_v18 = vld [vmem:[#allocation75_spill] sm:$0xff] }
 0x4e1   :  { %2435 = vmatpush.bf16.msra.mxu0 %v5689_v43 }
 0x4e3   :  { %2410 = vmatpush.bf16.msrb.mxu2 %v5690_v9 }
 0x4e4   :  { %2423 = vmatpush.bf16.msra.mxu3 %v5691_v2  ;;  %2496 = vmatpush.bf16.msra.mxu1 %v5692_v44  ;;  %v5703_v44 = vld [vmem:[#allocation29_spill] sm:$0xff] }
 0x4e5   :  { %2436 = vmatpush.bf16.msra.mxu0 %v5693_v10  ;;  %v5704_v10 = vld [vmem:[#allocation76_spill] sm:$0xff] }
 0x4e7   :  { %2411 = vmatpush.bf16.msrb.mxu2 %v5694_v23  ;;  %v5705_v23 = vld [vmem:[#allocation24_spill] sm:$0xff] }
 0x4e8   :  { %2424 = vmatpush.bf16.msra.mxu3 %v5695_v27  ;;  %2497 = vmatpush.bf16.msra.mxu1 %v5696_v17  ;;  %v5706_v27 = vld [vmem:[#allocation82_spill] sm:$0xff]  ;;  %v5707_v17 = vld [vmem:[#allocation31_spill] sm:$0xff] }
 0x4e9   :  { %2437 = vmatpush.bf16.msra.mxu0 %v5697_v13  ;;  %v5708_v13 = vld [vmem:[#allocation25_spill] sm:$0xff] }
 0x4eb   :  { %2412 = vmatpush.bf16.msrb.mxu2 %v5698_v36  ;;  %v5709_v36 = vld [vmem:[#allocation33_spill] sm:$0xff] }
 0x4ec   :  { %2425 = vmatpush.bf16.msra.mxu3 %v5699_v26  ;;  %2498 = vmatpush.bf16.msra.mxu1 %v5700_v28  ;;  %v5710_v26 = vld [vmem:[#allocation26_spill] sm:$0xff]  ;;  %v5711_v28 = vld [vmem:[#allocation35_spill] sm:$0xff] }
 0x4ed   :  { %2438 = vmatpush.bf16.msra.mxu0 %v5701_v4  ;;  %v5712_v4 = vld [vmem:[#allocation27_spill] sm:$0xff] }
 0x4ef   :  { %2413 = vmatpush.bf16.msrb.mxu2 %v5702_v18  ;;  %v5713_v18 = vld [vmem:[#allocation37_spill] sm:$0xff] }
 0x4f0   :  { %2426 = vmatpush.bf16.msra.mxu3 %v5704_v10  ;;  %2499 = vmatpush.bf16.msra.mxu1 %v5705_v23  ;;  %v5715_v10 = vld [vmem:[#allocation39_spill] sm:$0xff]  ;;  %v5716_v23 = vld [vmem:[#allocation40_spill] sm:$0xff] }
 0x4f1   :  { %2439 = vmatpush.bf16.msra.mxu0 %v5706_v27 }
 0x4f3   :  { %2508 = vmatpush.bf16.msra.mxu2 %v5703_v44  ;;  %v5714_v44 = vld [vmem:[#allocation38_spill] sm:$0xff] }
 0x4f4   :  { %2500 = vmatpush.bf16.msra.mxu1 %v5708_v13 }
 0x4f7   :  { %2509 = vmatpush.bf16.msra.mxu2 %v5707_v17 }
 0x4f8   :  { %2501 = vmatpush.bf16.msra.mxu1 %v5710_v26  ;;  %v5718_v26 = vld [vmem:[#allocation95_spill] sm:$0xff] }
 0x4fb   :  { %2510 = vmatpush.bf16.msra.mxu2 %v5709_v36  ;;  %v5717_v36 = vld [vmem:[#allocation94_spill] sm:$0xff] }
 0x4fc   :  { %2502 = vmatpush.bf16.msra.mxu1 %v5712_v4 }
 0x4ff   :  { %2511 = vmatpush.bf16.msra.mxu2 %v5711_v28 }
 0x503   :  { %2512 = vmatpush.bf16.msra.mxu2 %v5713_v18 }
 0x507   :  { %2513 = vmatpush.bf16.msra.mxu2 %v5714_v44 }
 0x50b   :  { %2514 = vmatpush.bf16.msra.mxu2 %v5715_v10  ;;  %v5720_v10 = vld [vmem:[#allocation81_spill] sm:$0xff] }
 0x50f   :  { %2515 = vmatpush.bf16.msra.mxu2 %v5716_v23 }
 0x530   :  { %v2127_v27 = vpop.f32.mrf.mxu0 }
 0x535   :  { %v2101_v17 = vpop.f32.mrf.mxu2  ;;  %v2114_v2 = vpop.f32.mrf.mxu3 }
 0x536   :  { %v2102_v43 = vadd.f32 %v2101_v17, %v5717_v36 }
 0x538   :  { %v2129_v13 = vpop.f32.mrf.mxu0 }
 0x539   :  { %v5721_v13 = vld [vmem:[#allocation93_spill] sm:$0xff] }
 0x53a   :  { %v2194_v9 = vpop.f32.mrf.mxu1  ;;  %v2115_v31 = vadd.f32 %v2114_v2, %v5721_v13 }
 0x53b   :  { %v2195_v15 = vadd.f32 %v2194_v9, %v5718_v26 }
 0x53d   :  { %v2103_v28 = vpop.f32.mrf.mxu2  ;;  %v2116_v42 = vpop.f32.mrf.mxu3  ;;  %v2224_v4 = vadd.f32 %v2195_v15, %v2102_v43 }
 0x53f   :  { %v3344_v3 = vmul.f32 -1.442695, %v2224_v4 }
 0x540   :  { %v2283_v18 = vpop.f32.mrf.mxu0 }
 0x541   :  { %v2284_v44 = vadd.f32 %v2283_v18, %v5719_v41  ;;  %3661 = vpow2.f32 %v3344_v3  ;;  %v5723_v18 = vld [vmem:[#allocation69_spill] sm:$0xff]  ;;  %v5724_v3 = vld [vmem:[#allocation88_spill] sm:$0xff] }
 0x542   :  { %v2196_v23 = vpop.f32.mrf.mxu1  ;;  %v409_v41 = vadd.f32 %v5724_v3, %v5723_v18 }
 0x543   :  { %v2352_v53 = vadd.f32 %v2284_v44, %v5720_v10  ;;  %v5725_v44 = vld [vmem:[#allocation70_spill] sm:$0xff] }
 0x545   :  { %v3346_v62 = vmul.f32 -1.442695, %v2352_v53  ;;  %v2207_v35 = vpop.f32.mrf.mxu2  ;;  %v2220_v47 = vpop.f32.mrf.mxu3 }
 0x546   :  { %v2208_v17 = vadd.f32 %v2207_v35, %v5722_v55 }
 0x547   :  { %3663 = vpow2.f32 %v3346_v62  ;;  %v3662_v9 = vpop.eup %3661 }
 0x548   :  { %v2244_v28 = vadd.f32 %v2208_v17, %v2115_v31  ;;  %v2285_v42 = vpop.f32.mrf.mxu0  ;;  %v2228_v15 = vadd.f32 1.0, %v3662_v9 }
 0x54a   :  { %v3345_v43 = vmul.f32 -1.442695, %v2244_v28  ;;  %3665 = vrcp.f32 %v2228_v15  ;;  %v2296_v4 = vpop.f32.mrf.mxu1  ;;  %v2240_v55 = vand.u32 2147483648, %v2228_v15  ;;  %vm2234_vm9 = vweird.f32 %v2228_v15 }
 0x54b   :  { %v2297_v53 = vadd.f32 %v2296_v4, %v5725_v44  ;;  %v2238_v4 = vand.u32 2147483647, %v2228_v15 }
 0x54c   :  { %3667 = vpow2.f32 %v3345_v43 }
 0x54d   :  { %v3664_v10 = vpop.eup %3663  ;;  %v2209_v23 = vpop.f32.mrf.mxu2  ;;  %v2372_v13 = vadd.f32 %v2297_v53, %v409_v41  ;;  %v2241_v41 = vor.u32 1.1754944e-38, %v2240_v55  ;;  %vm2239_vm13 = vcmp.eq.f32.partialorder %v2238_v4, 8.507059e+37 }
 0x54e   :  { %v2222_v26 = vpop.f32.mrf.mxu3  ;;  %v2356_v2 = vadd.f32 1.0, %v3664_v10 }
 0x54f   :  { %v3347_v35 = vmul.f32 -1.442695, %v2372_v13 }
 0x550   :  { %3669 = vrcp.f32 %v2356_v2  ;;  %v3666_v62 = vpop.eup %3665  ;;  %v2368_v36 = vand.u32 2147483648, %v2356_v2  ;;  %vm2362_vm15 = vweird.f32 %v2356_v2 }
 0x551   :  { %v2230_v17 = vmul.f32 %v3666_v62, %v2228_v15  ;;  %3671 = vpow2.f32 %v3347_v35  ;;  %vm2235_vm8 = vweird.f32 %v3666_v62  ;;  %v2128_v35 = vadd.f32 %v2127_v27, %v4503_v63 }
 0x552   :  { %v3668_v31 = vpop.eup %3667  ;;  %v2298_v28 = vpop.f32.mrf.mxu1  ;;  %vm2236_vm10 = vmor %vm2234_vm9, %vm2235_vm8 }
 0x553   :  { %v2248_v9 = vadd.f32 1.0, %v3668_v31  ;;  %v2231_v42 = vsub.f32 1.0, %v2230_v17  ;;  %v2221_v31 = vadd.f32 %v2220_v47, %v5568_v54  ;;  %v2369_v47 = vor.u32 1.1754944e-38, %v2368_v36 }
 0x555   :  { %3673 = vrcp.f32 %v2248_v9  ;;  %v2309_v3 = vpop.f32.mrf.mxu2  ;;  %v2232_v18 = vmul.f32 %v3666_v62, %v2231_v42  ;;  %v2366_v42 = vand.u32 2147483647, %v2356_v2  ;;  %v2258_v27 = vand.u32 2147483647, %v2248_v9 }
 0x556   :  { %v3670_v43 = vpop.eup %3669  ;;  %v2310_v4 = vadd.f32 %v2309_v3, %v4346_v48  ;;  %vm2254_vm3 = vweird.f32 %v2248_v9 }
 0x557   :  { %v2358_v23 = vmul.f32 %v3670_v43, %v2356_v2  ;;  %v3672_v26 = vpop.eup %3671  ;;  %v2233_v10 = vadd.f32 %v3666_v62, %v2232_v18  ;;  %vm2363_vm14 = vweird.f32 %v3670_v43  ;;  %vm2367_vm12 = vcmp.eq.f32.partialorder %v2366_v42, 8.507059e+37 }
 0x558   :  { %v2376_v13 = vadd.f32 1.0, %v3672_v26  ;;  %vm2364_vm0 = vmor %vm2362_vm15, %vm2363_vm14  ;;  %vm2259_vm1 = vcmp.eq.f32.partialorder %v2258_v27, 8.507059e+37 }
 0x559   :  { %v2359_v53 = vsub.f32 1.0, %v2358_v23  ;;  %v2237_v17 = vsel %vm2236_vm10, %v3666_v62, %v2233_v10  ;;  %v2260_v23 = vand.u32 2147483648, %v2248_v9 }
 0x55a   :  { %v2242_v44 = vsel %vm2239_vm13, %v2241_v41, %v2237_v17  ;;  %3675 = vrcp.f32 %v2376_v13  ;;  %v2386_v3 = vand.u32 2147483647, %v2376_v13  ;;  %vm2382_vm6 = vweird.f32 %v2376_v13 }
 0x55b   :  { %v3674_v28 = vpop.eup %3673  ;;  %v2264_v59 = vmul.f32 %v2242_v44, %v2128_v35  ;;  %v2360_v38 = vmul.f32 %v3670_v43, %v2359_v53  ;;  %v5726_v44 = vld [vmem:[#allocation91_spill] sm:$0xff]  ;;  %v2261_v2 = vor.u32 1.1754944e-38, %v2260_v23 }
 0x55c   :  { %v2250_v21 = vmul.f32 %v3674_v28, %v2248_v9  ;;  %vm2255_vm2 = vweird.f32 %v3674_v28  ;;  %v438_v53 = vadd.f32 %v5726_v44, %v4343_v0  ;;  %vm2387_vm8 = vcmp.eq.f32.partialorder %v2386_v3, 8.507059e+37 }
 0x55d   :  { %v2311_v15 = vpop.f32.mrf.mxu2  ;;  %v2265_v55 = vadd.f32 %v2264_v59, %v2221_v31  ;;  %v2361_v26 = vadd.f32 %v3670_v43, %v2360_v38  ;;  %vm2256_vm11 = vmor %vm2254_vm3, %vm2255_vm2 }
 0x55e   :  { %v2251_v18 = vsub.f32 1.0, %v2250_v21  ;;  %v2388_v15 = vand.u32 2147483648, %v2376_v13 }
 0x55f   :  { %v2365_v10 = vsel %vm2364_vm0, %v3670_v43, %v2361_v26  ;;  %3677 = vtanh.f32 %v2265_v55 }
 0x560   :  { %v2252_v62 = vmul.f32 %v3674_v28, %v2251_v18  ;;  %v3676_v41 = vpop.eup %3675  ;;  %v2370_v35 = vsel %vm2367_vm12, %v2369_v47, %v2365_v10 }
 0x561   :  { %v2378_v38 = vmul.f32 %v3676_v41, %v2376_v13  ;;  %v2392_v21 = vmul.f32 %v2370_v35, %v2310_v4  ;;  %vm2383_vm4 = vweird.f32 %v3676_v41  ;;  %v5072_v35 = vpop.permute.xlu0 %2401 }
 0x562   :  { %v2253_v59 = vadd.f32 %v3674_v28, %v2252_v62  ;;  %vm2384_vm7 = vmor %vm2382_vm6, %vm2383_vm4  ;;  %v2389_v62 = vor.u32 1.1754944e-38, %v2388_v15  ;;  %vm2403_vm9 = vcmp.eq.s32.totalorder %v5072_v35, 1 }
 0x563   :  { %v2379_v36 = vsub.f32 1.0, %v2378_v38  ;;  %v2393_v17 = vadd.f32 %v2392_v21, %v438_v53  ;;  %v5753_v21 = vld [vmem:[#allocation94_spill] sm:$0xff] }
 0x564   :  { %v2257_v31 = vsel %vm2256_vm11, %v3674_v28, %v2253_v59 }
 0x565   :  { %v2262_v42 = vsel %vm2259_vm1, %v2261_v2, %v2257_v31  ;;  %v2380_v18 = vmul.f32 %v3676_v41, %v2379_v36  ;;  %3679 = vtanh.f32 %v2393_v17  ;;  %v3678_v26 = vpop.eup %3677  ;;  %v5754_v31 = vld [vmem:[#allocation95_spill] sm:$0xff] }
 0x566   :  { %v2267_v43 = vsub.f32 1.0, %v2262_v42  ;;  %v2269_v9 = vmul.f32 %v2262_v42, %v4963_v60 }
 0x567   :  { %v2381_v47 = vadd.f32 %v3676_v41, %v2380_v18  ;;  %v5755_v18 = vld [vmem:[#allocation45_spill] sm:$0xff] }
 0x568   :  { %v2268_v55 = vmul.f32 %v3678_v26, %v2267_v43  ;;  %v5756_v26 = vld [vmem:[#allocation83_spill] sm:$0xff] }
 0x569   :  { %v2385_v28 = vsel %vm2384_vm7, %v3676_v41, %v2381_v47 }
 0x56a   :  { %v2270_v23 = vadd.f32 %v2269_v9, %v2268_v55  ;;  %v2390_v27 = vsel %vm2387_vm8, %v2389_v62, %v2385_v28  ;;  %v382_v55 = vadd.f32 %v5756_v26, %v5755_v18  ;;  %v5757_v9 = vld [vmem:[#allocation46_spill] sm:$0xff] }
 0x56b   :  { %v3680_v4 = vpop.eup %3679  ;;  %v2395_v10 = vsub.f32 1.0, %v2390_v27  ;;  %v2397_v59 = vmul.f32 %v2390_v27, %v4980_v12 }
 0x56c   :  { %v5068_v44 = vsel %vm2182_vm5, %v2270_v23, %v4963_v60 }
 0x56d   :  { %v2273_v53 = vpack.c.bf16 %v5068_v44, %v5068_v44  ;;  %v2396_v13 = vmul.f32 %v3680_v4, %v2395_v10  ;;  %v5758_v4 = vld [vmem:[#allocation93_spill] sm:$0xff] }
 0x56f   :  { %2321 = vmatmul.bf16.vlgmr.msrb.gmra.mxu3 %v2273_v53  ;;  %2334 = vmatmul.bf16.vlgmr.msrb.gmra.mxu0 %v2273_v53  ;;  %v2398_v41 = vadd.f32 %v2397_v59, %v2396_v13  ;;  %v3525_v59 = vld [vmem:[#allocation11 + $0x38] sm:$0xff] }
 0x570   :  { %2347 = vmatmul.bf16.vlgmr.msrb.gmra.mxu1 %v2273_v53  ;;  %2521 = vmatpush.bf16.msrb.mxu3 %v5464_v6  ;;  %v5749_v6 = vld [vmem:[#allocation80_spill] sm:$0xff] }
 0x571   :  { %2534 = vmatpush.bf16.msrb.mxu0 %v4119_v49  ;;  %2547 = vmatpush.bf16.msrb.mxu1 %v4130_v1  ;;  %v5082_v60 = vsel %vm2403_vm9, %v2398_v41, %v4980_v12  ;;  %v5728_v49 = vld [vmem:[#allocation49_spill] sm:$0xff]  ;;  %v5759_v53 = vld [vmem:[#allocation96_spill] sm:$0xff] }
 0x572   :  { %v2405_v11 = vpack.c.bf16 %v5082_v60, %v5082_v60  ;;  %v5733_v1 = vld [vmem:[#allocation65_spill] sm:$0xff] }
 0x574   :  { %2522 = vmatpush.bf16.msrb.mxu3 %v5466_v40  ;;  %2414 = vmatmul.bf16.vlgmr.msrb.gmra.mxu2 %v2405_v11  ;;  %v5750_v40 = vld [vmem:[#allocation75_spill] sm:$0xff] }
 0x575   :  { %2535 = vmatpush.bf16.msrb.mxu0 %v4122_v52  ;;  %2548 = vmatpush.bf16.msrb.mxu1 %v5467_v33  ;;  %v5729_v52 = vld [vmem:[#allocation61_spill] sm:$0xff]  ;;  %v5751_v33 = vld [vmem:[#allocation76_spill] sm:$0xff] }
 0x576   :  { %2560 = vmatpush.bf16.msrb.mxu2 %v4133_v5  ;;  %v5735_v5 = vld [vmem:[#allocation54_spill] sm:$0xff] }
 0x578   :  { %2523 = vmatpush.bf16.msrb.mxu3 %v5468_v30  ;;  %v5752_v30 = vld [vmem:[#allocation82_spill] sm:$0xff] }
 0x579   :  { %2536 = vmatpush.bf16.msrb.mxu0 %v4125_v57  ;;  %2549 = vmatpush.bf16.msrb.mxu1 %v5469_v51  ;;  %v5731_v57 = vld [vmem:[#allocation51_spill] sm:$0xff] }
 0x57a   :  { %2561 = vmatpush.bf16.msrb.mxu2 %v4141_v24  ;;  %v5737_v24 = vld [vmem:[#allocation68_spill] sm:$0xff] }
 0x57c   :  { %2524 = vmatpush.bf16.msrb.mxu3 %v5470_v22 }
 0x57d   :  { %2537 = vmatpush.bf16.msrb.mxu0 %v4128_v61  ;;  %2550 = vmatpush.bf16.msrb.mxu1 %v4167_v58  ;;  %v5732_v61 = vld [vmem:[#allocation52_spill] sm:$0xff]  ;;  %v5740_v58 = vld [vmem:[#allocation74_spill] sm:$0xff] }
 0x57e   :  { %2562 = vmatpush.bf16.msrb.mxu2 %v5425_v39  ;;  %v5746_v39 = vld [vmem:[#allocation79_spill] sm:$0xff] }
 0x57f   :  { %2427 = vmatmul.bf16.vlgmr.msra.gmra.mxu3 %v2405_v11  ;;  %2440 = vmatmul.bf16.vlgmr.msra.gmra.mxu0 %v2405_v11 }
 0x580   :  { %2503 = vmatmul.bf16.vlgmr.msra.gmra.mxu1 %v2405_v11  ;;  %2525 = vmatpush.bf16.msrb.mxu3 %v5471_v56 }
 0x581   :  { %2538 = vmatpush.bf16.msrb.mxu0 %v4137_v14  ;;  %2551 = vmatpush.bf16.msrb.mxu1 %v4182_v25  ;;  %v5736_v14 = vld [vmem:[#allocation56_spill] sm:$0xff] }
 0x582   :  { %2563 = vmatpush.bf16.msrb.mxu2 %v5431_v45  ;;  %v5742_v25 = vld [vmem:[#allocation64_spill] sm:$0xff]  ;;  %v5748_v45 = vld [vmem:[#allocation73_spill] sm:$0xff] }
 0x584   :  { %2526 = vmatpush.bf16.msrb.mxu3 %v4091_v16  ;;  %2516 = vmatmul.bf16.vlgmr.msra.gmra.mxu2 %v2405_v11  ;;  %v5727_v16 = vld [vmem:[#allocation57_spill] sm:$0xff] }
 0x585   :  { %2539 = vmatpush.bf16.msrb.mxu0 %v4144_v32  ;;  %2552 = vmatpush.bf16.msrb.mxu1 %v4199_v19  ;;  %v5738_v32 = vld [vmem:[#allocation59_spill] sm:$0xff]  ;;  %v5744_v19 = vld [vmem:[#allocation66_spill] sm:$0xff] }
 0x586   :  { %2564 = vmatpush.bf16.msrb.mxu2 %v5434_v7  ;;  %v5747_v7 = vld [vmem:[#allocation72_spill] sm:$0xff] }
 0x588   :  { %2527 = vmatpush.bf16.msrb.mxu3 %v4097_v29  ;;  %v5730_v29 = vld [vmem:[#allocation53_spill] sm:$0xff] }
 0x589   :  { %2540 = vmatpush.bf16.msrb.mxu0 %v4165_v50  ;;  %2553 = vmatpush.bf16.msrb.mxu1 %v4212_v20  ;;  %v5739_v50 = vld [vmem:[#allocation60_spill] sm:$0xff]  ;;  %v5745_v20 = vld [vmem:[#allocation67_spill] sm:$0xff] }
 0x58a   :  { %2565 = vmatpush.bf16.msrb.mxu2 %v5678_v34 }
 0x58c   :  { %2528 = vmatpush.bf16.msrb.mxu3 %v4103_v37  ;;  %v5734_v37 = vld [vmem:[#allocation58_spill] sm:$0xff] }
 0x58d   :  { %2541 = vmatpush.bf16.msrb.mxu0 %v4180_v8  ;;  %2554 = vmatpush.bf16.msrb.mxu1 %v5727_v16  ;;  %v5741_v8 = vld [vmem:[#allocation62_spill] sm:$0xff] }
 0x58e   :  { %2566 = vmatpush.bf16.msrb.mxu2 %v5730_v29 }
 0x58f   :  { %2529 = vmatmul.bf16.vlgmr.msrb.gmra.mxu3 %v2405_v11 }
 0x590   :  { %2627 = vmatpush.bf16.msra.mxu3 %v4189_v46  ;;  %v5743_v46 = vld [vmem:[#allocation78_spill] sm:$0xff] }
 0x591   :  { %2640 = vmatpush.bf16.msra.mxu0 %v5728_v49  ;;  %2653 = vmatpush.bf16.msra.mxu1 %v5729_v52 }
 0x592   :  { %2567 = vmatpush.bf16.msrb.mxu2 %v5734_v37  ;;  %v5761_v37 = vld [vmem:[#allocation90_spill] sm:$0xff] }
 0x594   :  { %2628 = vmatpush.bf16.msra.mxu3 %v5731_v57  ;;  %v3524_v57 = vld [vmem:[#allocation11 + $0x30] sm:$0xff] }
 0x595   :  { %2641 = vmatpush.bf16.msra.mxu0 %v5732_v61  ;;  %2654 = vmatpush.bf16.msra.mxu1 %v5733_v1  ;;  %v5760_v1 = vld [vmem:[#allocation69_spill] sm:$0xff] }
 0x598   :  { %2629 = vmatpush.bf16.msra.mxu3 %v5735_v5  ;;  %v411_v5 = vadd.f32 %v5761_v37, %v5760_v1  ;;  %v5763_v37 = vld [vmem:[#allocation92_spill] sm:$0xff] }
 0x599   :  { %2642 = vmatpush.bf16.msra.mxu0 %v5736_v14  ;;  %2655 = vmatpush.bf16.msra.mxu1 %v5737_v24  ;;  %v5762_v14 = vld [vmem:[#allocation70_spill] sm:$0xff] }
 0x59c   :  { %2630 = vmatpush.bf16.msra.mxu3 %v5738_v32 }
 0x59d   :  { %2643 = vmatpush.bf16.msra.mxu0 %v5739_v50  ;;  %2656 = vmatpush.bf16.msra.mxu1 %v5740_v58 }
 0x5a0   :  { %2631 = vmatpush.bf16.msra.mxu3 %v5741_v8 }
 0x5a1   :  { %2644 = vmatpush.bf16.msra.mxu0 %v5742_v25  ;;  %2657 = vmatpush.bf16.msra.mxu1 %v5743_v46  ;;  %v3523_v25 = vld [vmem:[#allocation11 + $0x28] sm:$0xff] }
 0x5a4   :  { %2632 = vmatpush.bf16.msra.mxu3 %v5744_v19  ;;  %v3522_v19 = vld [vmem:[#allocation11 + $0x20] sm:$0xff] }
 0x5a5   :  { %2645 = vmatpush.bf16.msra.mxu0 %v5745_v20  ;;  %2658 = vmatpush.bf16.msra.mxu1 %v5746_v39 }
 0x5a8   :  { %2633 = vmatpush.bf16.msra.mxu3 %v5747_v7 }
 0x5a9   :  { %2646 = vmatpush.bf16.msra.mxu0 %v5748_v45  ;;  %2659 = vmatpush.bf16.msra.mxu1 %v5749_v6 }
 0x5ac   :  { %2634 = vmatpush.bf16.msra.mxu3 %v5750_v40 }
 0x5ad   :  { %2647 = vmatpush.bf16.msra.mxu0 %v5751_v33  ;;  %2660 = vmatpush.bf16.msra.mxu1 %v5752_v30 }
 0x5b0   :  { %2856 = vmatpush.bf16.msrb.mxu3 %v3525_v59 }
 0x5b4   :  { %2857 = vmatpush.bf16.msrb.mxu3 %v3524_v57 }
 0x5b8   :  { %2858 = vmatpush.bf16.msrb.mxu3 %v3523_v25 }
 0x5bc   :  { %2859 = vmatpush.bf16.msrb.mxu3 %v3522_v19 }
 0x5ec   :  { %v2335_v51 = vpop.f32.mrf.mxu0 }
 0x5ed   :  { %v5139_v22 = vpop.f32.mrf.mxu1  ;;  %v2336_v10 = vadd.f32 %v2335_v51, %v5758_v4  ;;  %v3521_v51 = vld [vmem:[#allocation11 + $0x18] sm:$0xff] }
 0x5ee   :  { %2860 = vmatpush.bf16.msrb.mxu3 %v3521_v51  ;;  %v2349_v18 = vadd.f32 %v5139_v22, %v4503_v63 }
 0x5f2   :  { %v2322_v56 = vpop.f32.mrf.mxu3 }
 0x5f3   :  { %v2323_v2 = vadd.f32 %v2322_v56, %v5753_v21 }
 0x5f4   :  { %v2337_v12 = vpop.f32.mrf.mxu0 }
 0x5f5   :  { %v2350_v34 = vpop.f32.mrf.mxu1 }
 0x5f7   :  { %v2415_v38 = vpop.f32.mrf.mxu2 }
 0x5f8   :  { %v2416_v36 = vadd.f32 %v2415_v38, %v5754_v31 }
 0x5fa   :  { %v2324_v17 = vpop.f32.mrf.mxu3  ;;  %v2445_v42 = vadd.f32 %v2416_v36, %v2323_v2 }
 0x5fb   :  { %v3520_v17 = vld [vmem:[#allocation11 + $0x10] sm:$0xff] }
 0x5fc   :  { %v5143_v15 = vpop.f32.mrf.mxu0  ;;  %v3348_v3 = vmul.f32 -1.442695, %v2445_v42  ;;  %2861 = vmatpush.bf16.msrb.mxu3 %v3520_v17 }
 0x5fd   :  { %v2504_v43 = vpop.f32.mrf.mxu1  ;;  %v2442_v26 = vadd.f32 %v5143_v15, %v5568_v54 }
 0x5fe   :  { %v2505_v47 = vadd.f32 %v2504_v43, %v5757_v9  ;;  %3681 = vpow2.f32 %v3348_v3 }
 0x5ff   :  { %v2417_v23 = vpop.f32.mrf.mxu2 }
 0x600   :  { %v2573_v62 = vadd.f32 %v2505_v47, %v382_v55 }
 0x602   :  { %v3350_v28 = vmul.f32 -1.442695, %v2573_v62  ;;  %v2428_v27 = vpop.f32.mrf.mxu3 }
 0x603   :  { %v2429_v13 = vadd.f32 %v2428_v27, %v5759_v53 }
 0x604   :  { %3683 = vpow2.f32 %v3350_v28  ;;  %v2443_v41 = vpop.f32.mrf.mxu0  ;;  %v3682_v11 = vpop.eup %3681 }
 0x605   :  { %v2465_v16 = vadd.f32 %v2429_v13, %v2336_v10  ;;  %v2506_v49 = vpop.f32.mrf.mxu1  ;;  %v2449_v52 = vadd.f32 1.0, %v3682_v11  ;;  %v3519_v13 = vld [vmem:[#allocation11 + $0x8] sm:$0xff] }
 0x606   :  { %2862 = vmatpush.bf16.msrb.mxu3 %v3519_v13 }
 0x607   :  { %v3349_v29 = vmul.f32 -1.442695, %v2465_v16  ;;  %3685 = vrcp.f32 %v2449_v52  ;;  %v2517_v61 = vpop.f32.mrf.mxu2  ;;  %v2461_v33 = vand.u32 2147483648, %v2449_v52  ;;  %v2459_v34 = vand.u32 2147483647, %v2449_v52 }
 0x608   :  { %v2518_v24 = vadd.f32 %v2517_v61, %v5762_v14  ;;  %vm2455_vm10 = vweird.f32 %v2449_v52  ;;  %v3518_v61 = vld [vmem:[#allocation11] sm:$0xff] }
 0x609   :  { %3687 = vpow2.f32 %v3349_v29  ;;  %v2462_v42 = vor.u32 1.1754944e-38, %v2461_v33  ;;  %vm2460_vm14 = vcmp.eq.f32.partialorder %v2459_v34, 8.507059e+37 }
 0x60a   :  { %v3684_v32 = vpop.eup %3683  ;;  %v2430_v50 = vpop.f32.mrf.mxu3  ;;  %v2593_v8 = vadd.f32 %v2518_v24, %v411_v5  ;;  %v440_v5 = vadd.f32 %v5763_v37, %v4343_v0  ;;  %2863 = vmatpush.bf16.msrb.mxu3 %v3518_v61 }
 0x60b   :  { %v2577_v58 = vadd.f32 1.0, %v3684_v32 }
 0x60c   :  { %v3351_v46 = vmul.f32 -1.442695, %v2593_v8 }
 0x60d   :  { %3689 = vrcp.f32 %v2577_v58  ;;  %v3686_v20 = vpop.eup %3685  ;;  %v2587_v62 = vand.u32 2147483647, %v2577_v58  ;;  %v2589_v23 = vand.u32 2147483648, %v2577_v58  ;;  %vm2583_vm0 = vweird.f32 %v2577_v58 }
 0x60e   :  { %v2451_v7 = vmul.f32 %v3686_v20, %v2449_v52  ;;  %3691 = vpow2.f32 %v3351_v46  ;;  %vm2456_vm5 = vweird.f32 %v3686_v20 }
 0x60f   :  { %v3688_v39 = vpop.eup %3687  ;;  %v2519_v6 = vpop.f32.mrf.mxu2  ;;  %vm2457_vm13 = vmor %vm2455_vm10, %vm2456_vm5  ;;  %vm2588_vm2 = vcmp.eq.f32.partialorder %v2587_v62, 8.507059e+37  ;;  %v2590_v49 = vor.u32 1.1754944e-38, %v2589_v23  ;;  %v3531_v23 = vld [vmem:[#allocation13 + $0x28] sm:$0xff] }
 0x610   :  { %v5153_v45 = vadd.f32 1.0, %v3688_v39  ;;  %v2452_v40 = vsub.f32 1.0, %v2451_v7 }
 0x612   :  { %3693 = vrcp.f32 %v5153_v45  ;;  %v2530_v30 = vpop.f32.mrf.mxu3  ;;  %v2453_v12 = vmul.f32 %v3686_v20, %v2452_v40  ;;  %v2479_v15 = vand.u32 2147483647, %v5153_v45  ;;  %v2481_v16 = vand.u32 2147483648, %v5153_v45 }
 0x613   :  { %v3690_v56 = vpop.eup %3689  ;;  %v2531_v29 = vadd.f32 %v2530_v30, %v4346_v48  ;;  %vm2475_vm11 = vweird.f32 %v5153_v45 }
 0x614   :  { %v2579_v38 = vmul.f32 %v3690_v56, %v2577_v58  ;;  %v3692_v2 = vpop.eup %3691  ;;  %v2454_v36 = vadd.f32 %v3686_v20, %v2453_v12  ;;  %vm2584_vm15 = vweird.f32 %v3690_v56  ;;  %v2482_v58 = vor.u32 1.1754944e-38, %v2481_v16 }
 0x615   :  { %v5156_v3 = vadd.f32 1.0, %v3692_v2  ;;  %vm2585_vm12 = vmor %vm2583_vm0, %vm2584_vm15  ;;  %vm2480_vm4 = vcmp.eq.f32.partialorder %v2479_v15, 8.507059e+37 }
 0x616   :  { %v2580_v43 = vsub.f32 1.0, %v2579_v38  ;;  %v2458_v55 = vsel %vm2457_vm13, %v3686_v20, %v2454_v36  ;;  %v5182_v36 = vpop.permute.xlu1 %2622 }
 0x617   :  { %v2463_v47 = vsel %vm2460_vm14, %v2462_v42, %v2458_v55  ;;  %3695 = vrcp.f32 %v5156_v3  ;;  %v2609_v19 = vand.u32 2147483648, %v5156_v3  ;;  %v2607_v0 = vand.u32 2147483647, %v5156_v3  ;;  %v3532_v55 = vld [vmem:[#allocation13 + $0x30] sm:$0xff] }
 0x618   :  { %v3694_v9 = vpop.eup %3693  ;;  %v2485_v28 = vmul.f32 %v2463_v47, %v2349_v18  ;;  %v2581_v10 = vmul.f32 %v3690_v56, %v2580_v43  ;;  %vm2603_vm7 = vweird.f32 %v5156_v3  ;;  %vm2624_vm10 = vcmp.eq.s32.totalorder %v5182_v36, 1 }
 0x619   :  { %v2471_v27 = vmul.f32 %v3694_v9, %v5153_v45  ;;  %vm2476_vm3 = vweird.f32 %v3694_v9  ;;  %v2610_v33 = vor.u32 1.1754944e-38, %v2609_v19  ;;  %vm2608_vm5 = vcmp.eq.f32.partialorder %v2607_v0, 8.507059e+37 }
 0x61a   :  { %v2532_v59 = vpop.f32.mrf.mxu3  ;;  %v2486_v22 = vadd.f32 %v2485_v28, %v2442_v26  ;;  %v2582_v11 = vadd.f32 %v3690_v56, %v2581_v10  ;;  %vm2477_vm1 = vmor %vm2475_vm11, %vm2476_vm3  ;;  %v3533_v26 = vld [vmem:[#allocation13 + $0x38] sm:$0xff] }
 0x61b   :  { %v2472_v41 = vsub.f32 1.0, %v2471_v27  ;;  %2795 = vmatpush.bf16.msra.mxu2 %v3533_v26  ;;  %v3530_v27 = vld [vmem:[#allocation13 + $0x20] sm:$0xff] }
 0x61c   :  { %v2586_v57 = vsel %vm2585_vm12, %v3690_v56, %v2582_v11  ;;  %3697 = vtanh.f32 %v2486_v22  ;;  %v3529_v11 = vld [vmem:[#allocation13 + $0x18] sm:$0xff] }
 0x61d   :  { %v2473_v52 = vmul.f32 %v3694_v9, %v2472_v41  ;;  %v3696_v1 = vpop.eup %3695  ;;  %v2591_v14 = vsel %vm2588_vm2, %v2590_v49, %v2586_v57  ;;  %v3528_v57 = vld [vmem:[#allocation13 + $0x10] sm:$0xff] }
 0x61e   :  { %v2599_v32 = vmul.f32 %v3696_v1, %v5156_v3  ;;  %v2613_v50 = vmul.f32 %v2591_v14, %v2531_v29  ;;  %vm2604_vm6 = vweird.f32 %v3696_v1  ;;  %v3526_v14 = vld [vmem:[#allocation13] sm:$0xff] }
 0x61f   :  { %v2474_v24 = vadd.f32 %v3694_v9, %v2473_v52  ;;  %vm2605_vm8 = vmor %vm2603_vm7, %vm2604_vm6  ;;  %2796 = vmatpush.bf16.msra.mxu2 %v3532_v55  ;;  %v3550_v55 = vld [vmem:[%s5217_s12] ss:$0 sm:$0xff] }
 0x620   :  { %v2600_v48 = vsub.f32 1.0, %v2599_v32  ;;  %v2614_v25 = vadd.f32 %v2613_v50, %v440_v5 }
 0x621   :  { %v2478_v8 = vsel %vm2477_vm1, %v3694_v9, %v2474_v24 }
 0x622   :  { %v2483_v46 = vsel %vm2480_vm4, %v2482_v58, %v2478_v8  ;;  %v2601_v39 = vmul.f32 %v3696_v1, %v2600_v48  ;;  %3699 = vtanh.f32 %v2614_v25  ;;  %v3698_v7 = vpop.eup %3697 }
 0x623   :  { %v2488_v20 = vsub.f32 1.0, %v2483_v46  ;;  %v2490_v40 = vmul.f32 %v2483_v46, %v5068_v44  ;;  %2797 = vmatpush.bf16.msra.mxu2 %v3531_v23 }
 0x624   :  { %v2602_v45 = vadd.f32 %v3696_v1, %v2601_v39 }
 0x625   :  { %v2489_v6 = vmul.f32 %v3698_v7, %v2488_v20 }
 0x626   :  { %v2606_v30 = vsel %vm2605_vm8, %v3696_v1, %v2602_v45  ;;  %v3527_v1 = vld [vmem:[#allocation13 + $0x8] sm:$0xff] }
 0x627   :  { %v2491_v51 = vadd.f32 %v2490_v40, %v2489_v6  ;;  %v2611_v56 = vsel %vm2608_vm5, %v2610_v33, %v2606_v30  ;;  %2798 = vmatpush.bf16.msra.mxu2 %v3530_v27 }
 0x628   :  { %v3700_v12 = vpop.eup %3699  ;;  %v2616_v34 = vsub.f32 1.0, %v2611_v56  ;;  %v2618_v42 = vmul.f32 %v2611_v56, %v5082_v60 }
 0x629   :  { %v5178_v38 = vsel %vm2403_vm9, %v2491_v51, %v5068_v44 }
 0x62a   :  { %v2494_v2 = vpack.c.bf16 %v5178_v38, %v5178_v38  ;;  %v2617_v17 = vmul.f32 %v3700_v12, %v2616_v34 }
 0x62b   :  { %2799 = vmatpush.bf16.msra.mxu2 %v3529_v11 }
 0x62c   :  { %2542 = vmatmul.bf16.vlgmr.msrb.gmra.mxu0 %v2494_v2  ;;  %2555 = vmatmul.bf16.vlgmr.msrb.gmra.mxu1 %v2494_v2  ;;  %v2619_v3 = vadd.f32 %v2618_v42, %v2617_v17 }
 0x62d   :  { %2568 = vmatmul.bf16.vlgmr.msrb.gmra.mxu2 %v2494_v2 }
 0x62e   :  { %v2625_v35 = vsel %vm2624_vm10, %v2619_v3, %v5082_v60 }
 0x62f   :  { %v2626_v44 = vpack.c.bf16 %v2625_v35, %v2625_v35  ;;  %2800 = vmatpush.bf16.msra.mxu2 %v3528_v57 }
 0x631   :  { %2635 = vmatmul.bf16.vlgmr.msra.gmra.mxu3 %v2626_v44 }
 0x633   :  { %2801 = vmatpush.bf16.msra.mxu2 %v3527_v1 }
 0x637   :  { %2802 = vmatpush.bf16.msra.mxu2 %v3526_v14 }
 0x63c   :  { %2648 = vmatmul.bf16.vlgmr.msra.gmra.mxu0 %v2626_v44  ;;  %2661 = vmatmul.bf16.vlgmr.msra.gmra.mxu1 %v2626_v44 }
 0x641   :  { %2864 = vmatmul.bf16.vlgmr.msrb.gmra.mxu3 %v2626_v44 }
 0x6a9   :  { %v2543_v43 = vpop.f32.mrf.mxu0  ;;  %v2556_v18 = vpop.f32.mrf.mxu1 }
 0x6aa   :  { %v2544_v60 = vadd.f32 %v2543_v43, %v5753_v21  ;;  %v2557_v15 = vadd.f32 %v2556_v18, %v5758_v4 }
 0x6b0   :  { %v2569_v9 = vpop.f32.mrf.mxu2 }
 0x6b1   :  { %v2545_v47 = vpop.f32.mrf.mxu0  ;;  %v2558_v62 = vpop.f32.mrf.mxu1  ;;  %v2570_v45 = vadd.f32 %v2569_v9, %v4503_v63 }
 0x6b4   :  { %v2636_v28 = vpop.f32.mrf.mxu3 }
 0x6b5   :  { %v2637_v10 = vadd.f32 %v2636_v28, %v5754_v31 }
 0x6b7   :  { %v2666_v13 = vadd.f32 %v2637_v10, %v2544_v60 }
 0x6b8   :  { %v2571_v59 = vpop.f32.mrf.mxu2 }
 0x6b9   :  { %v2649_v22 = vpop.f32.mrf.mxu0  ;;  %v2662_v41 = vpop.f32.mrf.mxu1  ;;  %v3352_v16 = vmul.f32 -1.442695, %v2666_v13 }
 0x6ba   :  { %v2650_v49 = vadd.f32 %v2649_v22, %v5759_v53  ;;  %v2663_v51 = vadd.f32 %v2662_v41, %v5568_v54 }
 0x6bb   :  { %3701 = vpow2.f32 %v3352_v16 }
 0x6bc   :  { %v2686_v52 = vadd.f32 %v2650_v49, %v2557_v15  ;;  %v2638_v29 = vpop.f32.mrf.mxu3 }
 0x6be   :  { %v3353_v61 = vmul.f32 -1.442695, %v2686_v52 }
 0x6c0   :  { %3703 = vpow2.f32 %v3353_v61 }
 0x6c1   :  { %v2651_v21 = vpop.f32.mrf.mxu0  ;;  %v2664_v31 = vpop.f32.mrf.mxu1 }
 0x6c2   :  { %v3702_v37 = vpop.eup %3701 }
 0x6c3   :  { %v2670_v5 = vadd.f32 1.0, %v3702_v37 }
 0x6c4   :  { %v2865_v4 = vpop.f32.mrf.mxu3 }
 0x6c5   :  { %3705 = vrcp.f32 %v2670_v5  ;;  %v2682_v25 = vand.u32 2147483648, %v2670_v5  ;;  %v2680_v0 = vand.u32 2147483647, %v2670_v5  ;;  %vm2676_vm13 = vweird.f32 %v2670_v5 }
 0x6c6   :  { %v3704_v24 = vpop.eup %3703 }
 0x6c7   :  { %v2690_v32 = vadd.f32 1.0, %v3704_v24  ;;  %v2683_v7 = vor.u32 1.1754944e-38, %v2682_v25  ;;  %vm2681_vm15 = vcmp.eq.f32.partialorder %v2680_v0, 8.507059e+37 }
 0x6c9   :  { %3707 = vrcp.f32 %v2690_v32  ;;  %v2702_v30 = vand.u32 2147483648, %v2690_v32  ;;  %vm2696_vm12 = vweird.f32 %v2690_v32  ;;  %v2700_v34 = vand.u32 2147483647, %v2690_v32 }
 0x6cb   :  { %v3706_v53 = vpop.eup %3705  ;;  %v2703_v42 = vor.u32 1.1754944e-38, %v2702_v30  ;;  %vm2701_vm3 = vcmp.eq.f32.partialorder %v2700_v34, 8.507059e+37 }
 0x6cc   :  { %v2672_v50 = vmul.f32 %v3706_v53, %v2670_v5  ;;  %v2867_v58 = vpop.f32.mrf.mxu3  ;;  %vm2677_vm9 = vweird.f32 %v3706_v53 }
 0x6cd   :  { %vm2678_vm14 = vmor %vm2676_vm13, %vm2677_vm9 }
 0x6ce   :  { %v2673_v8 = vsub.f32 1.0, %v2672_v50 }
 0x6cf   :  { %v3708_v48 = vpop.eup %3707 }
 0x6d0   :  { %v2692_v46 = vmul.f32 %v3708_v48, %v2690_v32  ;;  %v2674_v19 = vmul.f32 %v3706_v53, %v2673_v8  ;;  %vm2697_vm0 = vweird.f32 %v3708_v48 }
 0x6d1   :  { %vm2698_vm2 = vmor %vm2696_vm12, %vm2697_vm0 }
 0x6d2   :  { %v2693_v20 = vsub.f32 1.0, %v2692_v46  ;;  %v2675_v39 = vadd.f32 %v3706_v53, %v2674_v19 }
 0x6d4   :  { %v2694_v6 = vmul.f32 %v3708_v48, %v2693_v20  ;;  %v2679_v40 = vsel %vm2678_vm14, %v3706_v53, %v2675_v39 }
 0x6d5   :  { %v2684_v33 = vsel %vm2681_vm15, %v2683_v7, %v2679_v40 }
 0x6d6   :  { %v2695_v56 = vadd.f32 %v3708_v48, %v2694_v6  ;;  %v2706_v12 = vmul.f32 %v2684_v33, %v2570_v45 }
 0x6d8   :  { %v2707_v2 = vadd.f32 %v2706_v12, %v2663_v51  ;;  %v2699_v17 = vsel %vm2698_vm2, %v3708_v48, %v2695_v56 }
 0x6d9   :  { %v2704_v3 = vsel %vm2701_vm3, %v2703_v42, %v2699_v17 }
 0x6da   :  { %3709 = vtanh.f32 %v2707_v2  ;;  %v2709_v63 = vsub.f32 1.0, %v2704_v3  ;;  %v2711_v43 = vmul.f32 %v2704_v3, %v5178_v38 }
 0x6e0   :  { %v3710_v35 = vpop.eup %3709 }
 0x6e1   :  { %v2710_v44 = vmul.f32 %v3710_v35, %v2709_v63 }
 0x6e3   :  { %v2712_v18 = vadd.f32 %v2711_v43, %v2710_v44 }
 0x6e5   :  { %v2713_v54 = vsel %vm2624_vm10, %v2712_v18, %v5178_v38 }
 0x6e6   :  { %v2730_v26 = vpack.c.bf16 %v2713_v54, %v2713_v54 }
 0x6e8   :  { %2803 = vmatmul.bf16.vlgmr.msra.gmra.mxu2 %v2730_v26 }
 0x76b   :  { %v2804_v9 = vpop.f32.mrf.mxu2 }
 0x76c   :  { %v2866_v47 = vadd.f32 %v2865_v4, %v2804_v9 }
 0x76e   :  { %v2873_v62 = vadd.f32 %v3550_v55, %v2866_v47 }
 0x770   :  { %2874 = vst [vmem:[#allocation14] sm:$0xff] %v2873_v62 }
 0x771   :  { %2885 = dma.vmem_to_hbm [thread:$0]  %s2881_s14, 128, %s2883_s18, [#allocation4]  }
 0x773   :  { %v2806_v38 = vpop.f32.mrf.mxu2 }
 0x774   :  { %3912 = dma.done.wait [#allocation4], 128  }
 0x775   :  { %3913 = vsyncadd [#allocation4], 4294967168 }
 0x776   :  { %2890 = vsyncpa [#allocation3], 1 }
 0x777   :  { %2891 = vsyncpa [#allocation6], 1 }
 0x778   :  { %2892 = vsyncpa [#allocation9], 1 }
 0x779   :  { %2893 = vsyncpa [#allocation12], 1 }
 0x77a   :  { %2894 = vsyncpa [#allocation4], 1 }

</bundles_post_ra>
